<compile_context>
chip_gen: v7x
topology: tpu7x:2x2x1
jax: 0.10.0
libtpu: 0.0.40
codegen_flags: <defaults>
</compile_context>

<pallas_src>
import jax
import jax.numpy as jnp
from jax import lax
from jax.experimental import pallas as pl
from jax.experimental.pallas import tpu as pltpu


def _conv3x3_same(a, w, pad_ref, H, W):
    """3x3 'SAME' (stride=1, pad=1) convolution as 9 shifted channel matmuls.

    a:       (H*W, Cin) float32 input (one image, rows flattened row-major).
    w:       (3, 3, Cin, Cout) float32 weights (HWIO), BN scale pre-folded.
    pad_ref: (H+2, W+16, Cin) float32 VMEM scratch whose border is zero.
    returns: (H*W, Cout) float32.
    """
    cin, cout = w.shape[2], w.shape[3]
    # Aligned interior write: row offset 1 is the outer dim, col offset 8 is
    # sublane-aligned.
    pad_ref[1:H + 1, 8:8 + W, :] = a.reshape(H, W, cin)
    acc = jnp.zeros((H * W, cout), jnp.float32)
    for dy in range(3):
        for dx in range(3):
            win = pad_ref[dy:dy + H, 7 + dx:7 + dx + W, :]        # (H, W, cin)
            acc = acc + jnp.dot(win.reshape(H * W, cin), w[dy, dx],
                                preferred_element_type=jnp.float32)
    return acc


def mbasicblock_kernel(x_ref, w1_ref, b1_ref, w2_ref, b2_ref, o_ref, pad_ref):
    _, H, W, C = x_ref.shape
    Hp, Wp, _ = pad_ref.shape
    HW = H * W

    # Zero only the halo border (the interior is always fully overwritten
    # before it is read).  Done unconditionally each grid step so it is also
    # correct when the "parallel" batch axis is sharded across cores.
    zrow = jnp.zeros((1, Wp, C), jnp.float32)
    pad_ref[0:1, :, :] = zrow
    pad_ref[H + 1:H + 2, :, :] = zrow
    zcol = jnp.zeros((Hp, 8, C), jnp.float32)
    pad_ref[:, 0:8, :] = zcol
    pad_ref[:, 8 + W:8 + W + 8, :] = zcol

    x = x_ref[...].reshape(HW, C).astype(jnp.float32)

    # conv1 (3x3, SAME) -> folded-BN1 bias -> ReLU
    o1 = _conv3x3_same(x, w1_ref[...], pad_ref, H, W)
    o1 = jnp.maximum(o1 + b1_ref[...], 0.0)

    # conv2 (3x3, SAME) -> folded-BN2 bias
    o2 = _conv3x3_same(o1, w2_ref[...], pad_ref, H, W)
    o2 = o2 + b2_ref[...]

    # residual add (downsample=None path) + ReLU
    res = x_ref[...].reshape(HW, C).astype(jnp.float32)
    y = jnp.maximum(o2 + res, 0.0)
    o_ref[...] = y.reshape(1, H, W, C).astype(o_ref.dtype)


def fold_bn(gamma, beta, mean, var, eps=1e-5):
    scale = gamma * lax.rsqrt(var + eps)
    bias = beta - mean * scale
    return scale, bias


def mbasicblock_forward(x, params):
    """MBasicBlock forward (stride=1, downsample=None) on NHWC input."""
    N, H, W, C = x.shape
    w1, w2 = params["w1"], params["w2"]
    assert w1.shape == (3, 3, C, C) and w2.shape == (3, 3, C, C), (
        "MBasicBlock with stride=1, downsample=None requires planes == inplanes")

    s1, b1 = fold_bn(params["bn1_gamma"], params["bn1_beta"],
                     params["bn1_mean"], params["bn1_var"])
    s2, b2 = fold_bn(params["bn2_gamma"], params["bn2_beta"],
                     params["bn2_mean"], params["bn2_var"])
    w1f = (w1 * s1[None, None, None, :]).astype(jnp.float32)
    w2f = (w2 * s2[None, None, None, :]).astype(jnp.float32)
    b1f = b1.reshape(1, C).astype(jnp.float32)
    b2f = b2.reshape(1, C).astype(jnp.float32)

    tile = pl.BlockSpec((1, H, W, C), lambda n: (n, 0, 0, 0))
    wspec = pl.BlockSpec((3, 3, C, C), lambda n: (0, 0, 0, 0))
    bspec = pl.BlockSpec((1, C), lambda n: (0, 0))

    return pl.pallas_call(
        mbasicblock_kernel,
        out_shape=jax.ShapeDtypeStruct((N, H, W, C), x.dtype),
        grid_spec=pltpu.PrefetchScalarGridSpec(
            num_scalar_prefetch=0,
            grid=(N,),
            in_specs=[tile, wspec, bspec, wspec, bspec],
            out_specs=tile,
            scratch_shapes=[pltpu.VMEM((H + 2, W + 16, C), jnp.float32)],
        ),
        compiler_params=pltpu.CompilerParams(
            dimension_semantics=("parallel",),
        ),
    )(x, w1f, b1f, w2f, b2f)


# ---------------- reference (plain JAX) for correctness check ----------------
def reference_forward(x, params):
    def conv(inp, w):
        dn = lax.conv_dimension_numbers(inp.shape, w.shape,
                                        ("NHWC", "HWIO", "NHWC"))
        return lax.conv_general_dilated(inp, w, (1, 1), "SAME",
                                        dimension_numbers=dn,
                                        precision=lax.Precision.HIGHEST)
    s1, b1 = fold_bn(params["bn1_gamma"], params["bn1_beta"],
                     params["bn1_mean"], params["bn1_var"])
    s2, b2 = fold_bn(params["bn2_gamma"], params["bn2_beta"],
                     params["bn2_mean"], params["bn2_var"])
    o = jnp.maximum(conv(x, params["w1"]) * s1 + b1, 0.0)
    o = conv(o, params["w2"]) * s2 + b2
    return jnp.maximum(o + x, 0.0)


def make_params(key, planes):
    ks = jax.random.split(key, 10)
    def bn(k0, k1, k2, k3, c):
        return (1.0 + 0.1 * jax.random.normal(k0, (c,), jnp.float32),
                0.1 * jax.random.normal(k1, (c,), jnp.float32),
                0.1 * jax.random.normal(k2, (c,), jnp.float32),
                1.0 + 0.1 * jax.random.uniform(k3, (c,), jnp.float32))
    g1, be1, m1, v1 = bn(ks[2], ks[3], ks[4], ks[5], planes)
    g2, be2, m2, v2 = bn(ks[6], ks[7], ks[8], ks[9], planes)
    return dict(
        w1=0.1 * jax.random.normal(ks[0], (3, 3, planes, planes), jnp.float32),
        w2=0.1 * jax.random.normal(ks[1], (3, 3, planes, planes), jnp.float32),
        bn1_gamma=g1, bn1_beta=be1, bn1_mean=m1, bn1_var=v1,
        bn2_gamma=g2, bn2_beta=be2, bn2_mean=m2, bn2_var=v2)


if __name__ == "__main__":
    key = jax.random.PRNGKey(0)
    kx, kp = jax.random.split(key)

    N, H, W, planes = 2, 16, 16, 32      # inplanes == planes (downsample=None)
    x = jax.random.normal(kx, (N, H, W, planes), jnp.float32)
    params = make_params(kp, planes)

    out = jax.block_until_ready(mbasicblock_forward(x, params))
    ref = reference_forward(x, params)

    assert out.shape == (N, H, W, planes)
    assert jnp.allclose(out, ref, atol=1e-4, rtol=1e-4), (
        "mismatch vs reference: max abs err = "
        f"{float(jnp.max(jnp.abs(out - ref)))}")

    print("KERNEL_OK")
</pallas_src>

<mosaic_0001>
module attributes {stable_mosaic.version = 11 : i64} {
  func.func @mbasicblock_kernel(%arg0: i32, %arg1: memref<1x16x16x32xf32, #tpu.memory_space<vmem>>, %arg2: memref<3x3x32x32xf32, #tpu.memory_space<vmem>>, %arg3: memref<1x32xf32, #tpu.memory_space<vmem>>, %arg4: memref<3x3x32x32xf32, #tpu.memory_space<vmem>>, %arg5: memref<1x32xf32, #tpu.memory_space<vmem>>, %arg6: memref<1x16x16x32xf32, #tpu.memory_space<vmem>>, %arg7: memref<18x32x32xf32, #tpu.memory_space<vmem>>) attributes {dimension_semantics = [#tpu.dimension_semantics<parallel>], iteration_bounds = array<i64: 2>, scalar_prefetch = 0 : i64, scratch_operands = 1 : i64, tpu.core_type = #tpu.core_type<tc>, window_params = [{transform_indices = @transform_0, window_bounds = array<i64: 1, 16, 16, 32>}, {pipeline_mode = #tpu.pipeline_mode<synchronous>, transform_indices = @transform_1, window_bounds = array<i64: 3, 3, 32, 32>}, {pipeline_mode = #tpu.pipeline_mode<synchronous>, transform_indices = @transform_2, window_bounds = array<i64: 1, 32>}, {pipeline_mode = #tpu.pipeline_mode<synchronous>, transform_indices = @transform_3, window_bounds = array<i64: 3, 3, 32, 32>}, {pipeline_mode = #tpu.pipeline_mode<synchronous>, transform_indices = @transform_4, window_bounds = array<i64: 1, 32>}, {transform_indices = @transform_5, window_bounds = array<i64: 1, 16, 16, 32>}]} {
    %cst = arith.constant 0.000000e+00 : f32
    %0 = vector.broadcast %cst : f32 to vector<1x32x32xf32>
    %c0 = arith.constant 0 : index
    %c0_0 = arith.constant 0 : index
    %c0_1 = arith.constant 0 : index
    %1 = vector.load %arg7[%c0, %c0_0, %c0_1] : memref<18x32x32xf32, #tpu.memory_space<vmem>>, vector<1x32x32xf32>
    tpu.vector_store %arg7[%c0, %c0_0, %c0_1], %0 {strides = array<i32>} : memref<18x32x32xf32, #tpu.memory_space<vmem>>, vector<1x32x32xf32>,
    %c17 = arith.constant 17 : index
    %c0_2 = arith.constant 0 : index
    %c0_3 = arith.constant 0 : index
    %2 = vector.load %arg7[%c17, %c0_2, %c0_3] : memref<18x32x32xf32, #tpu.memory_space<vmem>>, vector<1x32x32xf32>
    tpu.vector_store %arg7[%c17, %c0_2, %c0_3], %0 {strides = array<i32>} : memref<18x32x32xf32, #tpu.memory_space<vmem>>, vector<1x32x32xf32>,
    %cst_4 = arith.constant 0.000000e+00 : f32
    %3 = vector.broadcast %cst_4 : f32 to vector<18x8x32xf32>
    %c0_5 = arith.constant 0 : index
    %c0_6 = arith.constant 0 : index
    %c0_7 = arith.constant 0 : index
    %4 = vector.load %arg7[%c0_5, %c0_6, %c0_7] : memref<18x32x32xf32, #tpu.memory_space<vmem>>, vector<18x8x32xf32>
    tpu.vector_store %arg7[%c0_5, %c0_6, %c0_7], %3 {strides = array<i32>} : memref<18x32x32xf32, #tpu.memory_space<vmem>>, vector<18x8x32xf32>,
    %c0_8 = arith.constant 0 : index
    %c24 = arith.constant 24 : index
    %c0_9 = arith.constant 0 : index
    %5 = vector.load %arg7[%c0_8, %c24, %c0_9] : memref<18x32x32xf32, #tpu.memory_space<vmem>>, vector<18x8x32xf32>
    tpu.vector_store %arg7[%c0_8, %c24, %c0_9], %3 {strides = array<i32>} : memref<18x32x32xf32, #tpu.memory_space<vmem>>, vector<18x8x32xf32>,
    %c0_10 = arith.constant 0 : index
    %c0_11 = arith.constant 0 : index
    %c0_12 = arith.constant 0 : index
    %c0_13 = arith.constant 0 : index
    %6 = vector.load %arg1[%c0_10, %c0_11, %c0_12, %c0_13] : memref<1x16x16x32xf32, #tpu.memory_space<vmem>>, vector<1x16x16x32xf32>
    %7 = vector.shape_cast %6 : vector<1x16x16x32xf32> to vector<256x32xf32>
    %c0_14 = arith.constant 0 : index
    %c0_15 = arith.constant 0 : index
    %c0_16 = arith.constant 0 : index
    %c0_17 = arith.constant 0 : index
    %8 = vector.load %arg2[%c0_14, %c0_15, %c0_16, %c0_17] : memref<3x3x32x32xf32, #tpu.memory_space<vmem>>, vector<3x3x32x32xf32>
    %9 = vector.shape_cast %7 : vector<256x32xf32> to vector<16x16x32xf32>
    %c1 = arith.constant 1 : index
    %c8 = arith.constant 8 : index
    %c0_18 = arith.constant 0 : index
    %10 = vector.load %arg7[%c1, %c8, %c0_18] : memref<18x32x32xf32, #tpu.memory_space<vmem>>, vector<16x16x32xf32>
    tpu.vector_store %arg7[%c1, %c8, %c0_18], %9 {strides = array<i32>} : memref<18x32x32xf32, #tpu.memory_space<vmem>>, vector<16x16x32xf32>,
    %cst_19 = arith.constant 0.000000e+00 : f32
    %11 = vector.broadcast %cst_19 : f32 to vector<256x32xf32>
    %c0_20 = arith.constant 0 : index
    %c7 = arith.constant 7 : index
    %c0_21 = arith.constant 0 : index
    %12 = vector.load %arg7[%c0_20, %c7, %c0_21] : memref<18x32x32xf32, #tpu.memory_space<vmem>>, vector<16x16x32xf32>
    %13 = vector.shape_cast %12 : vector<16x16x32xf32> to vector<256x32xf32>
    %14 = vector.extract_strided_slice %8 {offsets = [0, 0, 0, 0], sizes = [1, 1, 32, 32], strides = [1, 1, 1, 1]} : vector<3x3x32x32xf32> to vector<1x1x32x32xf32>
    %15 = vector.shape_cast %14 : vector<1x1x32x32xf32> to vector<32x32xf32>
    %cst_22 = arith.constant dense<0.000000e+00> : vector<256x32xf32>
    %16 = tpu.matmul %13, %15, %cst_22 {dimension_numbers = #tpu.dot_dimension_numbers<[1], [0], [0], [1], [0, 0, 1, 1], [], []>} : vector<256x32xf32>, vector<32x32xf32>, vector<256x32xf32> -> vector<256x32xf32>
    %17 = arith.addf %11, %16 : vector<256x32xf32>
    %c0_23 = arith.constant 0 : index
    %c8_24 = arith.constant 8 : index
    %c0_25 = arith.constant 0 : index
    %18 = vector.load %arg7[%c0_23, %c8_24, %c0_25] : memref<18x32x32xf32, #tpu.memory_space<vmem>>, vector<16x16x32xf32>
    %19 = vector.shape_cast %18 : vector<16x16x32xf32> to vector<256x32xf32>
    %20 = vector.extract_strided_slice %8 {offsets = [0, 1, 0, 0], sizes = [1, 1, 32, 32], strides = [1, 1, 1, 1]} : vector<3x3x32x32xf32> to vector<1x1x32x32xf32>
    %21 = vector.shape_cast %20 : vector<1x1x32x32xf32> to vector<32x32xf32>
    %cst_26 = arith.constant dense<0.000000e+00> : vector<256x32xf32>
    %22 = tpu.matmul %19, %21, %cst_26 {dimension_numbers = #tpu.dot_dimension_numbers<[1], [0], [0], [1], [0, 0, 1, 1], [], []>} : vector<256x32xf32>, vector<32x32xf32>, vector<256x32xf32> -> vector<256x32xf32>
    %23 = arith.addf %17, %22 : vector<256x32xf32>
    %c0_27 = arith.constant 0 : index
    %c9 = arith.constant 9 : index
    %c0_28 = arith.constant 0 : index
    %24 = vector.load %arg7[%c0_27, %c9, %c0_28] : memref<18x32x32xf32, #tpu.memory_space<vmem>>, vector<16x16x32xf32>
    %25 = vector.shape_cast %24 : vector<16x16x32xf32> to vector<256x32xf32>
    %26 = vector.extract_strided_slice %8 {offsets = [0, 2, 0, 0], sizes = [1, 1, 32, 32], strides = [1, 1, 1, 1]} : vector<3x3x32x32xf32> to vector<1x1x32x32xf32>
    %27 = vector.shape_cast %26 : vector<1x1x32x32xf32> to vector<32x32xf32>
    %cst_29 = arith.constant dense<0.000000e+00> : vector<256x32xf32>
    %28 = tpu.matmul %25, %27, %cst_29 {dimension_numbers = #tpu.dot_dimension_numbers<[1], [0], [0], [1], [0, 0, 1, 1], [], []>} : vector<256x32xf32>, vector<32x32xf32>, vector<256x32xf32> -> vector<256x32xf32>
    %29 = arith.addf %23, %28 : vector<256x32xf32>
    %c1_30 = arith.constant 1 : index
    %c7_31 = arith.constant 7 : index
    %c0_32 = arith.constant 0 : index
    %30 = vector.load %arg7[%c1_30, %c7_31, %c0_32] : memref<18x32x32xf32, #tpu.memory_space<vmem>>, vector<16x16x32xf32>
    %31 = vector.shape_cast %30 : vector<16x16x32xf32> to vector<256x32xf32>
    %32 = vector.extract_strided_slice %8 {offsets = [1, 0, 0, 0], sizes = [1, 1, 32, 32], strides = [1, 1, 1, 1]} : vector<3x3x32x32xf32> to vector<1x1x32x32xf32>
    %33 = vector.shape_cast %32 : vector<1x1x32x32xf32> to vector<32x32xf32>
    %cst_33 = arith.constant dense<0.000000e+00> : vector<256x32xf32>
    %34 = tpu.matmul %31, %33, %cst_33 {dimension_numbers = #tpu.dot_dimension_numbers<[1], [0], [0], [1], [0, 0, 1, 1], [], []>} : vector<256x32xf32>, vector<32x32xf32>, vector<256x32xf32> -> vector<256x32xf32>
    %35 = arith.addf %29, %34 : vector<256x32xf32>
    %c1_34 = arith.constant 1 : index
    %c8_35 = arith.constant 8 : index
    %c0_36 = arith.constant 0 : index
    %36 = vector.load %arg7[%c1_34, %c8_35, %c0_36] : memref<18x32x32xf32, #tpu.memory_space<vmem>>, vector<16x16x32xf32>
    %37 = vector.shape_cast %36 : vector<16x16x32xf32> to vector<256x32xf32>
    %38 = vector.extract_strided_slice %8 {offsets = [1, 1, 0, 0], sizes = [1, 1, 32, 32], strides = [1, 1, 1, 1]} : vector<3x3x32x32xf32> to vector<1x1x32x32xf32>
    %39 = vector.shape_cast %38 : vector<1x1x32x32xf32> to vector<32x32xf32>
    %cst_37 = arith.constant dense<0.000000e+00> : vector<256x32xf32>
    %40 = tpu.matmul %37, %39, %cst_37 {dimension_numbers = #tpu.dot_dimension_numbers<[1], [0], [0], [1], [0, 0, 1, 1], [], []>} : vector<256x32xf32>, vector<32x32xf32>, vector<256x32xf32> -> vector<256x32xf32>
    %41 = arith.addf %35, %40 : vector<256x32xf32>
    %c1_38 = arith.constant 1 : index
    %c9_39 = arith.constant 9 : index
    %c0_40 = arith.constant 0 : index
    %42 = vector.load %arg7[%c1_38, %c9_39, %c0_40] : memref<18x32x32xf32, #tpu.memory_space<vmem>>, vector<16x16x32xf32>
    %43 = vector.shape_cast %42 : vector<16x16x32xf32> to vector<256x32xf32>
    %44 = vector.extract_strided_slice %8 {offsets = [1, 2, 0, 0], sizes = [1, 1, 32, 32], strides = [1, 1, 1, 1]} : vector<3x3x32x32xf32> to vector<1x1x32x32xf32>
    %45 = vector.shape_cast %44 : vector<1x1x32x32xf32> to vector<32x32xf32>
    %cst_41 = arith.constant dense<0.000000e+00> : vector<256x32xf32>
    %46 = tpu.matmul %43, %45, %cst_41 {dimension_numbers = #tpu.dot_dimension_numbers<[1], [0], [0], [1], [0, 0, 1, 1], [], []>} : vector<256x32xf32>, vector<32x32xf32>, vector<256x32xf32> -> vector<256x32xf32>
    %47 = arith.addf %41, %46 : vector<256x32xf32>
    %c2 = arith.constant 2 : index
    %c7_42 = arith.constant 7 : index
    %c0_43 = arith.constant 0 : index
    %48 = vector.load %arg7[%c2, %c7_42, %c0_43] : memref<18x32x32xf32, #tpu.memory_space<vmem>>, vector<16x16x32xf32>
    %49 = vector.shape_cast %48 : vector<16x16x32xf32> to vector<256x32xf32>
    %50 = vector.extract_strided_slice %8 {offsets = [2, 0, 0, 0], sizes = [1, 1, 32, 32], strides = [1, 1, 1, 1]} : vector<3x3x32x32xf32> to vector<1x1x32x32xf32>
    %51 = vector.shape_cast %50 : vector<1x1x32x32xf32> to vector<32x32xf32>
    %cst_44 = arith.constant dense<0.000000e+00> : vector<256x32xf32>
    %52 = tpu.matmul %49, %51, %cst_44 {dimension_numbers = #tpu.dot_dimension_numbers<[1], [0], [0], [1], [0, 0, 1, 1], [], []>} : vector<256x32xf32>, vector<32x32xf32>, vector<256x32xf32> -> vector<256x32xf32>
    %53 = arith.addf %47, %52 : vector<256x32xf32>
    %c2_45 = arith.constant 2 : index
    %c8_46 = arith.constant 8 : index
    %c0_47 = arith.constant 0 : index
    %54 = vector.load %arg7[%c2_45, %c8_46, %c0_47] : memref<18x32x32xf32, #tpu.memory_space<vmem>>, vector<16x16x32xf32>
    %55 = vector.shape_cast %54 : vector<16x16x32xf32> to vector<256x32xf32>
    %56 = vector.extract_strided_slice %8 {offsets = [2, 1, 0, 0], sizes = [1, 1, 32, 32], strides = [1, 1, 1, 1]} : vector<3x3x32x32xf32> to vector<1x1x32x32xf32>
    %57 = vector.shape_cast %56 : vector<1x1x32x32xf32> to vector<32x32xf32>
    %cst_48 = arith.constant dense<0.000000e+00> : vector<256x32xf32>
    %58 = tpu.matmul %55, %57, %cst_48 {dimension_numbers = #tpu.dot_dimension_numbers<[1], [0], [0], [1], [0, 0, 1, 1], [], []>} : vector<256x32xf32>, vector<32x32xf32>, vector<256x32xf32> -> vector<256x32xf32>
    %59 = arith.addf %53, %58 : vector<256x32xf32>
    %c2_49 = arith.constant 2 : index
    %c9_50 = arith.constant 9 : index
    %c0_51 = arith.constant 0 : index
    %60 = vector.load %arg7[%c2_49, %c9_50, %c0_51] : memref<18x32x32xf32, #tpu.memory_space<vmem>>, vector<16x16x32xf32>
    %61 = vector.shape_cast %60 : vector<16x16x32xf32> to vector<256x32xf32>
    %62 = vector.extract_strided_slice %8 {offsets = [2, 2, 0, 0], sizes = [1, 1, 32, 32], strides = [1, 1, 1, 1]} : vector<3x3x32x32xf32> to vector<1x1x32x32xf32>
    %63 = vector.shape_cast %62 : vector<1x1x32x32xf32> to vector<32x32xf32>
    %cst_52 = arith.constant dense<0.000000e+00> : vector<256x32xf32>
    %64 = tpu.matmul %61, %63, %cst_52 {dimension_numbers = #tpu.dot_dimension_numbers<[1], [0], [0], [1], [0, 0, 1, 1], [], []>} : vector<256x32xf32>, vector<32x32xf32>, vector<256x32xf32> -> vector<256x32xf32>
    %65 = arith.addf %59, %64 : vector<256x32xf32>
    %c0_53 = arith.constant 0 : index
    %c0_54 = arith.constant 0 : index
    %66 = vector.load %arg3[%c0_53, %c0_54] : memref<1x32xf32, #tpu.memory_space<vmem>>, vector<1x32xf32>
    %67 = vector.broadcast %66 : vector<1x32xf32> to vector<256x32xf32>
    %68 = arith.addf %65, %67 : vector<256x32xf32>
    %cst_55 = arith.constant 0.000000e+00 : f32
    %69 = vector.broadcast %cst_55 : f32 to vector<256x32xf32>
    %70 = arith.maximumf %68, %69 : vector<256x32xf32>
    %c0_56 = arith.constant 0 : index
    %c0_57 = arith.constant 0 : index
    %c0_58 = arith.constant 0 : index
    %c0_59 = arith.constant 0 : index
    %71 = vector.load %arg4[%c0_56, %c0_57, %c0_58, %c0_59] : memref<3x3x32x32xf32, #tpu.memory_space<vmem>>, vector<3x3x32x32xf32>
    %72 = vector.shape_cast %70 : vector<256x32xf32> to vector<16x16x32xf32>
    %c1_60 = arith.constant 1 : index
    %c8_61 = arith.constant 8 : index
    %c0_62 = arith.constant 0 : index
    %73 = vector.load %arg7[%c1_60, %c8_61, %c0_62] : memref<18x32x32xf32, #tpu.memory_space<vmem>>, vector<16x16x32xf32>
    tpu.vector_store %arg7[%c1_60, %c8_61, %c0_62], %72 {strides = array<i32>} : memref<18x32x32xf32, #tpu.memory_space<vmem>>, vector<16x16x32xf32>,
    %cst_63 = arith.constant 0.000000e+00 : f32
    %74 = vector.broadcast %cst_63 : f32 to vector<256x32xf32>
    %c0_64 = arith.constant 0 : index
    %c7_65 = arith.constant 7 : index
    %c0_66 = arith.constant 0 : index
    %75 = vector.load %arg7[%c0_64, %c7_65, %c0_66] : memref<18x32x32xf32, #tpu.memory_space<vmem>>, vector<16x16x32xf32>
    %76 = vector.shape_cast %75 : vector<16x16x32xf32> to vector<256x32xf32>
    %77 = vector.extract_strided_slice %71 {offsets = [0, 0, 0, 0], sizes = [1, 1, 32, 32], strides = [1, 1, 1, 1]} : vector<3x3x32x32xf32> to vector<1x1x32x32xf32>
    %78 = vector.shape_cast %77 : vector<1x1x32x32xf32> to vector<32x32xf32>
    %cst_67 = arith.constant dense<0.000000e+00> : vector<256x32xf32>
    %79 = tpu.matmul %76, %78, %cst_67 {dimension_numbers = #tpu.dot_dimension_numbers<[1], [0], [0], [1], [0, 0, 1, 1], [], []>} : vector<256x32xf32>, vector<32x32xf32>, vector<256x32xf32> -> vector<256x32xf32>
    %80 = arith.addf %74, %79 : vector<256x32xf32>
    %c0_68 = arith.constant 0 : index
    %c8_69 = arith.constant 8 : index
    %c0_70 = arith.constant 0 : index
    %81 = vector.load %arg7[%c0_68, %c8_69, %c0_70] : memref<18x32x32xf32, #tpu.memory_space<vmem>>, vector<16x16x32xf32>
    %82 = vector.shape_cast %81 : vector<16x16x32xf32> to vector<256x32xf32>
    %83 = vector.extract_strided_slice %71 {offsets = [0, 1, 0, 0], sizes = [1, 1, 32, 32], strides = [1, 1, 1, 1]} : vector<3x3x32x32xf32> to vector<1x1x32x32xf32>
    %84 = vector.shape_cast %83 : vector<1x1x32x32xf32> to vector<32x32xf32>
    %cst_71 = arith.constant dense<0.000000e+00> : vector<256x32xf32>
    %85 = tpu.matmul %82, %84, %cst_71 {dimension_numbers = #tpu.dot_dimension_numbers<[1], [0], [0], [1], [0, 0, 1, 1], [], []>} : vector<256x32xf32>, vector<32x32xf32>, vector<256x32xf32> -> vector<256x32xf32>
    %86 = arith.addf %80, %85 : vector<256x32xf32>
    %c0_72 = arith.constant 0 : index
    %c9_73 = arith.constant 9 : index
    %c0_74 = arith.constant 0 : index
    %87 = vector.load %arg7[%c0_72, %c9_73, %c0_74] : memref<18x32x32xf32, #tpu.memory_space<vmem>>, vector<16x16x32xf32>
    %88 = vector.shape_cast %87 : vector<16x16x32xf32> to vector<256x32xf32>
    %89 = vector.extract_strided_slice %71 {offsets = [0, 2, 0, 0], sizes = [1, 1, 32, 32], strides = [1, 1, 1, 1]} : vector<3x3x32x32xf32> to vector<1x1x32x32xf32>
    %90 = vector.shape_cast %89 : vector<1x1x32x32xf32> to vector<32x32xf32>
    %cst_75 = arith.constant dense<0.000000e+00> : vector<256x32xf32>
    %91 = tpu.matmul %88, %90, %cst_75 {dimension_numbers = #tpu.dot_dimension_numbers<[1], [0], [0], [1], [0, 0, 1, 1], [], []>} : vector<256x32xf32>, vector<32x32xf32>, vector<256x32xf32> -> vector<256x32xf32>
    %92 = arith.addf %86, %91 : vector<256x32xf32>
    %c1_76 = arith.constant 1 : index
    %c7_77 = arith.constant 7 : index
    %c0_78 = arith.constant 0 : index
    %93 = vector.load %arg7[%c1_76, %c7_77, %c0_78] : memref<18x32x32xf32, #tpu.memory_space<vmem>>, vector<16x16x32xf32>
    %94 = vector.shape_cast %93 : vector<16x16x32xf32> to vector<256x32xf32>
    %95 = vector.extract_strided_slice %71 {offsets = [1, 0, 0, 0], sizes = [1, 1, 32, 32], strides = [1, 1, 1, 1]} : vector<3x3x32x32xf32> to vector<1x1x32x32xf32>
    %96 = vector.shape_cast %95 : vector<1x1x32x32xf32> to vector<32x32xf32>
    %cst_79 = arith.constant dense<0.000000e+00> : vector<256x32xf32>
    %97 = tpu.matmul %94, %96, %cst_79 {dimension_numbers = #tpu.dot_dimension_numbers<[1], [0], [0], [1], [0, 0, 1, 1], [], []>} : vector<256x32xf32>, vector<32x32xf32>, vector<256x32xf32> -> vector<256x32xf32>
    %98 = arith.addf %92, %97 : vector<256x32xf32>
    %c1_80 = arith.constant 1 : index
    %c8_81 = arith.constant 8 : index
    %c0_82 = arith.constant 0 : index
    %99 = vector.load %arg7[%c1_80, %c8_81, %c0_82] : memref<18x32x32xf32, #tpu.memory_space<vmem>>, vector<16x16x32xf32>
    %100 = vector.shape_cast %99 : vector<16x16x32xf32> to vector<256x32xf32>
    %101 = vector.extract_strided_slice %71 {offsets = [1, 1, 0, 0], sizes = [1, 1, 32, 32], strides = [1, 1, 1, 1]} : vector<3x3x32x32xf32> to vector<1x1x32x32xf32>
    %102 = vector.shape_cast %101 : vector<1x1x32x32xf32> to vector<32x32xf32>
    %cst_83 = arith.constant dense<0.000000e+00> : vector<256x32xf32>
    %103 = tpu.matmul %100, %102, %cst_83 {dimension_numbers = #tpu.dot_dimension_numbers<[1], [0], [0], [1], [0, 0, 1, 1], [], []>} : vector<256x32xf32>, vector<32x32xf32>, vector<256x32xf32> -> vector<256x32xf32>
    %104 = arith.addf %98, %103 : vector<256x32xf32>
    %c1_84 = arith.constant 1 : index
    %c9_85 = arith.constant 9 : index
    %c0_86 = arith.constant 0 : index
    %105 = vector.load %arg7[%c1_84, %c9_85, %c0_86] : memref<18x32x32xf32, #tpu.memory_space<vmem>>, vector<16x16x32xf32>
    %106 = vector.shape_cast %105 : vector<16x16x32xf32> to vector<256x32xf32>
    %107 = vector.extract_strided_slice %71 {offsets = [1, 2, 0, 0], sizes = [1, 1, 32, 32], strides = [1, 1, 1, 1]} : vector<3x3x32x32xf32> to vector<1x1x32x32xf32>
    %108 = vector.shape_cast %107 : vector<1x1x32x32xf32> to vector<32x32xf32>
    %cst_87 = arith.constant dense<0.000000e+00> : vector<256x32xf32>
    %109 = tpu.matmul %106, %108, %cst_87 {dimension_numbers = #tpu.dot_dimension_numbers<[1], [0], [0], [1], [0, 0, 1, 1], [], []>} : vector<256x32xf32>, vector<32x32xf32>, vector<256x32xf32> -> vector<256x32xf32>
    %110 = arith.addf %104, %109 : vector<256x32xf32>
    %c2_88 = arith.constant 2 : index
    %c7_89 = arith.constant 7 : index
    %c0_90 = arith.constant 0 : index
    %111 = vector.load %arg7[%c2_88, %c7_89, %c0_90] : memref<18x32x32xf32, #tpu.memory_space<vmem>>, vector<16x16x32xf32>
    %112 = vector.shape_cast %111 : vector<16x16x32xf32> to vector<256x32xf32>
    %113 = vector.extract_strided_slice %71 {offsets = [2, 0, 0, 0], sizes = [1, 1, 32, 32], strides = [1, 1, 1, 1]} : vector<3x3x32x32xf32> to vector<1x1x32x32xf32>
    %114 = vector.shape_cast %113 : vector<1x1x32x32xf32> to vector<32x32xf32>
    %cst_91 = arith.constant dense<0.000000e+00> : vector<256x32xf32>
    %115 = tpu.matmul %112, %114, %cst_91 {dimension_numbers = #tpu.dot_dimension_numbers<[1], [0], [0], [1], [0, 0, 1, 1], [], []>} : vector<256x32xf32>, vector<32x32xf32>, vector<256x32xf32> -> vector<256x32xf32>
    %116 = arith.addf %110, %115 : vector<256x32xf32>
    %c2_92 = arith.constant 2 : index
    %c8_93 = arith.constant 8 : index
    %c0_94 = arith.constant 0 : index
    %117 = vector.load %arg7[%c2_92, %c8_93, %c0_94] : memref<18x32x32xf32, #tpu.memory_space<vmem>>, vector<16x16x32xf32>
    %118 = vector.shape_cast %117 : vector<16x16x32xf32> to vector<256x32xf32>
    %119 = vector.extract_strided_slice %71 {offsets = [2, 1, 0, 0], sizes = [1, 1, 32, 32], strides = [1, 1, 1, 1]} : vector<3x3x32x32xf32> to vector<1x1x32x32xf32>
    %120 = vector.shape_cast %119 : vector<1x1x32x32xf32> to vector<32x32xf32>
    %cst_95 = arith.constant dense<0.000000e+00> : vector<256x32xf32>
    %121 = tpu.matmul %118, %120, %cst_95 {dimension_numbers = #tpu.dot_dimension_numbers<[1], [0], [0], [1], [0, 0, 1, 1], [], []>} : vector<256x32xf32>, vector<32x32xf32>, vector<256x32xf32> -> vector<256x32xf32>
    %122 = arith.addf %116, %121 : vector<256x32xf32>
    %c2_96 = arith.constant 2 : index
    %c9_97 = arith.constant 9 : index
    %c0_98 = arith.constant 0 : index
    %123 = vector.load %arg7[%c2_96, %c9_97, %c0_98] : memref<18x32x32xf32, #tpu.memory_space<vmem>>, vector<16x16x32xf32>
    %124 = vector.shape_cast %123 : vector<16x16x32xf32> to vector<256x32xf32>
    %125 = vector.extract_strided_slice %71 {offsets = [2, 2, 0, 0], sizes = [1, 1, 32, 32], strides = [1, 1, 1, 1]} : vector<3x3x32x32xf32> to vector<1x1x32x32xf32>
    %126 = vector.shape_cast %125 : vector<1x1x32x32xf32> to vector<32x32xf32>
    %cst_99 = arith.constant dense<0.000000e+00> : vector<256x32xf32>
    %127 = tpu.matmul %124, %126, %cst_99 {dimension_numbers = #tpu.dot_dimension_numbers<[1], [0], [0], [1], [0, 0, 1, 1], [], []>} : vector<256x32xf32>, vector<32x32xf32>, vector<256x32xf32> -> vector<256x32xf32>
    %128 = arith.addf %122, %127 : vector<256x32xf32>
    %c0_100 = arith.constant 0 : index
    %c0_101 = arith.constant 0 : index
    %129 = vector.load %arg5[%c0_100, %c0_101] : memref<1x32xf32, #tpu.memory_space<vmem>>, vector<1x32xf32>
    %130 = vector.broadcast %129 : vector<1x32xf32> to vector<256x32xf32>
    %131 = arith.addf %128, %130 : vector<256x32xf32>
    %c0_102 = arith.constant 0 : index
    %c0_103 = arith.constant 0 : index
    %c0_104 = arith.constant 0 : index
    %c0_105 = arith.constant 0 : index
    %132 = vector.load %arg1[%c0_102, %c0_103, %c0_104, %c0_105] : memref<1x16x16x32xf32, #tpu.memory_space<vmem>>, vector<1x16x16x32xf32>
    %133 = vector.shape_cast %132 : vector<1x16x16x32xf32> to vector<256x32xf32>
    %134 = arith.addf %131, %133 : vector<256x32xf32>
    %cst_106 = arith.constant 0.000000e+00 : f32
    %135 = vector.broadcast %cst_106 : f32 to vector<256x32xf32>
    %136 = arith.maximumf %134, %135 : vector<256x32xf32>
    %137 = vector.shape_cast %136 : vector<256x32xf32> to vector<1x16x16x32xf32>
    %c0_107 = arith.constant 0 : index
    %c0_108 = arith.constant 0 : index
    %c0_109 = arith.constant 0 : index
    %c0_110 = arith.constant 0 : index
    %138 = vector.load %arg6[%c0_107, %c0_108, %c0_109, %c0_110] : memref<1x16x16x32xf32, #tpu.memory_space<vmem>>, vector<1x16x16x32xf32>
    tpu.vector_store %arg6[%c0_107, %c0_108, %c0_109, %c0_110], %137 {strides = array<i32>} : memref<1x16x16x32xf32, #tpu.memory_space<vmem>>, vector<1x16x16x32xf32>,
    return
  }
  func.func @transform_0(%arg0: i32) -> (i32, i32, i32, i32) {
    %c0_i32 = arith.constant 0 : i32
    %c0_i32_0 = arith.constant 0 : i32
    %c0_i32_1 = arith.constant 0 : i32
    %c0_i32_2 = arith.constant 0 : i32
    return %arg0, %c0_i32, %c0_i32_0, %c0_i32_1 : i32, i32, i32, i32
  }
  func.func @transform_1(%arg0: i32) -> (i32, i32, i32, i32) {
    %c0_i32 = arith.constant 0 : i32
    %c0_i32_0 = arith.constant 0 : i32
    %c0_i32_1 = arith.constant 0 : i32
    %c0_i32_2 = arith.constant 0 : i32
    %c0_i32_3 = arith.constant 0 : i32
    return %c0_i32, %c0_i32_0, %c0_i32_1, %c0_i32_2 : i32, i32, i32, i32
  }
  func.func @transform_2(%arg0: i32) -> (i32, i32) {
    %c0_i32 = arith.constant 0 : i32
    %c0_i32_0 = arith.constant 0 : i32
    %c0_i32_1 = arith.constant 0 : i32
    return %c0_i32, %c0_i32_0 : i32, i32
  }
  func.func @transform_3(%arg0: i32) -> (i32, i32, i32, i32) {
    %c0_i32 = arith.constant 0 : i32
    %c0_i32_0 = arith.constant 0 : i32
    %c0_i32_1 = arith.constant 0 : i32
    %c0_i32_2 = arith.constant 0 : i32
    %c0_i32_3 = arith.constant 0 : i32
    return %c0_i32, %c0_i32_0, %c0_i32_1, %c0_i32_2 : i32, i32, i32, i32
  }
  func.func @transform_4(%arg0: i32) -> (i32, i32) {
    %c0_i32 = arith.constant 0 : i32
    %c0_i32_0 = arith.constant 0 : i32
    %c0_i32_1 = arith.constant 0 : i32
    return %c0_i32, %c0_i32_0 : i32, i32
  }
  func.func @transform_5(%arg0: i32) -> (i32, i32, i32, i32) {
    %c0_i32 = arith.constant 0 : i32
    %c0_i32_0 = arith.constant 0 : i32
    %c0_i32_1 = arith.constant 0 : i32
    %c0_i32_2 = arith.constant 0 : i32
    return %arg0, %c0_i32, %c0_i32_0, %c0_i32_1 : i32, i32, i32, i32
  }
}

</mosaic_0001>

<bundles_post_ra>
// kernel: tpu_custom_call.1
= control target key start
LH: loop header
LB: loop body
LE: loop exit
PB: predicated region body
PF: predicated region fallthrough
CT: control target
= control target key end

     0   :  { %10 = vsyncpa [#allocation4], 0  ;;  %s12857_s0 = inlined_call_operand.hbm [shape: f32[2,16,16,32], index: 0, kind: input, shape index: {}]   ;;  %s12858_s1 = inlined_call_operand.hbm [shape: f32[3,3,32,32], index: 1, kind: input, shape index: {}]   ;;  %s12859_s2 = inlined_call_operand.vmem [shape: f32[1,32], index: 2, kind: input, shape index: {}]   ;;  %s12860_s3 = inlined_call_operand.hbm [shape: f32[3,3,32,32], index: 3, kind: input, shape index: {}]   ;;  %s12861_s4 = inlined_call_operand.vmem [shape: f32[1,32], index: 4, kind: input, shape index: {}]   ;;  %s12862_s5 = inlined_call_operand.hbm [shape: f32[2,16,16,32], index: 5, kind: output, shape index: {}]  }
   0x1   :  { %12 = vsyncpa [#allocation4 + $0x1], 0 }
   0x2   :  { %13 = vsyncpa [#allocation7], 0 }
   0x3   :  { %14 = vsyncpa [#allocation5], 0 }
   0x4   :  { %16 = vsyncpa [#allocation5 + $0x1], 0  ;;  %s10813_s18 = smov 0   ;;  %s10815_s19 = smov 0  }
   0x5   :  { %s10817_s20 = smov 0   ;;  %s10819_s21 = smov 0  }
   0x6 LB: > { %s10834_s22 = sadd.s32 4294967295, %s10772_s21   ;;  %s7634_s23 = sadd.s32 4294967294, %s10772_s21   ;;  %s10772_s21 = sphi %s10819_s21, %s13161_s21   ;;  %s10768_s20 = sphi %s10817_s20, %s13160_s20   ;;  %s10764_s19 = sphi %s10815_s19, %s13159_s19   ;;  %s10760_s18 = sphi %s10813_s18, %s13158_s18  }
   0x7   : > { %p42_p0 = scmp.ne.s32.totalorder %s10764_s19, %s10760_s18  ;;  %p12863_p1 = scmp.eq.s32.totalorder %s10834_s22, 0 }
   0x8   : > { %p156_p3 = scmp.eq.s32.totalorder %s7634_s23, 1  ;;  %p7635_p5 = scmp.ge.s32.totalorder %s10772_s21, 1 }
   0x9   : > { %p10843_p4 = por %p12863_p1, %p42_p0  ;;  %p163_p7 = scmp.lt.s32.totalorder %s10772_s21, 3 }
   0xa   : > { %p10848_p6 = por %p156_p3, %p42_p0  ;;  %s10774_s27 = smov [#allocation6]  }
   0xb   : > { %s12993_s24 = scalar_select %p10843_p4, 1, 0 }
   0xc   : > { %s12994_s25 = scalar_select %p10848_p6, 1, 0 }
   0xd   : > { %p10853_p8 = pnand %p7635_p5, %p163_p7  ;;  %s175_s28 = sshll.u32 %s10774_s27, 4  ;;  %s10857_s28 = int_to_ptr.vmem [resolvable:$true] %s175_s28 }
   0xe   : > { %s10775_s30 = smov [#allocation8]   ;;  %s10616_s9 = scalar_lea.hbm %s12858_s1, 4608 }
   0xf   : > { %p10556_p9 = pneg %p10853_p8  ;;  %s191_s6 = sshll.u32 %s10775_s30, 4  ;;  %s10868_s6 = int_to_ptr.vmem [resolvable:$true] %s191_s6 }
  0x10   : > { %p10617_p12 = scmp.ne.s32.totalorder %s12858_s1, %s10616_s9  ;;  %p10623_p5 = scmp.lt.u32.totalorder %s10616_s9, %s12858_s1 }
  0x11   : > { %p10864_p11 = pnand %p10556_p9, %p12863_p1 }
  0x13   : > { %p10618_p13 = pneg %p10864_p11 }
  0x15   : > { %p10619_p0 = pnand %p10618_p13, %p10617_p12 }
  0x17   : > { %p10620_p3 = pneg %p10619_p0 }
  0x19   : > { %p10625_p7 = pnand %p10623_p5, %p10620_p3 }
  0x1b   : > { %10628 = shalt.err (!%p10625_p7)
}
  0x1c   : > { %s10629_s14 = scalar_lea.vmem %s10857_s28, 4608  ;;  %p10637_p2 = scmp.lt.s32.totalorder %s10857_s28, %s10857_s28 }
  0x1d   : > { %p10630_p9 = scmp.ne.s32.totalorder %s10857_s28, %s10629_s14  ;;  %p10638_p12 = scmp.lt.s32.totalorder %s10629_s14, %s10629_s14 }
  0x1f   : > { %p10632_p10 = pnand %p10630_p9, %p10618_p13  ;;  %p10639_p0 = por %p10638_p12, %p10637_p2 }
  0x21   : > { %p10633_p1 = pneg %p10632_p10 }
  0x23   : > { %p10640_p6 = pnand %p10639_p0, %p10633_p1 }
  0x25   : > { %10643 = shalt.err (!%p10640_p6)
}
  0x26   : > { %s10776_s15 = smov 128   ;;  %s10777_s16 = smov 8  }
  0x27   : > { %10559 = dma.hbm_to_vmem [thread:$0]  (!%p10864_p11), %s12858_s1, 4608, %s10857_s28, [#allocation7], %s10776_s15, %s10776_s15, %s10777_s16  }
  0x28   : > { %s10644_s7 = scalar_lea.hbm %s12860_s3, 4608 }
  0x29   : > { %p10645_p1 = scmp.ne.s32.totalorder %s12860_s3, %s10644_s7  ;;  %p10651_p10 = scmp.lt.u32.totalorder %s10644_s7, %s12860_s3 }
  0x2b   : > { %p10647_p2 = pnand %p10645_p1, %p10618_p13 }
  0x2d   : > { %p10648_p6 = pneg %p10647_p2 }
  0x2f   : > { %p10653_p3 = pnand %p10651_p10, %p10648_p6 }
  0x31   : > { %10656 = shalt.err (!%p10653_p3)
}
  0x32   : > { %s10657_s28 = scalar_lea.vmem %s10868_s6, 4608  ;;  %p10665_p12 = scmp.lt.s32.totalorder %s10868_s6, %s10868_s6 }
  0x33   : > { %p10658_p5 = scmp.ne.s32.totalorder %s10868_s6, %s10657_s28  ;;  %p10666_p0 = scmp.lt.s32.totalorder %s10657_s28, %s10657_s28 }
  0x35   : > { %p10660_p7 = pnand %p10658_p5, %p10618_p13  ;;  %p10667_p1 = por %p10666_p0, %p10665_p12 }
  0x37   : > { %p10661_p9 = pneg %p10660_p7 }
  0x39   : > { %p10668_p2 = pnand %p10667_p1, %p10661_p9 }
  0x3b   : > { %10671 = shalt.err (!%p10668_p2)
}
  0x3c   : > { %10562 = dma.hbm_to_vmem [thread:$0]  (!%p10864_p11), %s12860_s3, 4608, %s10868_s6, [#allocation7], %s10776_s15, %s10776_s15, %s10777_s16  }
  0x3d   : > { %s10929_s29 = sadd.s32 1, %s10772_s21   ;;  %s29_s14 = sadd.s32 1, %s10768_s20 }
  0x3e   : > { %s26_s17 = ssub.s32 %s10772_s21, %s10929_s29  ;;  %p36_p13 = scmp.ne.s32.totalorder %s10768_s20, %s10764_s19 }
  0x3f   : > { %p27_p6 = scmp.eq.s32.totalorder %s26_s17, 0  ;;  %p37_p10 = scmp.eq.s32.totalorder %s10772_s21, 0 }
  0x40   : > { %p12997_p3 = scmp.eq.s32.totalorder %s10834_s22, 1  ;;  %p10573_p7 = scmp.lt.s32.totalorder %s10772_s21, 2 }
  0x41   : > { %s10945_s27 = scalar_select %p27_p6, %s10768_s20, %s29_s14  }
  0x42   : > { %p10939_p5 = por %p12997_p3, %p36_p13  ;;  %p38_p9 = por %p37_p10, %p36_p13 }
  0x43   : > { %s208_s30 = sand.u32 1, %s10768_s20   ;;  %s8230_s6 = sshll.u32 %s10772_s21, 12 }
  0x44   : > { %s12998_s23 = scalar_select %p10939_p5, 1, 0 }
  0x45   : > { %s7639_s7 = sshll.u32 %s208_s30, 8  ;;  %s10952_s10 = scalar_lea.hbm %s12857_s0, %s8230_s6 }
  0x46   : > { %s212_s11 = scalar_lea.vmem [#allocation3], %s7639_s7  ;;  %p10956_p11 = pnand %p10573_p7, %p38_p9 }
  0x47   : > { %s219_s28 = sshll.u32 %s212_s11, 4  ;;  %s10960_s13 = scalar_lea.sflag [#allocation4], %s208_s30  ;;  %s10954_s28 = int_to_ptr.vmem [resolvable:$true] %s219_s28 }
  0x48   : > { %s10672_s14 = scalar_lea.hbm %s10952_s10, 4096  ;;  %p10674_p0 = pneg %p10956_p11 }
  0x49   : > { %p10673_p12 = scmp.ne.s32.totalorder %s10952_s10, %s10672_s14  ;;  %s10677_s6 = scalar_lea.hbm %s12857_s0, 8192 }
  0x4a   : > { %p10678_p13 = scmp.lt.u32.totalorder %s10952_s10, %s12857_s0  ;;  %p10679_p6 = scmp.lt.u32.totalorder %s10677_s6, %s10672_s14 }
  0x4b   : > { %p10675_p1 = pnand %p10674_p0, %p10673_p12  ;;  %p10681_p3 = scmp.lt.u32.totalorder %s10672_s14, %s10952_s10 }
  0x4c   : > { %p10680_p10 = por %p10679_p6, %p10678_p13 }
  0x4d   : > { %p10676_p2 = pneg %p10675_p1 }
  0x4e   : > { %p10682_p7 = por %p10681_p3, %p10680_p10 }
  0x50   : > { %p10683_p9 = pnand %p10682_p7, %p10676_p2 }
  0x52   : > { %10686 = shalt.err (!%p10683_p9)
}
  0x53   : > { %s10687_s30 = scalar_lea.vmem %s10954_s28, 4096  ;;  %s10778_s11 = smov [#allocation3]  }
  0x54   : > { %p10688_p12 = scmp.ne.s32.totalorder %s10954_s28, %s10687_s30  ;;  %s10692_s17 = sshll.u32 %s10778_s11, 4  ;;  %s10693_s17 = int_to_ptr.vmem [resolvable:$false] %s10692_s17 }
  0x55   : > { %s10694_s7 = scalar_lea.vmem %s10693_s17, 8192  ;;  %p10695_p4 = scmp.lt.s32.totalorder %s10954_s28, %s10693_s17 }
  0x56   : > { %p10690_p1 = pnand %p10688_p12, %p10674_p0  ;;  %p10696_p13 = scmp.lt.s32.totalorder %s10694_s7, %s10687_s30 }
  0x58   : > { %p10691_p5 = pneg %p10690_p1  ;;  %p10697_p6 = por %p10696_p13, %p10695_p4 }
  0x5a   : > { %p10698_p10 = pnand %p10697_p6, %p10691_p5 }
  0x5c   : > { %10701 = shalt.err (!%p10698_p10)
}
  0x5d   : > { %10566 = dma.hbm_to_vmem [thread:$0]  (!%p10956_p11), %s10952_s10, 4096, %s10954_s28, %s10960_s13, %s10776_s15, %s10776_s15, %s10777_s16  }
  0x5e   : > { %231 = sbr.rel (%p10853_p8) target bundleno = 1676 (0x68c), region = 40 }
  0x65   : > { %s10994_s14 = sand.u32 1, %s10764_s19   ;;  %p13000_p4 = scmp.ne.s32.totalorder %s12993_s24, 0 }
  0x66   : > { %s7643_s6 = sshll.u32 %s10994_s14, 8  ;;  %s234_s8 = scalar_lea.sflag [#allocation4], %s10994_s14 }
  0x67   : > { %s11000_s12 = scalar_lea.vmem [#allocation3], %s7643_s6 }
  0x68   : > { %10747 = dma.done.wait (%p13000_p4), %s234_s8, 4096  }
  0x69   : > { %10749 = vsyncadd (%p13000_p4), %s234_s8, 4294963200  ;;  %p13001_p5 = scmp.eq.s32.totalorder %s10834_s22, 0 }
  0x6b   : > { %10751 = dma.done.wait (%p13001_p5), [#allocation7], 9216   ;;  %p13002_p8 = pmov %p13001_p5 }
  0x6c   : > { %vm272_vm0 = vcmask 261120   ;;  %v10779_v0 = vmov 0.0   ;;  %v354_v1 = vld [vmem:[#allocation6 + $0x20] sm:$0xff]  ;;  %v355_v2 = vld [vmem:[#allocation6 + $0x28] sm:$0xff]  ;;  %v356_v3 = vld [vmem:[#allocation6 + $0x30] sm:$0xff]  ;;  %s12684_s10 = scalar_lea.vmem [#allocation9], %s7643_s6 }
  0x6d   : > { %10753 = vsyncadd (%p13002_p8), [#allocation7], 4294958080  ;;  %274 = vst.msk [vmem:[#allocation2 + $0x8] sm:$0xff] %vm272_vm0, %v10779_v0  ;;  %v9888_v4 = vpack.c.bf16 %v355_v2, %v354_v1  ;;  %v357_v5 = vld [vmem:[#allocation6 + $0x38] sm:$0xff]  ;;  %v350_v8 = vld [vmem:[#allocation6] sm:$0xff]  ;;  %s8231_s28 = sshll.u32 %s10834_s22, 12 }
  0x6e   : > { %273 = vst.msk [vmem:[#allocation2] sm:$0xff] %vm272_vm0, %v10779_v0  ;;  %275 = vst.msk [vmem:[#allocation2 + $0x10] sm:$0xff] %vm272_vm0, %v10779_v0  ;;  %v9892_v7 = vpack.c.bf16 %v357_v5, %v356_v3  ;;  %v351_v9 = vld [vmem:[#allocation6 + $0x8] sm:$0xff]  ;;  %v318_v10 = vld [vmem:[%s11000_s12] sm:$0xff]  ;;  %s7542_s13 = sshll.u32 %s12684_s10, 4  ;;  %s12807_s11 = scalar_lea.hbm %s12862_s5, %s8231_s28  ;;  %s12809_s13 = int_to_ptr.vmem [resolvable:$true] %s7542_s13 }
  0x6f   : > { %276 = vst.msk [vmem:[#allocation2 + $0x18] sm:$0xff] %vm272_vm0, %v10779_v0  ;;  %278 = vst.msk [vmem:[#allocation2 + $0x220] sm:$0xff] %vm272_vm0, %v10779_v0  ;;  %9889 = vmatprep.subr.bf16.mxu0 %v9888_v4  ;;  %v319_v11 = vld [vmem:[%s11000_s12 + $0x8] sm:$0xff]  ;;  %v320_v12 = vld [vmem:[%s11000_s12 + $0x10] sm:$0xff]  ;;  %v9896_v17 = vpack.c.bf16 %v351_v9, %v350_v8  ;;  %s7529_s22 = scalar_lea.sflag [#allocation5], %s10994_s14  ;;  %s10702_s17 = scalar_lea.vmem %s12809_s13, 4096 }
  0x70   : > { %279 = vst.msk [vmem:[#allocation2 + $0x228] sm:$0xff] %vm272_vm0, %v10779_v0  ;;  %280 = vst.msk [vmem:[#allocation2 + $0x230] sm:$0xff] %vm272_vm0, %v10779_v0  ;;  %v321_v13 = vld [vmem:[%s11000_s12 + $0x18] sm:$0xff]  ;;  %9891 = vmatpush3.bf16.msra.mxu0 %v9888_v4  ;;  %v322_v14 = vld [vmem:[%s11000_s12 + $0x20] sm:$0xff]  ;;  %p10703_p11 = scmp.ne.s32.totalorder %s12809_s13, %s10702_s17  ;;  %p13155_p0 = scmp.ne.s32.totalorder %s12998_s23, 0 }
  0x71   : > { %281 = vst.msk [vmem:[#allocation2 + $0x238] sm:$0xff] %vm272_vm0, %v10779_v0  ;;  %283 = vst.msk [vmem:[#allocation2 + $0x20] sm:$0xff] %vm272_vm0, %v10779_v0  ;;  %v323_v15 = vld [vmem:[%s11000_s12 + $0x28] sm:$0xff]  ;;  %v324_v16 = vld [vmem:[%s11000_s12 + $0x30] sm:$0xff]  ;;  %9893 = vmatprep.subr.bf16.mxu0 %v9892_v7  ;;  %s10780_s7 = smov [#allocation9]  }
  0x72   : > { %284 = vst.msk [vmem:[#allocation2 + $0x40] sm:$0xff] %vm272_vm0, %v10779_v0  ;;  %285 = vst.msk [vmem:[#allocation2 + $0x60] sm:$0xff] %vm272_vm0, %v10779_v0  ;;  %v325_v18 = vld [vmem:[%s11000_s12 + $0x38] sm:$0xff]  ;;  %v326_v19 = vld [vmem:[%s11000_s12 + $0x40] sm:$0xff]  ;;  %p10704_p2 = pnand %p10703_p11, %p13155_p0  ;;  %s10706_s6 = sshll.u32 %s10780_s7, 4  ;;  %s10707_s6 = int_to_ptr.vmem [resolvable:$false] %s10706_s6 }
  0x73   : > { %286 = vst.msk [vmem:[#allocation2 + $0x80] sm:$0xff] %vm272_vm0, %v10779_v0  ;;  %287 = vst.msk [vmem:[#allocation2 + $0xa0] sm:$0xff] %vm272_vm0, %v10779_v0  ;;  %v327_v20 = vld [vmem:[%s11000_s12 + $0x48] sm:$0xff]  ;;  %v328_v22 = vld [vmem:[%s11000_s12 + $0x50] sm:$0xff]  ;;  %s10708_s8 = scalar_lea.vmem %s10707_s6, 8192  ;;  %p10709_p7 = scmp.lt.s32.totalorder %s12809_s13, %s10707_s6 }
  0x74   : > { %288 = vst.msk [vmem:[#allocation2 + $0xc0] sm:$0xff] %vm272_vm0, %v10779_v0  ;;  %289 = vst.msk [vmem:[#allocation2 + $0xe0] sm:$0xff] %vm272_vm0, %v10779_v0  ;;  %v451_v6 = vld [vmem:[#allocation2 + $0x8] sm:$0xff]  ;;  %v329_v23 = vld [vmem:[%s11000_s12 + $0x58] sm:$0xff]  ;;  %9895 = vmatpush3.bf16.msra.mxu0 %v9892_v7  ;;  %p10705_p3 = pneg %p10704_p2  ;;  %p10710_p9 = scmp.lt.s32.totalorder %s10708_s8, %s10702_s17 }
  0x75   : > { %290 = vst.msk [vmem:[#allocation2 + $0x100] sm:$0xff] %vm272_vm0, %v10779_v0  ;;  %291 = vst.msk [vmem:[#allocation2 + $0x120] sm:$0xff] %vm272_vm0, %v10779_v0  ;;  %8888 = vmatprep.mubr.msk.f32.mxu0 %vm272_vm0, %v451_v6  ;;  %v452_v21 = vld [vmem:[#allocation2 + $0x10] sm:$0xff]  ;;  %v330_v24 = vld [vmem:[%s11000_s12 + $0x60] sm:$0xff]  ;;  %9897 = vmatprep.subr.bf16.mxu0 %v9896_v17 }
  0x76   : > { %292 = vst.msk [vmem:[#allocation2 + $0x140] sm:$0xff] %vm272_vm0, %v10779_v0  ;;  %293 = vst.msk [vmem:[#allocation2 + $0x160] sm:$0xff] %vm272_vm0, %v10779_v0  ;;  %v331_v25 = vld [vmem:[%s11000_s12 + $0x68] sm:$0xff]  ;;  %v332_v26 = vld [vmem:[%s11000_s12 + $0x70] sm:$0xff]  ;;  %p10711_p12 = por %p10710_p9, %p10709_p7 }
  0x77   : > { %294 = vst.msk [vmem:[#allocation2 + $0x180] sm:$0xff] %vm272_vm0, %v10779_v0  ;;  %295 = vst.msk [vmem:[#allocation2 + $0x1a0] sm:$0xff] %vm272_vm0, %v10779_v0  ;;  %v333_v27 = vld [vmem:[%s11000_s12 + $0x78] sm:$0xff]  ;;  %v352_v28 = vld [vmem:[#allocation6 + $0x10] sm:$0xff]  ;;  %8889 = vmatmul.mubr.msk.f32.vlgmr.msra.gmra.mrb[0].mxu0 %vm272_vm0, %v452_v21 }
  0x78   : > { %296 = vst.msk [vmem:[#allocation2 + $0x1c0] sm:$0xff] %vm272_vm0, %v10779_v0  ;;  %297 = vst.msk [vmem:[#allocation2 + $0x1e0] sm:$0xff] %vm272_vm0, %v10779_v0  ;;  %v353_v29 = vld [vmem:[#allocation6 + $0x18] sm:$0xff]  ;;  %v334_v30 = vld [vmem:[%s11000_s12 + $0x80] sm:$0xff]  ;;  %9899 = vmatpush3.bf16.msra.mxu0 %v9896_v17  ;;  %p10712_p1 = pnand %p10711_p12, %p10705_p3 }
  0x79   : > { %298 = vst.msk [vmem:[#allocation2 + $0x200] sm:$0xff] %vm272_vm0, %v10779_v0  ;;  %301 = vst.msk [vmem:[#allocation2 + $0x38] sm:$0xff] %vm272_vm0, %v10779_v0  ;;  %v9900_v31 = vpack.c.bf16 %v353_v29, %v352_v28  ;;  %v335_v32 = vld [vmem:[%s11000_s12 + $0x88] sm:$0xff]  ;;  %v336_v33 = vld [vmem:[%s11000_s12 + $0x90] sm:$0xff] }
  0x7a   : > { %302 = vst.msk [vmem:[#allocation2 + $0x58] sm:$0xff] %vm272_vm0, %v10779_v0  ;;  %303 = vst.msk [vmem:[#allocation2 + $0x78] sm:$0xff] %vm272_vm0, %v10779_v0  ;;  %v337_v34 = vld [vmem:[%s11000_s12 + $0x98] sm:$0xff]  ;;  %v338_v36 = vld [vmem:[%s11000_s12 + $0xa0] sm:$0xff] }
  0x7b   : > { %304 = vst.msk [vmem:[#allocation2 + $0x98] sm:$0xff] %vm272_vm0, %v10779_v0  ;;  %305 = vst.msk [vmem:[#allocation2 + $0xb8] sm:$0xff] %vm272_vm0, %v10779_v0  ;;  %v339_v37 = vld [vmem:[%s11000_s12 + $0xa8] sm:$0xff]  ;;  %9901 = vmatprep.subr.bf16.mxu0 %v9900_v31  ;;  %v340_v41 = vld [vmem:[%s11000_s12 + $0xb0] sm:$0xff] }
  0x7c   : > { %306 = vst.msk [vmem:[#allocation2 + $0xd8] sm:$0xff] %vm272_vm0, %v10779_v0  ;;  %307 = vst.msk [vmem:[#allocation2 + $0xf8] sm:$0xff] %vm272_vm0, %v10779_v0  ;;  %9903 = vmatpush3.bf16.msra.mxu0 %v9900_v31  ;;  %v341_v42 = vld [vmem:[%s11000_s12 + $0xb8] sm:$0xff]  ;;  %v342_v44 = vld [vmem:[%s11000_s12 + $0xc0] sm:$0xff] }
  0x7d   : > { %308 = vst.msk [vmem:[#allocation2 + $0x118] sm:$0xff] %vm272_vm0, %v10779_v0  ;;  %309 = vst.msk [vmem:[#allocation2 + $0x138] sm:$0xff] %vm272_vm0, %v10779_v0  ;;  %v343_v45 = vld [vmem:[%s11000_s12 + $0xc8] sm:$0xff]  ;;  %v344_v46 = vld [vmem:[%s11000_s12 + $0xd0] sm:$0xff] }
  0x7e   : > { %310 = vst.msk [vmem:[#allocation2 + $0x158] sm:$0xff] %vm272_vm0, %v10779_v0  ;;  %311 = vst.msk [vmem:[#allocation2 + $0x178] sm:$0xff] %vm272_vm0, %v10779_v0  ;;  %v345_v47 = vld [vmem:[%s11000_s12 + $0xd8] sm:$0xff]  ;;  %v346_v49 = vld [vmem:[%s11000_s12 + $0xe0] sm:$0xff] }
  0x7f   : > { %312 = vst.msk [vmem:[#allocation2 + $0x198] sm:$0xff] %vm272_vm0, %v10779_v0  ;;  %313 = vst.msk [vmem:[#allocation2 + $0x1b8] sm:$0xff] %vm272_vm0, %v10779_v0  ;;  %v347_v50 = vld [vmem:[%s11000_s12 + $0xe8] sm:$0xff]  ;;  %v358_v52 = vld [vmem:[#allocation6 + $0x40] sm:$0xff] }
  0x80   : > { %314 = vst.msk [vmem:[#allocation2 + $0x1d8] sm:$0xff] %vm272_vm0, %v10779_v0  ;;  %315 = vst.msk [vmem:[#allocation2 + $0x1f8] sm:$0xff] %vm272_vm0, %v10779_v0  ;;  %v359_v53 = vld [vmem:[#allocation6 + $0x48] sm:$0xff] }
  0x81   : > { %316 = vst.msk [vmem:[#allocation2 + $0x218] sm:$0xff] %vm272_vm0, %v10779_v0  ;;  %282 = vst.msk [vmem:[#allocation2] sm:$0xff] %vm272_vm0, %v10779_v0  ;;  %v9904_v54 = vpack.c.bf16 %v359_v53, %v358_v52  ;;  %v420_v17 = vld [vmem:[#allocation2 + $0xf] sm:$0xff] }
  0x82   : > { %299 = vst.msk [vmem:[#allocation2 + $0x220] sm:$0xff] %vm272_vm0, %v10779_v0  ;;  %300 = vst.msk [vmem:[#allocation2 + $0x18] sm:$0xff] %vm272_vm0, %v10779_v0  ;;  %v363_v21 = vld [vmem:[#allocation6 + $0x68] sm:$0xff] }
  0x83   : > { %317 = vst.msk [vmem:[#allocation2 + $0x238] sm:$0xff] %vm272_vm0, %v10779_v0  ;;  %387 = vst.msk [vmem:[#allocation2 + $0x28] sm:$0xff] %vm272_vm0, %v318_v10  ;;  %9905 = vmatprep.subr.bf16.mxu0 %v9904_v54 }
  0x84   : > { %388 = vst.msk [vmem:[#allocation2 + $0x30] sm:$0xff] %vm272_vm0, %v319_v11  ;;  %389 = vst.msk [vmem:[#allocation2 + $0x48] sm:$0xff] %vm272_vm0, %v320_v12 }
  0x85   : > { %390 = vst.msk [vmem:[#allocation2 + $0x50] sm:$0xff] %vm272_vm0, %v321_v13  ;;  %391 = vst.msk [vmem:[#allocation2 + $0x68] sm:$0xff] %vm272_vm0, %v322_v14 }
  0x86   : > { %392 = vst.msk [vmem:[#allocation2 + $0x70] sm:$0xff] %vm272_vm0, %v323_v15  ;;  %393 = vst.msk [vmem:[#allocation2 + $0x88] sm:$0xff] %vm272_vm0, %v324_v16  ;;  %v360_v15 = vld [vmem:[#allocation6 + $0x50] sm:$0xff]  ;;  %v361_v16 = vld [vmem:[#allocation6 + $0x58] sm:$0xff] }
  0x87   : > { %394 = vst.msk [vmem:[#allocation2 + $0x90] sm:$0xff] %vm272_vm0, %v325_v18  ;;  %395 = vst.msk [vmem:[#allocation2 + $0xa8] sm:$0xff] %vm272_vm0, %v326_v19  ;;  %v9908_v19 = vpack.c.bf16 %v361_v16, %v360_v15  ;;  %v348_v15 = vld [vmem:[%s11000_s12 + $0xf0] sm:$0xff]  ;;  %v349_v16 = vld [vmem:[%s11000_s12 + $0xf8] sm:$0xff] }
  0x88   : > { %396 = vst.msk [vmem:[#allocation2 + $0xb0] sm:$0xff] %vm272_vm0, %v327_v20  ;;  %397 = vst.msk [vmem:[#allocation2 + $0xc8] sm:$0xff] %vm272_vm0, %v328_v22  ;;  %v419_v14 = vld [vmem:[#allocation2 + $0x7] sm:$0xff] }
  0x89   : > { %398 = vst.msk [vmem:[#allocation2 + $0xd0] sm:$0xff] %vm272_vm0, %v329_v23  ;;  %399 = vst.msk [vmem:[#allocation2 + $0xe8] sm:$0xff] %vm272_vm0, %v330_v24  ;;  %v362_v20 = vld [vmem:[#allocation6 + $0x60] sm:$0xff] }
  0x8a   : > { %400 = vst.msk [vmem:[#allocation2 + $0xf0] sm:$0xff] %vm272_vm0, %v331_v25  ;;  %401 = vst.msk [vmem:[#allocation2 + $0x108] sm:$0xff] %vm272_vm0, %v332_v26  ;;  %v11092_v35 = vld [vmem:[#allocation2 + $0x28] sm:$0xff]  ;;  %v11246_v24 = vpack.c.bf16 %v363_v21, %v362_v20 }
  0x8b   : > { %402 = vst.msk [vmem:[#allocation2 + $0x110] sm:$0xff] %vm272_vm0, %v333_v27  ;;  %403 = vst.msk [vmem:[#allocation2 + $0x128] sm:$0xff] %vm272_vm0, %v334_v30  ;;  %8891 = vmatprep.mubr.msk.f32.mxu0 %vm272_vm0, %v11092_v35  ;;  %v11104_v38 = vld [vmem:[#allocation2 + $0x30] sm:$0xff]  ;;  %v11106_v39 = vld [vmem:[#allocation2 + $0x48] sm:$0xff] }
  0x8c   : > { %404 = vst.msk [vmem:[#allocation2 + $0x130] sm:$0xff] %vm272_vm0, %v335_v32  ;;  %405 = vst.msk [vmem:[#allocation2 + $0x148] sm:$0xff] %vm272_vm0, %v336_v33  ;;  %8892 = vmatmul.mubr.msk.f32.gmra.mrb[2].mxu0 %vm272_vm0, %v11104_v38  ;;  %v11112_v40 = vld [vmem:[#allocation2 + $0x50] sm:$0xff]  ;;  %v11116_v43 = vld [vmem:[#allocation2 + $0x68] sm:$0xff] }
  0x8d   : > { %406 = vst.msk [vmem:[#allocation2 + $0x150] sm:$0xff] %vm272_vm0, %v337_v34  ;;  %407 = vst.msk [vmem:[#allocation2 + $0x168] sm:$0xff] %vm272_vm0, %v338_v36  ;;  %8894 = vmatprep.mubr.msk.f32.mxu0 %vm272_vm0, %v11106_v39  ;;  %v11129_v48 = vld [vmem:[#allocation2 + $0x70] sm:$0xff]  ;;  %v11136_v51 = vld [vmem:[#allocation2 + $0x88] sm:$0xff] }
  0x8e   : > { %408 = vst.msk [vmem:[#allocation2 + $0x170] sm:$0xff] %vm272_vm0, %v339_v37  ;;  %409 = vst.msk [vmem:[#allocation2 + $0x188] sm:$0xff] %vm272_vm0, %v340_v41  ;;  %v11144_v55 = vld [vmem:[#allocation2 + $0x90] sm:$0xff]  ;;  %v11146_v56 = vld [vmem:[#allocation2 + $0xa8] sm:$0xff] }
  0x8f   : > { %410 = vst.msk [vmem:[#allocation2 + $0x190] sm:$0xff] %vm272_vm0, %v341_v42  ;;  %411 = vst.msk [vmem:[#allocation2 + $0x1a8] sm:$0xff] %vm272_vm0, %v342_v44  ;;  %v11152_v57 = vld [vmem:[#allocation2 + $0xb0] sm:$0xff]  ;;  %v11154_v58 = vld [vmem:[#allocation2 + $0xc8] sm:$0xff] }
  0x90   : > { %8895 = vmatmul.mubr.msk.f32.gmra.mrb[4].mxu0 %vm272_vm0, %v11112_v40  ;;  %412 = vst.msk [vmem:[#allocation2 + $0x1b0] sm:$0xff] %vm272_vm0, %v343_v45  ;;  %413 = vst.msk [vmem:[#allocation2 + $0x1c8] sm:$0xff] %vm272_vm0, %v344_v46  ;;  %v11160_v59 = vld [vmem:[#allocation2 + $0xd0] sm:$0xff]  ;;  %v11162_v60 = vld [vmem:[#allocation2 + $0xe8] sm:$0xff] }
  0x91   : > { %8897 = vmatprep.mubr.msk.f32.mxu0 %vm272_vm0, %v11116_v43  ;;  %414 = vst.msk [vmem:[#allocation2 + $0x1d0] sm:$0xff] %vm272_vm0, %v345_v47  ;;  %415 = vst.msk [vmem:[#allocation2 + $0x1e8] sm:$0xff] %vm272_vm0, %v346_v49  ;;  %v11168_v61 = vld [vmem:[#allocation2 + $0xf0] sm:$0xff]  ;;  %v11170_v62 = vld [vmem:[#allocation2 + $0x108] sm:$0xff] }
  0x92   : > { %416 = vst.msk [vmem:[#allocation2 + $0x1f0] sm:$0xff] %vm272_vm0, %v347_v50  ;;  %v11176_v63 = vld [vmem:[#allocation2 + $0x110] sm:$0xff]  ;;  %v11178_v0 = vld [vmem:[#allocation2 + $0x128] sm:$0xff]  ;;  %417 = vst.msk [vmem:[#allocation2 + $0x208] sm:$0xff] %vm272_vm0, %v348_v15 }
  0x93   : > { %v11184_v1 = vld [vmem:[#allocation2 + $0x130] sm:$0xff]  ;;  %v11186_v2 = vld [vmem:[#allocation2 + $0x148] sm:$0xff]  ;;  %418 = vst.msk [vmem:[#allocation2 + $0x210] sm:$0xff] %vm272_vm0, %v349_v16 }
  0x94   : > { %8898 = vmatmul.mubr.msk.f32.gmra.mrb[6].mxu0 %vm272_vm0, %v11129_v48  ;;  %v11192_v3 = vld [vmem:[#allocation2 + $0x150] sm:$0xff]  ;;  %v11194_v4 = vld [vmem:[#allocation2 + $0x168] sm:$0xff] }
  0x95   : > { %8900 = vmatprep.mubr.msk.f32.mxu0 %vm272_vm0, %v11136_v51  ;;  %v11200_v5 = vld [vmem:[#allocation2 + $0x170] sm:$0xff]  ;;  %v11202_v6 = vld [vmem:[#allocation2 + $0x188] sm:$0xff] }
  0x96   : > { %13003 = vst [vmem:[#allocation13_spill] sm:$0xff] %v11202_v6  ;;  %v11208_v7 = vld [vmem:[#allocation2 + $0x190] sm:$0xff]  ;;  %v11210_v8 = vld [vmem:[#allocation2 + $0x1a8] sm:$0xff] }
  0x97   : > { %13004 = vst [vmem:[#allocation14_spill] sm:$0xff] %v11208_v7  ;;  %13005 = vst [vmem:[#allocation15_spill] sm:$0xff] %v11210_v8  ;;  %v11216_v9 = vld [vmem:[#allocation2 + $0x1b0] sm:$0xff]  ;;  %v11218_v10 = vld [vmem:[#allocation2 + $0x1c8] sm:$0xff] }
  0x98   : > { %8901 = vmatmul.mubr.msk.f32.gmra.mrb[8].mxu0 %vm272_vm0, %v11144_v55  ;;  %13006 = vst [vmem:[#allocation16_spill] sm:$0xff] %v11216_v9  ;;  %13007 = vst [vmem:[#allocation17_spill] sm:$0xff] %v11218_v10  ;;  %v11224_v11 = vld [vmem:[#allocation2 + $0x1d0] sm:$0xff]  ;;  %v11226_v12 = vld [vmem:[#allocation2 + $0x1e8] sm:$0xff] }
  0x99   : > { %8903 = vmatprep.mubr.msk.f32.mxu0 %vm272_vm0, %v11146_v56  ;;  %13008 = vst [vmem:[#allocation18_spill] sm:$0xff] %v11224_v11  ;;  %13009 = vst [vmem:[#allocation19_spill] sm:$0xff] %v11226_v12  ;;  %v11232_v13 = vld [vmem:[#allocation2 + $0x1f0] sm:$0xff]  ;;  %v11237_v18 = vld [vmem:[#allocation2 + $0x27] sm:$0xff] }
  0x9a   : > { %13010 = vst [vmem:[#allocation20_spill] sm:$0xff] %v11232_v13  ;;  %v11242_v22 = vld [vmem:[#allocation2 + $0x2f] sm:$0xff]  ;;  %v11244_v23 = vld [vmem:[#allocation2 + $0x47] sm:$0xff] }
  0x9b   : > { %v11252_v25 = vld [vmem:[#allocation2 + $0x4f] sm:$0xff]  ;;  %v11254_v26 = vld [vmem:[#allocation2 + $0x67] sm:$0xff] }
  0x9c   : > { %8904 = vmatmul.mubr.msk.f32.gmra.mrb[10].mxu0 %vm272_vm0, %v11152_v57  ;;  %v11261_v27 = vld [vmem:[#allocation2 + $0x6f] sm:$0xff]  ;;  %v11263_v28 = vld [vmem:[#allocation2 + $0x87] sm:$0xff] }
  0x9d   : > { %8906 = vmatprep.mubr.msk.f32.mxu0 %vm272_vm0, %v11154_v58  ;;  %v11269_v29 = vld [vmem:[#allocation2 + $0x8f] sm:$0xff]  ;;  %v11271_v30 = vld [vmem:[#allocation2 + $0xa7] sm:$0xff] }
  0x9e   : > { %v11277_v31 = vld [vmem:[#allocation2 + $0xaf] sm:$0xff]  ;;  %v11279_v32 = vld [vmem:[#allocation2 + $0xc7] sm:$0xff] }
  0x9f   : > { %v11285_v33 = vld [vmem:[#allocation2 + $0xcf] sm:$0xff]  ;;  %v11287_v34 = vld [vmem:[#allocation2 + $0xe7] sm:$0xff] }
  0xa0   : > { %8907 = vmatmul.mubr.msk.f32.gmra.mrb[12].mxu0 %vm272_vm0, %v11160_v59  ;;  %v11293_v36 = vld [vmem:[#allocation2 + $0xef] sm:$0xff]  ;;  %v11295_v37 = vld [vmem:[#allocation2 + $0x107] sm:$0xff] }
  0xa1   : > { %8909 = vmatprep.mubr.msk.f32.mxu0 %vm272_vm0, %v11162_v60  ;;  %v11301_v41 = vld [vmem:[#allocation2 + $0x10f] sm:$0xff]  ;;  %v11303_v42 = vld [vmem:[#allocation2 + $0x127] sm:$0xff] }
  0xa2   : > { %v11309_v44 = vld [vmem:[#allocation2 + $0x12f] sm:$0xff]  ;;  %v11311_v45 = vld [vmem:[#allocation2 + $0x147] sm:$0xff] }
  0xa3   : > { %v11317_v46 = vld [vmem:[#allocation2 + $0x14f] sm:$0xff]  ;;  %v11319_v47 = vld [vmem:[#allocation2 + $0x167] sm:$0xff] }
  0xa4   : > { %8910 = vmatmul.mubr.msk.f32.gmra.mrb[14].mxu0 %vm272_vm0, %v11168_v61  ;;  %v11325_v49 = vld [vmem:[#allocation2 + $0x16f] sm:$0xff]  ;;  %v11327_v50 = vld [vmem:[#allocation2 + $0x187] sm:$0xff] }
  0xa5   : > { %8912 = vmatprep.mubr.msk.f32.mxu0 %vm272_vm0, %v11170_v62  ;;  %v11333_v52 = vld [vmem:[#allocation2 + $0x18f] sm:$0xff]  ;;  %v11335_v53 = vld [vmem:[#allocation2 + $0x1a7] sm:$0xff] }
  0xa6   : > { %v11361_v20 = vld [vmem:[#allocation2 + $0x1ef] sm:$0xff] }
  0xa7   : > { %v1125_v21 = vld [vmem:[#allocation2 + $0x9] sm:$0xff]  ;;  %v1126_v16 = vld [vmem:[#allocation2 + $0x11] sm:$0xff] }
  0xa8   : > { %8913 = vmatmul.mubr.msk.f32.gmra.mrb[16].mxu0 %vm272_vm0, %v11176_v63  ;;  %v364_v15 = vld [vmem:[#allocation6 + $0x70] sm:$0xff] }
  0xa9   : > { %8915 = vmatprep.mubr.msk.f32.mxu0 %vm272_vm0, %v11178_v0 }
  0xac   : > { %8916 = vmatmul.mubr.msk.f32.gmra.mrb[18].mxu0 %vm272_vm0, %v11184_v1 }
  0xad   : > { %8918 = vmatprep.mubr.msk.f32.mxu0 %vm272_vm0, %v11186_v2 }
  0xb0   : > { %8919 = vmatmul.mubr.msk.f32.gmra.mrb[20].mxu0 %vm272_vm0, %v11192_v3 }
  0xb1   : > { %8921 = vmatprep.mubr.msk.f32.mxu0 %vm272_vm0, %v11194_v4 }
  0xb4   : > { %8922 = vmatmul.mubr.msk.f32.gmra.mrb[22].mxu0 %vm272_vm0, %v11200_v5 }
  0xb5   : > { %8924 = vmatprep.mubr.msk.f32.mxu0 %vm272_vm0, %v11202_v6 }
  0xb8   : > { %8925 = vmatmul.mubr.msk.f32.gmra.mrb[24].mxu0 %vm272_vm0, %v11208_v7  ;;  %v11374_v7 = vld [vmem:[#allocation2 + $0x49] sm:$0xff] }
  0xb9   : > { %8927 = vmatprep.mubr.msk.f32.mxu0 %vm272_vm0, %v11210_v8  ;;  %v11372_v8 = vld [vmem:[#allocation2 + $0x31] sm:$0xff] }
  0xbc   : > { %8928 = vmatmul.mubr.msk.f32.gmra.mrb[26].mxu0 %vm272_vm0, %v11216_v9  ;;  %v367_v9 = vld [vmem:[#allocation6 + $0x88] sm:$0xff] }
  0xbd   : > { %8930 = vmatprep.mubr.msk.f32.mxu0 %vm272_vm0, %v11218_v10  ;;  %v366_v10 = vld [vmem:[#allocation6 + $0x80] sm:$0xff] }
  0xbe   : > { %v11376_v6 = vpack.c.bf16 %v367_v9, %v366_v10  ;;  %v11391_v9 = vld [vmem:[#allocation2 + $0x71] sm:$0xff]  ;;  %v11393_v10 = vld [vmem:[#allocation2 + $0x89] sm:$0xff] }
  0xbf   : > { %13013 = vst [vmem:[#allocation23_spill] sm:$0xff] %v11391_v9  ;;  %13014 = vst [vmem:[#allocation24_spill] sm:$0xff] %v11393_v10 }
  0xc0   : > { %8931 = vmatmul.mubr.msk.f32.gmra.mrb[28].mxu0 %vm272_vm0, %v11224_v11 }
  0xc1   : > { %8933 = vmatprep.mubr.msk.f32.mxu0 %vm272_vm0, %v11226_v12  ;;  %v11366_v12 = vld [vmem:[#allocation2 + $0x29] sm:$0xff] }
  0xc4   : > { %8934 = vmatmul.mubr.msk.f32.gmra.mrb[30].mxu0 %vm272_vm0, %v11232_v13  ;;  %v365_v13 = vld [vmem:[#allocation6 + $0x78] sm:$0xff] }
  0xc5   : > { %8944 = vmatprep.mubr.msk.f32.mxu0 %vm272_vm0, %v419_v14  ;;  %v11343_v14 = vld [vmem:[#allocation2 + $0x1c7] sm:$0xff]  ;;  %v9916_v11 = vpack.c.bf16 %v365_v13, %v364_v15  ;;  %v11382_v13 = vld [vmem:[#allocation2 + $0x51] sm:$0xff] }
  0xc6   : > { %13011 = vst [vmem:[#allocation21_spill] sm:$0xff] %v11382_v13  ;;  %v11407_v15 = vld [vmem:[#allocation2 + $0xb1] sm:$0xff] }
  0xc7   : > { %13017 = vst [vmem:[#allocation27_spill] sm:$0xff] %v11407_v15 }
  0xc8   : > { %8945 = vmatmul.mubr.msk.f32.vlgmr.msra.gmra.mrb[0].mxu0 %vm272_vm0, %v420_v17  ;;  %v11353_v17 = vld [vmem:[#allocation2 + $0x1cf] sm:$0xff] }
  0xc9   : > { %9907 = vmatpush3.bf16.msra.mxu0 %v9904_v54  ;;  %8947 = vmatprep.mubr.msk.f32.mxu0 %vm272_vm0, %v11237_v18  ;;  %v11341_v54 = vld [vmem:[#allocation2 + $0x1af] sm:$0xff] }
  0xca   : > { %9909 = vmatprep.subr.bf16.mxu0 %v9908_v19 }
  0xcc   : > { %8948 = vmatmul.mubr.msk.f32.gmra.mrb[2].mxu0 %vm272_vm0, %v11242_v22 }
  0xcd   : > { %8950 = vmatprep.mubr.msk.f32.mxu0 %vm272_vm0, %v11244_v23  ;;  %9911 = vmatpush3.bf16.msra.mxu0 %v9908_v19  ;;  %v11355_v19 = vld [vmem:[#allocation2 + $0x1e7] sm:$0xff] }
  0xce   : > { %9913 = vmatprep.subr.bf16.mxu0 %v11246_v24 }
  0xd0   : > { %8951 = vmatmul.mubr.msk.f32.gmra.mrb[4].mxu0 %vm272_vm0, %v11252_v25 }
  0xd1   : > { %8953 = vmatprep.mubr.msk.f32.mxu0 %vm272_vm0, %v11254_v26 }
  0xd4   : > { %8954 = vmatmul.mubr.msk.f32.gmra.mrb[6].mxu0 %vm272_vm0, %v11261_v27 }
  0xd5   : > { %8956 = vmatprep.mubr.msk.f32.mxu0 %vm272_vm0, %v11263_v28 }
  0xd8   : > { %8957 = vmatmul.mubr.msk.f32.gmra.mrb[8].mxu0 %vm272_vm0, %v11269_v29 }
  0xd9   : > { %8959 = vmatprep.mubr.msk.f32.mxu0 %vm272_vm0, %v11271_v30 }
  0xdc   : > { %8960 = vmatmul.mubr.msk.f32.gmra.mrb[10].mxu0 %vm272_vm0, %v11277_v31 }
  0xdd   : > { %8962 = vmatprep.mubr.msk.f32.mxu0 %vm272_vm0, %v11279_v32 }
  0xe0   : > { %8963 = vmatmul.mubr.msk.f32.gmra.mrb[12].mxu0 %vm272_vm0, %v11285_v33 }
  0xe1   : > { %8965 = vmatprep.mubr.msk.f32.mxu0 %vm272_vm0, %v11287_v34 }
  0xe4   : > { %8966 = vmatmul.mubr.msk.f32.gmra.mrb[14].mxu0 %vm272_vm0, %v11293_v36 }
  0xe5   : > { %8968 = vmatprep.mubr.msk.f32.mxu0 %vm272_vm0, %v11295_v37 }
  0xe8   : > { %8969 = vmatmul.mubr.msk.f32.gmra.mrb[16].mxu0 %vm272_vm0, %v11301_v41 }
  0xe9   : > { %8971 = vmatprep.mubr.msk.f32.mxu0 %vm272_vm0, %v11303_v42 }
  0xec   : > { %8972 = vmatmul.mubr.msk.f32.gmra.mrb[18].mxu0 %vm272_vm0, %v11309_v44 }
  0xed   : > { %8974 = vmatprep.mubr.msk.f32.mxu0 %vm272_vm0, %v11311_v45 }
  0xf0   : > { %8975 = vmatmul.mubr.msk.f32.gmra.mrb[20].mxu0 %vm272_vm0, %v11317_v46 }
  0xf1   : > { %8977 = vmatprep.mubr.msk.f32.mxu0 %vm272_vm0, %v11319_v47 }
  0xf4   : > { %8978 = vmatmul.mubr.msk.f32.gmra.mrb[22].mxu0 %vm272_vm0, %v11325_v49 }
  0xf5   : > { %8980 = vmatprep.mubr.msk.f32.mxu0 %vm272_vm0, %v11327_v50 }
  0xf8   : > { %8981 = vmatmul.mubr.msk.f32.gmra.mrb[24].mxu0 %vm272_vm0, %v11333_v52 }
  0xf9   : > { %8983 = vmatprep.mubr.msk.f32.mxu0 %vm272_vm0, %v11335_v53 }
  0xfc   : > { %8984 = vmatmul.mubr.msk.f32.gmra.mrb[26].mxu0 %vm272_vm0, %v11341_v54 }
  0xfd   : > { %8986 = vmatprep.mubr.msk.f32.mxu0 %vm272_vm0, %v11343_v14 }
 0x100   : > { %8987 = vmatmul.mubr.msk.f32.gmra.mrb[28].mxu0 %vm272_vm0, %v11353_v17 }
 0x101   : > { %8989 = vmatprep.mubr.msk.f32.mxu0 %vm272_vm0, %v11355_v19 }
 0x104   : > { %8990 = vmatmul.mubr.msk.f32.gmra.mrb[30].mxu0 %vm272_vm0, %v11361_v20 }
 0x105   : > { %9000 = vmatprep.mubr.msk.f32.mxu0 %vm272_vm0, %v1125_v21  ;;  %v11401_v21 = vld [vmem:[#allocation2 + $0xa9] sm:$0xff] }
 0x106   : > { %13016 = vst [vmem:[#allocation26_spill] sm:$0xff] %v11401_v21 }
 0x108   : > { %9001 = vmatmul.mubr.msk.f32.vlgmr.msra.gmra.mrb[0].mxu0 %vm272_vm0, %v1126_v16  ;;  %v11409_v16 = vld [vmem:[#allocation2 + $0xc9] sm:$0xff] }
 0x109   : > { %9915 = vmatpush3.bf16.msra.mxu0 %v11246_v24  ;;  %9003 = vmatprep.mubr.msk.f32.mxu0 %vm272_vm0, %v11366_v12  ;;  %v11384_v24 = vld [vmem:[#allocation2 + $0x69] sm:$0xff]  ;;  %13018 = vst [vmem:[#allocation28_spill] sm:$0xff] %v11409_v16 }
 0x10a   : > { %9917 = vmatprep.subr.bf16.mxu0 %v9916_v11  ;;  %13012 = vst [vmem:[#allocation22_spill] sm:$0xff] %v11384_v24 }
 0x10c   : > { %9004 = vmatmul.mubr.msk.f32.gmra.mrb[2].mxu0 %vm272_vm0, %v11372_v8 }
 0x10d   : > { %9006 = vmatprep.mubr.msk.f32.mxu0 %vm272_vm0, %v11374_v7  ;;  %9919 = vmatpush3.bf16.msra.mxu0 %v9916_v11  ;;  %v11399_v11 = vld [vmem:[#allocation2 + $0x91] sm:$0xff] }
 0x10e   : > { %9921 = vmatprep.subr.bf16.mxu0 %v11376_v6  ;;  %13015 = vst [vmem:[#allocation25_spill] sm:$0xff] %v11399_v11 }
 0x110   : > { %9007 = vmatmul.mubr.msk.f32.gmra.mrb[4].mxu0 %vm272_vm0, %v11382_v13  ;;  %v371_v13 = vld [vmem:[#allocation6 + $0xa8] sm:$0xff] }
 0x111   : > { %9009 = vmatprep.mubr.msk.f32.mxu0 %vm272_vm0, %v11384_v24  ;;  %v369_v24 = vld [vmem:[#allocation6 + $0x98] sm:$0xff] }
 0x114   : > { %9010 = vmatmul.mubr.msk.f32.gmra.mrb[6].mxu0 %vm272_vm0, %v11391_v9  ;;  %v11417_v9 = vld [vmem:[#allocation2 + $0xe9] sm:$0xff] }
 0x115   : > { %9012 = vmatprep.mubr.msk.f32.mxu0 %vm272_vm0, %v11393_v10  ;;  %v11415_v10 = vld [vmem:[#allocation2 + $0xd1] sm:$0xff]  ;;  %13020 = vst [vmem:[#allocation30_spill] sm:$0xff] %v11417_v9 }
 0x116   : > { %13019 = vst [vmem:[#allocation29_spill] sm:$0xff] %v11415_v10 }
 0x118   : > { %9013 = vmatmul.mubr.msk.f32.gmra.mrb[8].mxu0 %vm272_vm0, %v11399_v11  ;;  %v11425_v11 = vld [vmem:[#allocation2 + $0x109] sm:$0xff] }
 0x119   : > { %9015 = vmatprep.mubr.msk.f32.mxu0 %vm272_vm0, %v11401_v21  ;;  %v11423_v21 = vld [vmem:[#allocation2 + $0xf1] sm:$0xff]  ;;  %13022 = vst [vmem:[#allocation32_spill] sm:$0xff] %v11425_v11 }
 0x11a   : > { %13021 = vst [vmem:[#allocation31_spill] sm:$0xff] %v11423_v21 }
 0x11c   : > { %9016 = vmatmul.mubr.msk.f32.gmra.mrb[10].mxu0 %vm272_vm0, %v11407_v15  ;;  %v11433_v15 = vld [vmem:[#allocation2 + $0x129] sm:$0xff] }
 0x11d   : > { %9018 = vmatprep.mubr.msk.f32.mxu0 %vm272_vm0, %v11409_v16  ;;  %v11431_v16 = vld [vmem:[#allocation2 + $0x111] sm:$0xff]  ;;  %13024 = vst [vmem:[#allocation34_spill] sm:$0xff] %v11433_v15 }
 0x11e   : > { %13023 = vst [vmem:[#allocation33_spill] sm:$0xff] %v11431_v16 }
 0x120   : > { %9019 = vmatmul.mubr.msk.f32.gmra.mrb[12].mxu0 %vm272_vm0, %v11415_v10  ;;  %v11441_v10 = vld [vmem:[#allocation2 + $0x149] sm:$0xff] }
 0x121   : > { %9021 = vmatprep.mubr.msk.f32.mxu0 %vm272_vm0, %v11417_v9  ;;  %v11439_v9 = vld [vmem:[#allocation2 + $0x131] sm:$0xff]  ;;  %13026 = vst [vmem:[#allocation36_spill] sm:$0xff] %v11441_v10 }
 0x122   : > { %13025 = vst [vmem:[#allocation35_spill] sm:$0xff] %v11439_v9 }
 0x124   : > { %9022 = vmatmul.mubr.msk.f32.gmra.mrb[14].mxu0 %vm272_vm0, %v11423_v21  ;;  %v11449_v21 = vld [vmem:[#allocation2 + $0x169] sm:$0xff] }
 0x125   : > { %9024 = vmatprep.mubr.msk.f32.mxu0 %vm272_vm0, %v11425_v11  ;;  %v11447_v11 = vld [vmem:[#allocation2 + $0x151] sm:$0xff]  ;;  %13028 = vst [vmem:[#allocation38_spill] sm:$0xff] %v11449_v21 }
 0x126   : > { %13027 = vst [vmem:[#allocation37_spill] sm:$0xff] %v11447_v11 }
 0x128   : > { %9025 = vmatmul.mubr.msk.f32.gmra.mrb[16].mxu0 %vm272_vm0, %v11431_v16  ;;  %v11457_v16 = vld [vmem:[#allocation2 + $0x189] sm:$0xff] }
 0x129   : > { %9027 = vmatprep.mubr.msk.f32.mxu0 %vm272_vm0, %v11433_v15  ;;  %v11455_v15 = vld [vmem:[#allocation2 + $0x171] sm:$0xff]  ;;  %13030 = vst [vmem:[#allocation40_spill] sm:$0xff] %v11457_v16 }
 0x12a   : > { %13029 = vst [vmem:[#allocation39_spill] sm:$0xff] %v11455_v15 }
 0x12c   : > { %9028 = vmatmul.mubr.msk.f32.gmra.mrb[18].mxu0 %vm272_vm0, %v11439_v9  ;;  %v11465_v9 = vld [vmem:[#allocation2 + $0x1a9] sm:$0xff] }
 0x12d   : > { %9030 = vmatprep.mubr.msk.f32.mxu0 %vm272_vm0, %v11441_v10  ;;  %v11463_v10 = vld [vmem:[#allocation2 + $0x191] sm:$0xff]  ;;  %13032 = vst [vmem:[#allocation42_spill] sm:$0xff] %v11465_v9 }
 0x12e   : > { %13031 = vst [vmem:[#allocation41_spill] sm:$0xff] %v11463_v10 }
 0x130   : > { %9031 = vmatmul.mubr.msk.f32.gmra.mrb[20].mxu0 %vm272_vm0, %v11447_v11  ;;  %v11473_v11 = vld [vmem:[#allocation2 + $0x1c9] sm:$0xff] }
 0x131   : > { %9033 = vmatprep.mubr.msk.f32.mxu0 %vm272_vm0, %v11449_v21  ;;  %v11471_v21 = vld [vmem:[#allocation2 + $0x1b1] sm:$0xff]  ;;  %13034 = vst [vmem:[#allocation44_spill] sm:$0xff] %v11473_v11 }
 0x132   : > { %13033 = vst [vmem:[#allocation43_spill] sm:$0xff] %v11471_v21 }
 0x134   : > { %9034 = vmatmul.mubr.msk.f32.gmra.mrb[22].mxu0 %vm272_vm0, %v11455_v15  ;;  %v11481_v15 = vld [vmem:[#allocation2 + $0x1e9] sm:$0xff] }
 0x135   : > { %9036 = vmatprep.mubr.msk.f32.mxu0 %vm272_vm0, %v11457_v16  ;;  %v11479_v16 = vld [vmem:[#allocation2 + $0x1d1] sm:$0xff]  ;;  %13036 = vst [vmem:[#allocation46_spill] sm:$0xff] %v11481_v15 }
 0x136   : > { %13035 = vst [vmem:[#allocation45_spill] sm:$0xff] %v11479_v16 }
 0x138   : > { %9037 = vmatmul.mubr.msk.f32.gmra.mrb[24].mxu0 %vm272_vm0, %v11463_v10  ;;  %v368_v10 = vld [vmem:[#allocation6 + $0x90] sm:$0xff] }
 0x139   : > { %9039 = vmatprep.mubr.msk.f32.mxu0 %vm272_vm0, %v11465_v9  ;;  %v11487_v9 = vld [vmem:[#allocation2 + $0x1f1] sm:$0xff] }
 0x13c   : > { %9040 = vmatmul.mubr.msk.f32.gmra.mrb[26].mxu0 %vm272_vm0, %v11471_v21  ;;  %v370_v21 = vld [vmem:[#allocation6 + $0xa0] sm:$0xff] }
 0x13d   : > { %9042 = vmatprep.mubr.msk.f32.mxu0 %vm272_vm0, %v11473_v11  ;;  %v9924_v11 = vpack.c.bf16 %v369_v24, %v368_v10  ;;  %v374_v10 = vld [vmem:[#allocation6 + $0xc0] sm:$0xff] }
 0x140   : > { %9043 = vmatmul.mubr.msk.f32.gmra.mrb[28].mxu0 %vm272_vm0, %v11479_v16 }
 0x141   : > { %9045 = vmatprep.mubr.msk.f32.mxu0 %vm272_vm0, %v11481_v15  ;;  %v9928_v15 = vpack.c.bf16 %v371_v13, %v370_v21  ;;  %v373_v13 = vld [vmem:[#allocation6 + $0xb8] sm:$0xff] }
 0x144   : > { %9046 = vmatmul.mubr.msk.f32.gmra.mrb[30].mxu0 %vm272_vm0, %v11487_v9 }
 0x145   : > { %9056 = vmatprep.mubr.msk.f32.mxu0 %vm272_vm0, %v11237_v18  ;;  %v11556_v18 = vld [vmem:[#allocation2 + $0x20f] sm:$0xff] }
 0x148   : > { %9057 = vmatmul.mubr.msk.f32.vlgmr.msra.gmra.mrb[0].mxu0 %vm272_vm0, %v11242_v22  ;;  %v372_v22 = vld [vmem:[#allocation6 + $0xb0] sm:$0xff] }
 0x149   : > { %9923 = vmatpush3.bf16.msra.mxu0 %v11376_v6  ;;  %9059 = vmatprep.mubr.msk.f32.mxu0 %vm272_vm0, %v11244_v23  ;;  %v11550_v6 = vld [vmem:[#allocation2 + $0x207] sm:$0xff]  ;;  %v9932_v24 = vpack.c.bf16 %v373_v13, %v372_v22  ;;  %v13055_v13 = vld [vmem:[#allocation31_spill] sm:$0xff] }
 0x14a   : > { %9925 = vmatprep.subr.bf16.mxu0 %v9924_v11  ;;  %v13054_v22 = vld [vmem:[#allocation30_spill] sm:$0xff] }
 0x14c   : > { %9060 = vmatmul.mubr.msk.f32.gmra.mrb[2].mxu0 %vm272_vm0, %v11252_v25 }
 0x14d   : > { %9062 = vmatprep.mubr.msk.f32.mxu0 %vm272_vm0, %v11254_v26  ;;  %9927 = vmatpush3.bf16.msra.mxu0 %v9924_v11  ;;  %v375_v11 = vld [vmem:[#allocation6 + $0xc8] sm:$0xff] }
 0x14e   : > { %9929 = vmatprep.subr.bf16.mxu0 %v9928_v15  ;;  %v9936_v21 = vpack.c.bf16 %v375_v11, %v374_v10  ;;  %v13057_v10 = vld [vmem:[#allocation33_spill] sm:$0xff]  ;;  %v13058_v11 = vld [vmem:[#allocation34_spill] sm:$0xff] }
 0x150   : > { %9063 = vmatmul.mubr.msk.f32.gmra.mrb[4].mxu0 %vm272_vm0, %v11261_v27 }
 0x151   : > { %9065 = vmatprep.mubr.msk.f32.mxu0 %vm272_vm0, %v11263_v28 }
 0x154   : > { %9066 = vmatmul.mubr.msk.f32.gmra.mrb[6].mxu0 %vm272_vm0, %v11269_v29 }
 0x155   : > { %9068 = vmatprep.mubr.msk.f32.mxu0 %vm272_vm0, %v11271_v30 }
 0x158   : > { %9069 = vmatmul.mubr.msk.f32.gmra.mrb[8].mxu0 %vm272_vm0, %v11277_v31 }
 0x159   : > { %9071 = vmatprep.mubr.msk.f32.mxu0 %vm272_vm0, %v11279_v32 }
 0x15c   : > { %9072 = vmatmul.mubr.msk.f32.gmra.mrb[10].mxu0 %vm272_vm0, %v11285_v33 }
 0x15d   : > { %9074 = vmatprep.mubr.msk.f32.mxu0 %vm272_vm0, %v11287_v34 }
 0x160   : > { %9075 = vmatmul.mubr.msk.f32.gmra.mrb[12].mxu0 %vm272_vm0, %v11293_v36 }
 0x161   : > { %9077 = vmatprep.mubr.msk.f32.mxu0 %vm272_vm0, %v11295_v37 }
 0x164   : > { %9078 = vmatmul.mubr.msk.f32.gmra.mrb[14].mxu0 %vm272_vm0, %v11301_v41 }
 0x165   : > { %9080 = vmatprep.mubr.msk.f32.mxu0 %vm272_vm0, %v11303_v42 }
 0x168   : > { %9081 = vmatmul.mubr.msk.f32.gmra.mrb[16].mxu0 %vm272_vm0, %v11309_v44 }
 0x169   : > { %9083 = vmatprep.mubr.msk.f32.mxu0 %vm272_vm0, %v11311_v45 }
 0x16c   : > { %9084 = vmatmul.mubr.msk.f32.gmra.mrb[18].mxu0 %vm272_vm0, %v11317_v46 }
 0x16d   : > { %9086 = vmatprep.mubr.msk.f32.mxu0 %vm272_vm0, %v11319_v47 }
 0x170   : > { %9087 = vmatmul.mubr.msk.f32.gmra.mrb[20].mxu0 %vm272_vm0, %v11325_v49 }
 0x171   : > { %9089 = vmatprep.mubr.msk.f32.mxu0 %vm272_vm0, %v11327_v50 }
 0x174   : > { %9090 = vmatmul.mubr.msk.f32.gmra.mrb[22].mxu0 %vm272_vm0, %v11333_v52 }
 0x175   : > { %9092 = vmatprep.mubr.msk.f32.mxu0 %vm272_vm0, %v11335_v53 }
 0x178   : > { %9093 = vmatmul.mubr.msk.f32.gmra.mrb[24].mxu0 %vm272_vm0, %v11341_v54 }
 0x179   : > { %9095 = vmatprep.mubr.msk.f32.mxu0 %vm272_vm0, %v11343_v14 }
 0x17c   : > { %9096 = vmatmul.mubr.msk.f32.gmra.mrb[26].mxu0 %vm272_vm0, %v11353_v17 }
 0x17d   : > { %9098 = vmatprep.mubr.msk.f32.mxu0 %vm272_vm0, %v11355_v19 }
 0x180   : > { %9099 = vmatmul.mubr.msk.f32.gmra.mrb[28].mxu0 %vm272_vm0, %v11361_v20 }
 0x181   : > { %9101 = vmatprep.mubr.msk.f32.mxu0 %vm272_vm0, %v11550_v6 }
 0x184   : > { %9102 = vmatmul.mubr.msk.f32.gmra.mrb[30].mxu0 %vm272_vm0, %v11556_v18 }
 0x185   : > { %9112 = vmatprep.mubr.msk.f32.mxu0 %vm272_vm0, %v11092_v35  ;;  %v13037_v35 = vld [vmem:[#allocation13_spill] sm:$0xff] }
 0x188   : > { %9113 = vmatmul.mubr.msk.f32.vlgmr.msra.gmra.mrb[0].mxu0 %vm272_vm0, %v11104_v38  ;;  %v13038_v38 = vld [vmem:[#allocation14_spill] sm:$0xff] }
 0x189   : > { %9931 = vmatpush3.bf16.msra.mxu0 %v9928_v15  ;;  %9115 = vmatprep.mubr.msk.f32.mxu0 %vm272_vm0, %v11106_v39  ;;  %v13039_v39 = vld [vmem:[#allocation15_spill] sm:$0xff]  ;;  %v13053_v15 = vld [vmem:[#allocation29_spill] sm:$0xff] }
 0x18a   : > { %9933 = vmatprep.subr.bf16.mxu0 %v9932_v24 }
 0x18c   : > { %9116 = vmatmul.mubr.msk.f32.gmra.mrb[2].mxu0 %vm272_vm0, %v11112_v40  ;;  %v13040_v40 = vld [vmem:[#allocation16_spill] sm:$0xff] }
 0x18d   : > { %9118 = vmatprep.mubr.msk.f32.mxu0 %vm272_vm0, %v11116_v43  ;;  %9935 = vmatpush3.bf16.msra.mxu0 %v9932_v24  ;;  %v13041_v43 = vld [vmem:[#allocation17_spill] sm:$0xff]  ;;  %v13056_v24 = vld [vmem:[#allocation32_spill] sm:$0xff] }
 0x18e   : > { %9937 = vmatprep.subr.bf16.mxu0 %v9936_v21 }
 0x190   : > { %9119 = vmatmul.mubr.msk.f32.gmra.mrb[4].mxu0 %vm272_vm0, %v11129_v48  ;;  %v13042_v48 = vld [vmem:[#allocation18_spill] sm:$0xff] }
 0x191   : > { %9121 = vmatprep.mubr.msk.f32.mxu0 %vm272_vm0, %v11136_v51  ;;  %v13043_v51 = vld [vmem:[#allocation19_spill] sm:$0xff] }
 0x194   : > { %9122 = vmatmul.mubr.msk.f32.gmra.mrb[6].mxu0 %vm272_vm0, %v11144_v55  ;;  %v11618_v55 = vld [vmem:[#allocation2 + $0x208] sm:$0xff] }
 0x195   : > { %9124 = vmatprep.mubr.msk.f32.mxu0 %vm272_vm0, %v11146_v56  ;;  %v13044_v56 = vld [vmem:[#allocation20_spill] sm:$0xff] }
 0x198   : > { %9125 = vmatmul.mubr.msk.f32.gmra.mrb[8].mxu0 %vm272_vm0, %v11152_v57  ;;  %v11624_v57 = vld [vmem:[#allocation2 + $0x210] sm:$0xff] }
 0x199   : > { %9127 = vmatprep.mubr.msk.f32.mxu0 %vm272_vm0, %v11154_v58  ;;  %v376_v58 = vld [vmem:[#allocation6 + $0xd0] sm:$0xff] }
 0x19c   : > { %9128 = vmatmul.mubr.msk.f32.gmra.mrb[10].mxu0 %vm272_vm0, %v11160_v59  ;;  %v377_v59 = vld [vmem:[#allocation6 + $0xd8] sm:$0xff] }
 0x19d   : > { %9130 = vmatprep.mubr.msk.f32.mxu0 %vm272_vm0, %v11162_v60  ;;  %v9940_v60 = vpack.c.bf16 %v377_v59, %v376_v58  ;;  %v13068_v58 = vld [vmem:[#allocation44_spill] sm:$0xff]  ;;  %v13069_v59 = vld [vmem:[#allocation46_spill] sm:$0xff] }
 0x1a0   : > { %9131 = vmatmul.mubr.msk.f32.gmra.mrb[12].mxu0 %vm272_vm0, %v11168_v61  ;;  %v378_v61 = vld [vmem:[#allocation6 + $0xe0] sm:$0xff] }
 0x1a1   : > { %9133 = vmatprep.mubr.msk.f32.mxu0 %vm272_vm0, %v11170_v62  ;;  %v379_v62 = vld [vmem:[#allocation6 + $0xe8] sm:$0xff] }
 0x1a4   : > { %9134 = vmatmul.mubr.msk.f32.gmra.mrb[14].mxu0 %vm272_vm0, %v11176_v63  ;;  %v9944_v63 = vpack.c.bf16 %v379_v62, %v378_v61  ;;  %v11692_v61 = vld [vmem:[#allocation2 + $0x211] sm:$0xff] }
 0x1a5   : > { %9136 = vmatprep.mubr.msk.f32.mxu0 %vm272_vm0, %v11178_v0  ;;  %v13045_v0 = vld [vmem:[#allocation21_spill] sm:$0xff]  ;;  %v380_v62 = vld [vmem:[#allocation6 + $0xf0] sm:$0xff] }
 0x1a8   : > { %9137 = vmatmul.mubr.msk.f32.gmra.mrb[16].mxu0 %vm272_vm0, %v11184_v1  ;;  %v13046_v1 = vld [vmem:[#allocation22_spill] sm:$0xff] }
 0x1a9   : > { %9139 = vmatprep.mubr.msk.f32.mxu0 %vm272_vm0, %v11186_v2  ;;  %v13047_v2 = vld [vmem:[#allocation23_spill] sm:$0xff] }
 0x1ac   : > { %9140 = vmatmul.mubr.msk.f32.gmra.mrb[18].mxu0 %vm272_vm0, %v11192_v3  ;;  %v13048_v3 = vld [vmem:[#allocation24_spill] sm:$0xff] }
 0x1ad   : > { %9142 = vmatprep.mubr.msk.f32.mxu0 %vm272_vm0, %v11194_v4  ;;  %v13049_v4 = vld [vmem:[#allocation25_spill] sm:$0xff] }
 0x1b0   : > { %9143 = vmatmul.mubr.msk.f32.gmra.mrb[20].mxu0 %vm272_vm0, %v11200_v5  ;;  %v13050_v5 = vld [vmem:[#allocation26_spill] sm:$0xff] }
 0x1b1   : > { %9145 = vmatprep.mubr.msk.f32.mxu0 %vm272_vm0, %v13037_v35  ;;  %v13060_v35 = vld [vmem:[#allocation36_spill] sm:$0xff] }
 0x1b4   : > { %9146 = vmatmul.mubr.msk.f32.gmra.mrb[22].mxu0 %vm272_vm0, %v13038_v38  ;;  %v13061_v38 = vld [vmem:[#allocation37_spill] sm:$0xff] }
 0x1b5   : > { %9148 = vmatprep.mubr.msk.f32.mxu0 %vm272_vm0, %v13039_v39  ;;  %v13062_v39 = vld [vmem:[#allocation38_spill] sm:$0xff] }
 0x1b8   : > { %9149 = vmatmul.mubr.msk.f32.gmra.mrb[24].mxu0 %vm272_vm0, %v13040_v40  ;;  %v13063_v40 = vld [vmem:[#allocation39_spill] sm:$0xff] }
 0x1b9   : > { %9151 = vmatprep.mubr.msk.f32.mxu0 %vm272_vm0, %v13041_v43  ;;  %v13064_v43 = vld [vmem:[#allocation40_spill] sm:$0xff] }
 0x1bc   : > { %9152 = vmatmul.mubr.msk.f32.gmra.mrb[26].mxu0 %vm272_vm0, %v13042_v48  ;;  %v13065_v48 = vld [vmem:[#allocation41_spill] sm:$0xff] }
 0x1bd   : > { %9154 = vmatprep.mubr.msk.f32.mxu0 %vm272_vm0, %v13043_v51  ;;  %v13066_v51 = vld [vmem:[#allocation42_spill] sm:$0xff] }
 0x1c0   : > { %9155 = vmatmul.mubr.msk.f32.gmra.mrb[28].mxu0 %vm272_vm0, %v13044_v56  ;;  %v13067_v56 = vld [vmem:[#allocation43_spill] sm:$0xff] }
 0x1c1   : > { %9157 = vmatprep.mubr.msk.f32.mxu0 %vm272_vm0, %v11618_v55 }
 0x1c4   : > { %9158 = vmatmul.mubr.msk.f32.gmra.mrb[30].mxu0 %vm272_vm0, %v11624_v57 }
 0x1c5   : > { %9168 = vmatprep.mubr.msk.f32.mxu0 %vm272_vm0, %v11366_v12  ;;  %v13052_v12 = vld [vmem:[#allocation28_spill] sm:$0xff] }
 0x1c8   : > { %9169 = vmatmul.mubr.msk.f32.vlgmr.msra.gmra.mrb[0].mxu0 %vm272_vm0, %v11372_v8  ;;  %v13051_v8 = vld [vmem:[#allocation27_spill] sm:$0xff] }
 0x1c9   : > { %9939 = vmatpush3.bf16.msra.mxu0 %v9936_v21  ;;  %9171 = vmatprep.mubr.msk.f32.mxu0 %vm272_vm0, %v11374_v7  ;;  %v13059_v21 = vld [vmem:[#allocation35_spill] sm:$0xff] }
 0x1ca   : > { %9941 = vmatprep.subr.bf16.mxu0 %v9940_v60 }
 0x1cc   : > { %9172 = vmatmul.mubr.msk.f32.gmra.mrb[2].mxu0 %vm272_vm0, %v13045_v0 }
 0x1cd   : > { %9174 = vmatprep.mubr.msk.f32.mxu0 %vm272_vm0, %v13046_v1  ;;  %9943 = vmatpush3.bf16.msra.mxu0 %v9940_v60  ;;  %v11686_v60 = vld [vmem:[#allocation2 + $0x209] sm:$0xff] }
 0x1ce   : > { %9945 = vmatprep.subr.bf16.mxu0 %v9944_v63  ;;  %13070 = vst [vmem:[#allocation13_spill] sm:$0xff] %v11686_v60 }
 0x1d0   : > { %9175 = vmatmul.mubr.msk.f32.gmra.mrb[4].mxu0 %vm272_vm0, %v13047_v2 }
 0x1d1   : > { %9177 = vmatprep.mubr.msk.f32.mxu0 %vm272_vm0, %v13048_v3 }
 0x1d4   : > { %9178 = vmatmul.mubr.msk.f32.gmra.mrb[6].mxu0 %vm272_vm0, %v13049_v4 }
 0x1d5   : > { %9180 = vmatprep.mubr.msk.f32.mxu0 %vm272_vm0, %v13050_v5 }
 0x1d8   : > { %9181 = vmatmul.mubr.msk.f32.gmra.mrb[8].mxu0 %vm272_vm0, %v13051_v8 }
 0x1d9   : > { %9183 = vmatprep.mubr.msk.f32.mxu0 %vm272_vm0, %v13052_v12 }
 0x1dc   : > { %9184 = vmatmul.mubr.msk.f32.gmra.mrb[10].mxu0 %vm272_vm0, %v13053_v15 }
 0x1dd   : > { %9186 = vmatprep.mubr.msk.f32.mxu0 %vm272_vm0, %v13054_v22 }
 0x1e0   : > { %9187 = vmatmul.mubr.msk.f32.gmra.mrb[12].mxu0 %vm272_vm0, %v13055_v13 }
 0x1e1   : > { %9189 = vmatprep.mubr.msk.f32.mxu0 %vm272_vm0, %v13056_v24 }
 0x1e4   : > { %9190 = vmatmul.mubr.msk.f32.gmra.mrb[14].mxu0 %vm272_vm0, %v13057_v10 }
 0x1e5   : > { %9192 = vmatprep.mubr.msk.f32.mxu0 %vm272_vm0, %v13058_v11 }
 0x1e8   : > { %9193 = vmatmul.mubr.msk.f32.gmra.mrb[16].mxu0 %vm272_vm0, %v13059_v21 }
 0x1e9   : > { %9195 = vmatprep.mubr.msk.f32.mxu0 %vm272_vm0, %v13060_v35 }
 0x1ec   : > { %9196 = vmatmul.mubr.msk.f32.gmra.mrb[18].mxu0 %vm272_vm0, %v13061_v38 }
 0x1ed   : > { %9198 = vmatprep.mubr.msk.f32.mxu0 %vm272_vm0, %v13062_v39 }
 0x1f0   : > { %9199 = vmatmul.mubr.msk.f32.gmra.mrb[20].mxu0 %vm272_vm0, %v13063_v40 }
 0x1f1   : > { %9201 = vmatprep.mubr.msk.f32.mxu0 %vm272_vm0, %v13064_v43 }
 0x1f4   : > { %9202 = vmatmul.mubr.msk.f32.gmra.mrb[22].mxu0 %vm272_vm0, %v13065_v48 }
 0x1f5   : > { %9204 = vmatprep.mubr.msk.f32.mxu0 %vm272_vm0, %v13066_v51 }
 0x1f8   : > { %9205 = vmatmul.mubr.msk.f32.gmra.mrb[24].mxu0 %vm272_vm0, %v13067_v56  ;;  %v381_v56 = vld [vmem:[#allocation6 + $0xf8] sm:$0xff] }
 0x1f9   : > { %9207 = vmatprep.mubr.msk.f32.mxu0 %vm272_vm0, %v13068_v58  ;;  %v383_v58 = vld [vmem:[#allocation6 + $0x108] sm:$0xff] }
 0x1fc   : > { %9208 = vmatmul.mubr.msk.f32.gmra.mrb[26].mxu0 %vm272_vm0, %v11479_v16  ;;  %v9948_v16 = vpack.c.bf16 %v381_v56, %v380_v62  ;;  %v3078_v56 = vld [vmem:[#allocation2 + $0x1f0] sm:$0xff] }
 0x1fd   : > { %9210 = vmatprep.mubr.msk.f32.mxu0 %vm272_vm0, %v13069_v59  ;;  %v382_v59 = vld [vmem:[#allocation6 + $0x100] sm:$0xff] }
 0x200   : > { %9211 = vmatmul.mubr.msk.f32.gmra.mrb[28].mxu0 %vm272_vm0, %v11487_v9 }
 0x201   : > { %9213 = vmatprep.mubr.msk.f32.mxu0 %vm272_vm0, %v11686_v60  ;;  %v9952_v60 = vpack.c.bf16 %v383_v58, %v382_v59  ;;  %v3081_v58 = vld [vmem:[#allocation2 + $0x228] sm:$0xff]  ;;  %v3082_v59 = vld [vmem:[#allocation2 + $0x230] sm:$0xff] }
 0x204   : > { %9214 = vmatmul.mubr.msk.f32.gmra.mrb[30].mxu0 %vm272_vm0, %v11692_v61 }
 0x205   : > { %9224 = vmatprep.mubr.msk.f32.mxu0 %vm272_vm0, %v11244_v23  ;;  %v2696_v23 = vld [vmem:[#allocation2 + $0x227] sm:$0xff] }
 0x208   : > { %9225 = vmatmul.mubr.msk.f32.vlgmr.msra.gmra.mrb[0].mxu0 %vm272_vm0, %v11252_v25  ;;  %v2697_v25 = vld [vmem:[#allocation2 + $0x22f] sm:$0xff] }
 0x209   : > { %9947 = vmatpush3.bf16.msra.mxu0 %v9944_v63  ;;  %9227 = vmatprep.mubr.msk.f32.mxu0 %vm272_vm0, %v11254_v26  ;;  %v3051_v26 = vld [vmem:[#allocation2 + $0x48] sm:$0xff] }
 0x20a   : > { %9949 = vmatprep.subr.bf16.mxu0 %v9948_v16  ;;  %v3077_v63 = vld [vmem:[#allocation2 + $0x1e8] sm:$0xff] }
 0x20c   : > { %9228 = vmatmul.mubr.msk.f32.gmra.mrb[2].mxu0 %vm272_vm0, %v11261_v27  ;;  %v384_v27 = vld [vmem:[#allocation6 + $0x110] sm:$0xff] }
 0x20d   : > { %9230 = vmatprep.mubr.msk.f32.mxu0 %vm272_vm0, %v11263_v28  ;;  %9951 = vmatpush3.bf16.msra.mxu0 %v9948_v16  ;;  %v385_v28 = vld [vmem:[#allocation6 + $0x118] sm:$0xff]  ;;  %v3074_v16 = vld [vmem:[#allocation2 + $0x1b0] sm:$0xff] }
 0x20e   : > { %9953 = vmatprep.subr.bf16.mxu0 %v9952_v60 }
 0x210   : > { %9231 = vmatmul.mubr.msk.f32.gmra.mrb[4].mxu0 %vm272_vm0, %v11269_v29  ;;  %v3052_v29 = vld [vmem:[#allocation2 + $0x50] sm:$0xff] }
 0x211   : > { %9233 = vmatprep.mubr.msk.f32.mxu0 %vm272_vm0, %v11271_v30  ;;  %v3053_v30 = vld [vmem:[#allocation2 + $0x68] sm:$0xff] }
 0x214   : > { %9234 = vmatmul.mubr.msk.f32.gmra.mrb[6].mxu0 %vm272_vm0, %v11277_v31  ;;  %v9956_v31 = vpack.c.bf16 %v385_v28, %v384_v27 }
 0x215   : > { %9236 = vmatprep.mubr.msk.f32.mxu0 %vm272_vm0, %v11279_v32  ;;  %v3054_v32 = vld [vmem:[#allocation2 + $0x70] sm:$0xff] }
 0x218   : > { %9237 = vmatmul.mubr.msk.f32.gmra.mrb[8].mxu0 %vm272_vm0, %v11285_v33  ;;  %v3055_v33 = vld [vmem:[#allocation2 + $0x88] sm:$0xff] }
 0x219   : > { %9239 = vmatprep.mubr.msk.f32.mxu0 %vm272_vm0, %v11287_v34  ;;  %v3056_v34 = vld [vmem:[#allocation2 + $0x90] sm:$0xff] }
 0x21c   : > { %9240 = vmatmul.mubr.msk.f32.gmra.mrb[10].mxu0 %vm272_vm0, %v11293_v36  ;;  %v3057_v36 = vld [vmem:[#allocation2 + $0xa8] sm:$0xff] }
 0x21d   : > { %9242 = vmatprep.mubr.msk.f32.mxu0 %vm272_vm0, %v11295_v37  ;;  %v3058_v37 = vld [vmem:[#allocation2 + $0xb0] sm:$0xff] }
 0x220   : > { %9243 = vmatmul.mubr.msk.f32.gmra.mrb[12].mxu0 %vm272_vm0, %v11301_v41  ;;  %v3059_v41 = vld [vmem:[#allocation2 + $0xc8] sm:$0xff] }
 0x221   : > { %9245 = vmatprep.mubr.msk.f32.mxu0 %vm272_vm0, %v11303_v42  ;;  %v3060_v42 = vld [vmem:[#allocation2 + $0xd0] sm:$0xff] }
 0x224   : > { %9246 = vmatmul.mubr.msk.f32.gmra.mrb[14].mxu0 %vm272_vm0, %v11309_v44  ;;  %v3061_v44 = vld [vmem:[#allocation2 + $0xe8] sm:$0xff] }
 0x225   : > { %9248 = vmatprep.mubr.msk.f32.mxu0 %vm272_vm0, %v11311_v45  ;;  %v3062_v45 = vld [vmem:[#allocation2 + $0xf0] sm:$0xff] }
 0x228   : > { %9249 = vmatmul.mubr.msk.f32.gmra.mrb[16].mxu0 %vm272_vm0, %v11317_v46  ;;  %v3063_v46 = vld [vmem:[#allocation2 + $0x108] sm:$0xff] }
 0x229   : > { %9251 = vmatprep.mubr.msk.f32.mxu0 %vm272_vm0, %v11319_v47  ;;  %v3064_v47 = vld [vmem:[#allocation2 + $0x110] sm:$0xff] }
 0x22c   : > { %9252 = vmatmul.mubr.msk.f32.gmra.mrb[18].mxu0 %vm272_vm0, %v11325_v49  ;;  %v3065_v49 = vld [vmem:[#allocation2 + $0x128] sm:$0xff] }
 0x22d   : > { %9254 = vmatprep.mubr.msk.f32.mxu0 %vm272_vm0, %v11327_v50  ;;  %v3066_v50 = vld [vmem:[#allocation2 + $0x130] sm:$0xff] }
 0x230   : > { %9255 = vmatmul.mubr.msk.f32.gmra.mrb[20].mxu0 %vm272_vm0, %v11333_v52  ;;  %v3067_v52 = vld [vmem:[#allocation2 + $0x148] sm:$0xff] }
 0x231   : > { %9257 = vmatprep.mubr.msk.f32.mxu0 %vm272_vm0, %v11335_v53  ;;  %v3068_v53 = vld [vmem:[#allocation2 + $0x150] sm:$0xff] }
 0x234   : > { %9258 = vmatmul.mubr.msk.f32.gmra.mrb[22].mxu0 %vm272_vm0, %v11341_v54  ;;  %v3069_v54 = vld [vmem:[#allocation2 + $0x168] sm:$0xff] }
 0x235   : > { %9260 = vmatprep.mubr.msk.f32.mxu0 %vm272_vm0, %v11343_v14  ;;  %v3070_v14 = vld [vmem:[#allocation2 + $0x170] sm:$0xff] }
 0x238   : > { %9261 = vmatmul.mubr.msk.f32.gmra.mrb[24].mxu0 %vm272_vm0, %v11353_v17  ;;  %v3071_v17 = vld [vmem:[#allocation2 + $0x188] sm:$0xff] }
 0x239   : > { %9263 = vmatprep.mubr.msk.f32.mxu0 %vm272_vm0, %v11355_v19  ;;  %v3072_v19 = vld [vmem:[#allocation2 + $0x190] sm:$0xff] }
 0x23c   : > { %9264 = vmatmul.mubr.msk.f32.gmra.mrb[26].mxu0 %vm272_vm0, %v11361_v20  ;;  %v3073_v20 = vld [vmem:[#allocation2 + $0x1a8] sm:$0xff] }
 0x23d   : > { %9266 = vmatprep.mubr.msk.f32.mxu0 %vm272_vm0, %v11550_v6  ;;  %v3075_v6 = vld [vmem:[#allocation2 + $0x1c8] sm:$0xff] }
 0x240   : > { %9267 = vmatmul.mubr.msk.f32.gmra.mrb[28].mxu0 %vm272_vm0, %v11556_v18  ;;  %v3076_v18 = vld [vmem:[#allocation2 + $0x1d0] sm:$0xff] }
 0x241   : > { %9269 = vmatprep.mubr.msk.f32.mxu0 %vm272_vm0, %v2696_v23 }
 0x244   : > { %9270 = vmatmul.mubr.msk.f32.gmra.mrb[30].mxu0 %vm272_vm0, %v2697_v25 }
 0x245   : > { %9280 = vmatprep.mubr.msk.f32.mxu0 %vm272_vm0, %v3051_v26 }
 0x248   : > { %9281 = vmatmul.mubr.msk.f32.vlgmr.msra.gmra.mrb[0].mxu0 %vm272_vm0, %v3052_v29 }
 0x249   : > { %9955 = vmatpush3.bf16.msra.mxu0 %v9952_v60  ;;  %9283 = vmatprep.mubr.msk.f32.mxu0 %vm272_vm0, %v3053_v30 }
 0x24a   : > { %9957 = vmatprep.subr.bf16.mxu0 %v9956_v31 }
 0x24c   : > { %9284 = vmatmul.mubr.msk.f32.gmra.mrb[2].mxu0 %vm272_vm0, %v3054_v32 }
 0x24d   : > { %9286 = vmatprep.mubr.msk.f32.mxu0 %vm272_vm0, %v3055_v33  ;;  %9959 = vmatpush3.bf16.msra.mxu0 %v9956_v31 }
 0x250   : > { %9287 = vmatmul.mubr.msk.f32.gmra.mrb[4].mxu0 %vm272_vm0, %v3056_v34 }
 0x251   : > { %9289 = vmatprep.mubr.msk.f32.mxu0 %vm272_vm0, %v3057_v36 }
 0x254   : > { %9290 = vmatmul.mubr.msk.f32.gmra.mrb[6].mxu0 %vm272_vm0, %v3058_v37 }
 0x255   : > { %9292 = vmatprep.mubr.msk.f32.mxu0 %vm272_vm0, %v3059_v41 }
 0x258   : > { %9293 = vmatmul.mubr.msk.f32.gmra.mrb[8].mxu0 %vm272_vm0, %v3060_v42 }
 0x259   : > { %9295 = vmatprep.mubr.msk.f32.mxu0 %vm272_vm0, %v3061_v44 }
 0x25c   : > { %9296 = vmatmul.mubr.msk.f32.gmra.mrb[10].mxu0 %vm272_vm0, %v3062_v45 }
 0x25d   : > { %9298 = vmatprep.mubr.msk.f32.mxu0 %vm272_vm0, %v3063_v46 }
 0x260   : > { %9299 = vmatmul.mubr.msk.f32.gmra.mrb[12].mxu0 %vm272_vm0, %v3064_v47 }
 0x261   : > { %9301 = vmatprep.mubr.msk.f32.mxu0 %vm272_vm0, %v3065_v49 }
 0x264   : > { %9302 = vmatmul.mubr.msk.f32.gmra.mrb[14].mxu0 %vm272_vm0, %v3066_v50 }
 0x265   : > { %9304 = vmatprep.mubr.msk.f32.mxu0 %vm272_vm0, %v3067_v52 }
 0x268   : > { %9305 = vmatmul.mubr.msk.f32.gmra.mrb[16].mxu0 %vm272_vm0, %v3068_v53 }
 0x269   : > { %9307 = vmatprep.mubr.msk.f32.mxu0 %vm272_vm0, %v3069_v54 }
 0x26c   : > { %9308 = vmatmul.mubr.msk.f32.gmra.mrb[18].mxu0 %vm272_vm0, %v3070_v14 }
 0x26d   : > { %9310 = vmatprep.mubr.msk.f32.mxu0 %vm272_vm0, %v3071_v17 }
 0x270   : > { %9311 = vmatmul.mubr.msk.f32.gmra.mrb[20].mxu0 %vm272_vm0, %v3072_v19 }
 0x271   : > { %9313 = vmatprep.mubr.msk.f32.mxu0 %vm272_vm0, %v3073_v20 }
 0x274   : > { %9314 = vmatmul.mubr.msk.f32.gmra.mrb[22].mxu0 %vm272_vm0, %v3074_v16 }
 0x275   : > { %9316 = vmatprep.mubr.msk.f32.mxu0 %vm272_vm0, %v3075_v6 }
 0x278   : > { %9317 = vmatmul.mubr.msk.f32.gmra.mrb[24].mxu0 %vm272_vm0, %v3076_v18 }
 0x279   : > { %9319 = vmatprep.mubr.msk.f32.mxu0 %vm272_vm0, %v3077_v63 }
 0x27c   : > { %9320 = vmatmul.mubr.msk.f32.gmra.mrb[26].mxu0 %vm272_vm0, %v3078_v56 }
 0x27d   : > { %9322 = vmatprep.mubr.msk.f32.mxu0 %vm272_vm0, %v11618_v55  ;;  %v13072_v55 = vld [vmem:[#allocation44_spill] sm:$0xff] }
 0x280   : > { %9323 = vmatmul.mubr.msk.f32.gmra.mrb[28].mxu0 %vm272_vm0, %v11624_v57  ;;  %v13073_v57 = vld [vmem:[#allocation45_spill] sm:$0xff] }
 0x281   : > { %9325 = vmatprep.mubr.msk.f32.mxu0 %vm272_vm0, %v3081_v58 }
 0x284   : > { %9326 = vmatmul.mubr.msk.f32.gmra.mrb[30].mxu0 %vm272_vm0, %v3082_v59 }
 0x285   : > { %9336 = vmatprep.mubr.msk.f32.mxu0 %vm272_vm0, %v11374_v7  ;;  %v13071_v7 = vld [vmem:[#allocation43_spill] sm:$0xff] }
 0x288   : > { %9337 = vmatmul.mubr.msk.f32.vlgmr.msra.gmra.mrb[0].mxu0 %vm272_vm0, %v13045_v0  ;;  %v13074_v0 = vld [vmem:[#allocation46_spill] sm:$0xff] }
 0x289   : > { %9339 = vmatprep.mubr.msk.f32.mxu0 %vm272_vm0, %v13046_v1  ;;  %v13075_v1 = vld [vmem:[#allocation13_spill] sm:$0xff] }
 0x28c   : > { %9340 = vmatmul.mubr.msk.f32.gmra.mrb[2].mxu0 %vm272_vm0, %v13047_v2  ;;  %v3466_v2 = vld [vmem:[#allocation2 + $0x229] sm:$0xff] }
 0x28d   : > { %9342 = vmatprep.mubr.msk.f32.mxu0 %vm272_vm0, %v13048_v3  ;;  %v3467_v3 = vld [vmem:[#allocation2 + $0x231] sm:$0xff] }
 0x290   : > { %9343 = vmatmul.mubr.msk.f32.gmra.mrb[4].mxu0 %vm272_vm0, %v13049_v4  ;;  %v3896_v4 = vld [vmem:[#allocation8 + $0x20] sm:$0xff] }
 0x291   : > { %9345 = vmatprep.mubr.msk.f32.mxu0 %vm272_vm0, %v13050_v5  ;;  %v3897_v5 = vld [vmem:[#allocation8 + $0x28] sm:$0xff] }
 0x294   : > { %9346 = vmatmul.mubr.msk.f32.gmra.mrb[6].mxu0 %vm272_vm0, %v13051_v8  ;;  %v9960_v8 = vpack.c.bf16 %v3897_v5, %v3896_v4 }
 0x295   : > { %9348 = vmatprep.mubr.msk.f32.mxu0 %vm272_vm0, %v13052_v12  ;;  %v3898_v12 = vld [vmem:[#allocation8 + $0x30] sm:$0xff] }
 0x296   : > { %9961 = vmatprep.subr.bf16.mxu1 %v9960_v8 }
 0x297   : > { %9963 = vmatpush3.bf16.msra.mxu1 %v9960_v8 }
 0x298   : > { %9349 = vmatmul.mubr.msk.f32.gmra.mrb[8].mxu0 %vm272_vm0, %v13053_v15  ;;  %v3899_v15 = vld [vmem:[#allocation8 + $0x38] sm:$0xff] }
 0x299   : > { %9351 = vmatprep.mubr.msk.f32.mxu0 %vm272_vm0, %v13054_v22  ;;  %v3992_v22 = vld [vmem:[#allocation2 + $0x8] sm:$0xff] }
 0x29a   : > { %9392 = vmatprep.mubr.msk.f32.mxu1 %vm272_vm0, %v3992_v22 }
 0x29c   : > { %9352 = vmatmul.mubr.msk.f32.gmra.mrb[10].mxu0 %vm272_vm0, %v13055_v13  ;;  %v3993_v13 = vld [vmem:[#allocation2 + $0x10] sm:$0xff] }
 0x29d   : > { %9354 = vmatprep.mubr.msk.f32.mxu0 %vm272_vm0, %v13056_v24  ;;  %v3892_v24 = vld [vmem:[#allocation8] sm:$0xff] }
 0x2a0   : > { %9355 = vmatmul.mubr.msk.f32.gmra.mrb[12].mxu0 %vm272_vm0, %v13057_v10  ;;  %v3893_v10 = vld [vmem:[#allocation8 + $0x8] sm:$0xff] }
 0x2a1   : > { %9357 = vmatprep.mubr.msk.f32.mxu0 %vm272_vm0, %v13058_v11  ;;  %v9968_v11 = vpack.c.bf16 %v3893_v10, %v3892_v24 }
 0x2a4   : > { %9358 = vmatmul.mubr.msk.f32.gmra.mrb[14].mxu0 %vm272_vm0, %v13059_v21  ;;  %v3894_v21 = vld [vmem:[#allocation8 + $0x10] sm:$0xff] }
 0x2a5   : > { %9360 = vmatprep.mubr.msk.f32.mxu0 %vm272_vm0, %v13060_v35  ;;  %v3895_v35 = vld [vmem:[#allocation8 + $0x18] sm:$0xff] }
 0x2a8   : > { %9361 = vmatmul.mubr.msk.f32.gmra.mrb[16].mxu0 %vm272_vm0, %v13061_v38  ;;  %v9972_v38 = vpack.c.bf16 %v3895_v35, %v3894_v21 }
 0x2a9   : > { %9363 = vmatprep.mubr.msk.f32.mxu0 %vm272_vm0, %v13062_v39  ;;  %v3900_v39 = vld [vmem:[#allocation8 + $0x40] sm:$0xff] }
 0x2ac   : > { %9364 = vmatmul.mubr.msk.f32.gmra.mrb[18].mxu0 %vm272_vm0, %v13063_v40  ;;  %v3901_v40 = vld [vmem:[#allocation8 + $0x48] sm:$0xff] }
 0x2ad   : > { %9366 = vmatprep.mubr.msk.f32.mxu0 %vm272_vm0, %v13064_v43  ;;  %v11856_v43 = vpack.c.bf16 %v3901_v40, %v3900_v39 }
 0x2b0   : > { %9367 = vmatmul.mubr.msk.f32.gmra.mrb[20].mxu0 %vm272_vm0, %v13065_v48  ;;  %v11862_v48 = vld [vmem:[%s12859_s2] ss:$0 sm:$0xff] }
 0x2b1   : > { %9369 = vmatprep.mubr.msk.f32.mxu0 %vm272_vm0, %v13066_v51 }
 0x2b4   : > { %9370 = vmatmul.mubr.msk.f32.gmra.mrb[22].mxu0 %vm272_vm0, %v13071_v7 }
 0x2b5   : > { %9372 = vmatprep.mubr.msk.f32.mxu0 %vm272_vm0, %v13072_v55 }
 0x2b8   : > { %9373 = vmatmul.mubr.msk.f32.gmra.mrb[24].mxu0 %vm272_vm0, %v13073_v57 }
 0x2b9   : > { %9375 = vmatprep.mubr.msk.f32.mxu0 %vm272_vm0, %v13074_v0 }
 0x2bc   : > { %9376 = vmatmul.mubr.msk.f32.gmra.mrb[26].mxu0 %vm272_vm0, %v11487_v9  ;;  %v9964_v9 = vpack.c.bf16 %v3899_v15, %v3898_v12 }
 0x2bd   : > { %9378 = vmatprep.mubr.msk.f32.mxu0 %vm272_vm0, %v13075_v1 }
 0x2be   : > { %9965 = vmatprep.subr.bf16.mxu1 %v9964_v9 }
 0x2bf   : > { %9967 = vmatpush3.bf16.msra.mxu1 %v9964_v9 }
 0x2c0   : > { %9379 = vmatmul.mubr.msk.f32.gmra.mrb[28].mxu0 %vm272_vm0, %v11692_v61  ;;  %9969 = vmatprep.subr.bf16.mxu1 %v9968_v11 }
 0x2c1   : > { %9381 = vmatprep.mubr.msk.f32.mxu0 %vm272_vm0, %v3466_v2 }
 0x2c2   : > { %9393 = vmatmul.mubr.msk.f32.vlgmr.msra.gmra.mrb[0].mxu1 %vm272_vm0, %v3993_v13 }
 0x2c3   : > { %9971 = vmatpush3.bf16.msra.mxu1 %v9968_v11 }
 0x2c4   : > { %9382 = vmatmul.mubr.msk.f32.gmra.mrb[30].mxu0 %vm272_vm0, %v3467_v3  ;;  %9973 = vmatprep.subr.bf16.mxu1 %v9972_v38 }
 0x2c7   : > { %9975 = vmatpush3.bf16.msra.mxu1 %v9972_v38 }
 0x2c8   : > { %9977 = vmatprep.subr.bf16.mxu1 %v11856_v43 }
 0x35b   : > { %v9338_v51 = vpop.f32.mrb[0].mxu0 }
 0x35c   : > { %v3829_v60 = vadd.f32 %v9338_v51, %v11862_v48  ;;  %v3630_v61 = vpop.f32.mrb[1].mxu0 }
 0x35d   : > { %v3828_v62 = vadd.f32 %v11862_v48, %v3630_v61 }
 0x35e   : > { %v3861_v23 = vmax.f32 %v3829_v60, 0.0 }
 0x35f   : > { %v3860_v25 = vmax.f32 %v3828_v62, 0.0  ;;  %v9341_v26 = vpop.f32.mrb[2].mxu0 }
 0x360   : > { %3929 = vst.msk [vmem:[#allocation2 + $0x30] sm:$0xff] %vm272_vm0, %v3861_v23  ;;  %v3831_v27 = vadd.f32 %v9341_v26, %v11862_v48  ;;  %v3640_v28 = vpop.f32.mrb[3].mxu0 }
 0x361   : > { %3928 = vst.msk [vmem:[#allocation2 + $0x28] sm:$0xff] %vm272_vm0, %v3860_v25  ;;  %v3830_v29 = vadd.f32 %v11862_v48, %v3640_v28 }
 0x362   : > { %v3863_v30 = vmax.f32 %v3831_v27, 0.0 }
 0x363   : > { %v3862_v31 = vmax.f32 %v3830_v29, 0.0  ;;  %v9344_v32 = vpop.f32.mrb[4].mxu0 }
 0x364   : > { %3931 = vst.msk [vmem:[#allocation2 + $0x50] sm:$0xff] %vm272_vm0, %v3863_v30  ;;  %v3833_v33 = vadd.f32 %v9344_v32, %v11862_v48  ;;  %v3650_v34 = vpop.f32.mrb[5].mxu0 }
 0x365   : > { %3930 = vst.msk [vmem:[#allocation2 + $0x48] sm:$0xff] %vm272_vm0, %v3862_v31  ;;  %v3832_v36 = vadd.f32 %v11862_v48, %v3650_v34 }
 0x366   : > { %v3865_v37 = vmax.f32 %v3833_v33, 0.0 }
 0x367   : > { %v3864_v41 = vmax.f32 %v3832_v36, 0.0  ;;  %v9347_v42 = vpop.f32.mrb[6].mxu0  ;;  %v11882_v49 = vld [vmem:[#allocation2 + $0x30] sm:$0xff] }
 0x368   : > { %3933 = vst.msk [vmem:[#allocation2 + $0x70] sm:$0xff] %vm272_vm0, %v3865_v37  ;;  %v3835_v44 = vadd.f32 %v9347_v42, %v11862_v48  ;;  %v3660_v45 = vpop.f32.mrb[7].mxu0  ;;  %v11876_v46 = vld [vmem:[#allocation2 + $0x28] sm:$0xff] }
 0x369   : > { %3932 = vst.msk [vmem:[#allocation2 + $0x68] sm:$0xff] %vm272_vm0, %v3864_v41  ;;  %v3834_v47 = vadd.f32 %v11862_v48, %v3660_v45  ;;  %9395 = vmatprep.mubr.msk.f32.mxu1 %vm272_vm0, %v11876_v46 }
 0x36a   : > { %v3867_v50 = vmax.f32 %v3835_v44, 0.0  ;;  %9396 = vmatmul.mubr.msk.f32.gmra.mrb[2].mxu1 %vm272_vm0, %v11882_v49 }
 0x36b   : > { %v3866_v52 = vmax.f32 %v3834_v47, 0.0  ;;  %v9350_v53 = vpop.f32.mrb[8].mxu0  ;;  %v11894_v20 = vld [vmem:[#allocation2 + $0x50] sm:$0xff] }
 0x36c   : > { %3935 = vst.msk [vmem:[#allocation2 + $0x90] sm:$0xff] %vm272_vm0, %v3867_v50  ;;  %v3837_v54 = vadd.f32 %v9350_v53, %v11862_v48  ;;  %v3670_v14 = vpop.f32.mrb[9].mxu0  ;;  %v11888_v17 = vld [vmem:[#allocation2 + $0x48] sm:$0xff] }
 0x36d   : > { %3934 = vst.msk [vmem:[#allocation2 + $0x88] sm:$0xff] %vm272_vm0, %v3866_v52  ;;  %v3836_v19 = vadd.f32 %v11862_v48, %v3670_v14  ;;  %9398 = vmatprep.mubr.msk.f32.mxu1 %vm272_vm0, %v11888_v17 }
 0x36e   : > { %v3869_v16 = vmax.f32 %v3837_v54, 0.0  ;;  %9399 = vmatmul.mubr.msk.f32.gmra.mrb[4].mxu1 %vm272_vm0, %v11894_v20 }
 0x36f   : > { %v3868_v6 = vmax.f32 %v3836_v19, 0.0  ;;  %v9353_v18 = vpop.f32.mrb[10].mxu0  ;;  %v11906_v7 = vld [vmem:[#allocation2 + $0x70] sm:$0xff] }
 0x370   : > { %3937 = vst.msk [vmem:[#allocation2 + $0xb0] sm:$0xff] %vm272_vm0, %v3869_v16  ;;  %v3839_v63 = vadd.f32 %v9353_v18, %v11862_v48  ;;  %v3680_v56 = vpop.f32.mrb[11].mxu0  ;;  %v11900_v58 = vld [vmem:[#allocation2 + $0x68] sm:$0xff] }
 0x371   : > { %3936 = vst.msk [vmem:[#allocation2 + $0xa8] sm:$0xff] %vm272_vm0, %v3868_v6  ;;  %v3838_v59 = vadd.f32 %v11862_v48, %v3680_v56  ;;  %9401 = vmatprep.mubr.msk.f32.mxu1 %vm272_vm0, %v11900_v58 }
 0x372   : > { %v3871_v55 = vmax.f32 %v3839_v63, 0.0  ;;  %9402 = vmatmul.mubr.msk.f32.gmra.mrb[6].mxu1 %vm272_vm0, %v11906_v7 }
 0x373   : > { %v3870_v57 = vmax.f32 %v3838_v59, 0.0  ;;  %v9356_v0 = vpop.f32.mrb[12].mxu0  ;;  %v11918_v5 = vld [vmem:[#allocation2 + $0x90] sm:$0xff] }
 0x374   : > { %3939 = vst.msk [vmem:[#allocation2 + $0xd0] sm:$0xff] %vm272_vm0, %v3871_v55  ;;  %v3841_v1 = vadd.f32 %v9356_v0, %v11862_v48  ;;  %v3690_v2 = vpop.f32.mrb[13].mxu0  ;;  %v11912_v3 = vld [vmem:[#allocation2 + $0x88] sm:$0xff] }
 0x375   : > { %3938 = vst.msk [vmem:[#allocation2 + $0xc8] sm:$0xff] %vm272_vm0, %v3870_v57  ;;  %v3840_v4 = vadd.f32 %v11862_v48, %v3690_v2  ;;  %9404 = vmatprep.mubr.msk.f32.mxu1 %vm272_vm0, %v11912_v3 }
 0x376   : > { %v3873_v8 = vmax.f32 %v3841_v1, 0.0  ;;  %9405 = vmatmul.mubr.msk.f32.gmra.mrb[8].mxu1 %vm272_vm0, %v11918_v5 }
 0x377   : > { %v3872_v12 = vmax.f32 %v3840_v4, 0.0  ;;  %v9359_v15 = vpop.f32.mrb[14].mxu0  ;;  %v11930_v10 = vld [vmem:[#allocation2 + $0xb0] sm:$0xff] }
 0x378   : > { %3941 = vst.msk [vmem:[#allocation2 + $0xf0] sm:$0xff] %vm272_vm0, %v3873_v8  ;;  %v3843_v9 = vadd.f32 %v9359_v15, %v11862_v48  ;;  %v3700_v22 = vpop.f32.mrb[15].mxu0  ;;  %v11924_v13 = vld [vmem:[#allocation2 + $0xa8] sm:$0xff] }
 0x379   : > { %3940 = vst.msk [vmem:[#allocation2 + $0xe8] sm:$0xff] %vm272_vm0, %v3872_v12  ;;  %v3842_v24 = vadd.f32 %v11862_v48, %v3700_v22  ;;  %9407 = vmatprep.mubr.msk.f32.mxu1 %vm272_vm0, %v11924_v13 }
 0x37a   : > { %v3875_v11 = vmax.f32 %v3843_v9, 0.0  ;;  %9408 = vmatmul.mubr.msk.f32.gmra.mrb[10].mxu1 %vm272_vm0, %v11930_v10 }
 0x37b   : > { %v3874_v21 = vmax.f32 %v3842_v24, 0.0  ;;  %v9362_v35 = vpop.f32.mrb[16].mxu0  ;;  %v11942_v60 = vld [vmem:[#allocation2 + $0xd0] sm:$0xff] }
 0x37c   : > { %3943 = vst.msk [vmem:[#allocation2 + $0x110] sm:$0xff] %vm272_vm0, %v3875_v11  ;;  %v3845_v38 = vadd.f32 %v9362_v35, %v11862_v48  ;;  %v3710_v39 = vpop.f32.mrb[17].mxu0  ;;  %v11936_v40 = vld [vmem:[#allocation2 + $0xc8] sm:$0xff] }
 0x37d   : > { %3942 = vst.msk [vmem:[#allocation2 + $0x108] sm:$0xff] %vm272_vm0, %v3874_v21  ;;  %v3844_v51 = vadd.f32 %v11862_v48, %v3710_v39  ;;  %9410 = vmatprep.mubr.msk.f32.mxu1 %vm272_vm0, %v11936_v40 }
 0x37e   : > { %v3877_v61 = vmax.f32 %v3845_v38, 0.0  ;;  %9411 = vmatmul.mubr.msk.f32.gmra.mrb[12].mxu1 %vm272_vm0, %v11942_v60 }
 0x37f   : > { %v3876_v62 = vmax.f32 %v3844_v51, 0.0  ;;  %v9365_v23 = vpop.f32.mrb[18].mxu0  ;;  %v11954_v29 = vld [vmem:[#allocation2 + $0xf0] sm:$0xff] }
 0x380   : > { %3945 = vst.msk [vmem:[#allocation2 + $0x130] sm:$0xff] %vm272_vm0, %v3877_v61  ;;  %v3847_v25 = vadd.f32 %v9365_v23, %v11862_v48  ;;  %v3720_v26 = vpop.f32.mrb[19].mxu0  ;;  %v11948_v27 = vld [vmem:[#allocation2 + $0xe8] sm:$0xff] }
 0x381   : > { %3944 = vst.msk [vmem:[#allocation2 + $0x128] sm:$0xff] %vm272_vm0, %v3876_v62  ;;  %v3846_v28 = vadd.f32 %v11862_v48, %v3720_v26  ;;  %9413 = vmatprep.mubr.msk.f32.mxu1 %vm272_vm0, %v11948_v27 }
 0x382   : > { %v3879_v30 = vmax.f32 %v3847_v25, 0.0  ;;  %9414 = vmatmul.mubr.msk.f32.gmra.mrb[14].mxu1 %vm272_vm0, %v11954_v29 }
 0x383   : > { %v3878_v31 = vmax.f32 %v3846_v28, 0.0  ;;  %v9368_v32 = vpop.f32.mrb[20].mxu0  ;;  %v11966_v41 = vld [vmem:[#allocation2 + $0x110] sm:$0xff] }
 0x384   : > { %3947 = vst.msk [vmem:[#allocation2 + $0x150] sm:$0xff] %vm272_vm0, %v3879_v30  ;;  %v3849_v33 = vadd.f32 %v9368_v32, %v11862_v48  ;;  %v3730_v34 = vpop.f32.mrb[21].mxu0  ;;  %v11960_v36 = vld [vmem:[#allocation2 + $0x108] sm:$0xff] }
 0x385   : > { %3946 = vst.msk [vmem:[#allocation2 + $0x148] sm:$0xff] %vm272_vm0, %v3878_v31  ;;  %v3848_v37 = vadd.f32 %v11862_v48, %v3730_v34  ;;  %9416 = vmatprep.mubr.msk.f32.mxu1 %vm272_vm0, %v11960_v36  ;;  %v3960_v34 = vld [vmem:[#allocation2 + $0x7] sm:$0xff] }
 0x386   : > { %v3881_v42 = vmax.f32 %v3849_v33, 0.0  ;;  %9417 = vmatmul.mubr.msk.f32.gmra.mrb[16].mxu1 %vm272_vm0, %v11966_v41 }
 0x387   : > { %v3880_v44 = vmax.f32 %v3848_v37, 0.0  ;;  %v9371_v45 = vpop.f32.mrb[22].mxu0  ;;  %v11978_v54 = vld [vmem:[#allocation2 + $0x130] sm:$0xff] }
 0x388   : > { %3949 = vst.msk [vmem:[#allocation2 + $0x170] sm:$0xff] %vm272_vm0, %v3881_v42  ;;  %v3851_v47 = vadd.f32 %v9371_v45, %v11862_v48  ;;  %v3740_v50 = vpop.f32.mrb[23].mxu0  ;;  %v11972_v52 = vld [vmem:[#allocation2 + $0x128] sm:$0xff]  ;;  %v3902_v42 = vld [vmem:[#allocation8 + $0x50] sm:$0xff] }
 0x389   : > { %3948 = vst.msk [vmem:[#allocation2 + $0x168] sm:$0xff] %vm272_vm0, %v3880_v44  ;;  %v3850_v53 = vadd.f32 %v11862_v48, %v3740_v50  ;;  %9419 = vmatprep.mubr.msk.f32.mxu1 %vm272_vm0, %v11972_v52  ;;  %v3903_v44 = vld [vmem:[#allocation8 + $0x58] sm:$0xff]  ;;  %v3961_v45 = vld [vmem:[#allocation2 + $0xf] sm:$0xff]  ;;  %v3904_v50 = vld [vmem:[#allocation8 + $0x60] sm:$0xff] }
 0x38a   : > { %v3883_v14 = vmax.f32 %v3851_v47, 0.0  ;;  %9420 = vmatmul.mubr.msk.f32.gmra.mrb[18].mxu1 %vm272_vm0, %v11978_v54  ;;  %v9980_v47 = vpack.c.bf16 %v3903_v44, %v3902_v42 }
 0x38b   : > { %v3882_v19 = vmax.f32 %v3850_v53, 0.0  ;;  %v9374_v16 = vpop.f32.mrb[24].mxu0  ;;  %v11990_v59 = vld [vmem:[#allocation2 + $0x150] sm:$0xff]  ;;  %v3905_v53 = vld [vmem:[#allocation8 + $0x68] sm:$0xff] }
 0x38c   : > { %3951 = vst.msk [vmem:[#allocation2 + $0x190] sm:$0xff] %vm272_vm0, %v3883_v14  ;;  %v3853_v6 = vadd.f32 %v9374_v16, %v11862_v48  ;;  %v3750_v18 = vpop.f32.mrb[25].mxu0  ;;  %v11984_v63 = vld [vmem:[#allocation2 + $0x148] sm:$0xff] }
 0x38d   : > { %3950 = vst.msk [vmem:[#allocation2 + $0x188] sm:$0xff] %vm272_vm0, %v3882_v19  ;;  %v3852_v56 = vadd.f32 %v11862_v48, %v3750_v18  ;;  %9422 = vmatprep.mubr.msk.f32.mxu1 %vm272_vm0, %v11984_v63  ;;  %v12050_v14 = vld [vmem:[#allocation2 + $0x27] sm:$0xff]  ;;  %v12055_v19 = vpack.c.bf16 %v3905_v53, %v3904_v50  ;;  %v12057_v16 = vld [vmem:[#allocation2 + $0x2f] sm:$0xff]  ;;  %v3907_v53 = vld [vmem:[#allocation8 + $0x78] sm:$0xff] }
 0x38e   : > { %v3885_v55 = vmax.f32 %v3853_v6, 0.0  ;;  %9423 = vmatmul.mubr.msk.f32.gmra.mrb[20].mxu1 %vm272_vm0, %v11990_v59  ;;  %v12061_v6 = vld [vmem:[#allocation2 + $0x47] sm:$0xff]  ;;  %v12066_v18 = vld [vmem:[#allocation2 + $0x4f] sm:$0xff] }
 0x38f   : > { %v3884_v57 = vmax.f32 %v3852_v56, 0.0  ;;  %v9377_v0 = vpop.f32.mrb[26].mxu0  ;;  %v12002_v12 = vld [vmem:[#allocation2 + $0x170] sm:$0xff] }
 0x390   : > { %3953 = vst.msk [vmem:[#allocation2 + $0x1b0] sm:$0xff] %vm272_vm0, %v3885_v55  ;;  %v3855_v1 = vadd.f32 %v9377_v0, %v11862_v48  ;;  %v3760_v2 = vpop.f32.mrb[27].mxu0  ;;  %v11996_v4 = vld [vmem:[#allocation2 + $0x168] sm:$0xff]  ;;  %v3906_v50 = vld [vmem:[#allocation8 + $0x70] sm:$0xff] }
 0x391   : > { %3952 = vst.msk [vmem:[#allocation2 + $0x1a8] sm:$0xff] %vm272_vm0, %v3884_v57  ;;  %v3854_v8 = vadd.f32 %v11862_v48, %v3760_v2  ;;  %9425 = vmatprep.mubr.msk.f32.mxu1 %vm272_vm0, %v11996_v4  ;;  %v12074_v56 = vld [vmem:[#allocation2 + $0x6f] sm:$0xff]  ;;  %v12078_v55 = vld [vmem:[#allocation2 + $0x87] sm:$0xff] }
 0x392   : > { %v3887_v15 = vmax.f32 %v3855_v1, 0.0  ;;  %9426 = vmatmul.mubr.msk.f32.gmra.mrb[22].mxu1 %vm272_vm0, %v12002_v12  ;;  %v12082_v57 = vld [vmem:[#allocation2 + $0x8f] sm:$0xff]  ;;  %v12086_v0 = vld [vmem:[#allocation2 + $0xa7] sm:$0xff] }
 0x393   : > { %v3886_v9 = vmax.f32 %v3854_v8, 0.0  ;;  %v9380_v22 = vpop.f32.mrb[28].mxu0  ;;  %v12014_v38 = vld [vmem:[#allocation2 + $0x190] sm:$0xff]  ;;  %v12094_v2 = vld [vmem:[#allocation2 + $0xc7] sm:$0xff] }
 0x394   : > { %3955 = vst.msk [vmem:[#allocation2 + $0x1d0] sm:$0xff] %vm272_vm0, %v3887_v15  ;;  %v3857_v24 = vadd.f32 %v9380_v22, %v11862_v48  ;;  %v3770_v11 = vpop.f32.mrb[29].mxu0  ;;  %v12008_v21 = vld [vmem:[#allocation2 + $0x188] sm:$0xff]  ;;  %13076 = vst [vmem:[#allocation14_spill] sm:$0xff] %v12014_v38 }
 0x395   : > { %3954 = vst.msk [vmem:[#allocation2 + $0x1c8] sm:$0xff] %vm272_vm0, %v3886_v9  ;;  %v3856_v35 = vadd.f32 %v11862_v48, %v3770_v11  ;;  %9428 = vmatprep.mubr.msk.f32.mxu1 %vm272_vm0, %v12008_v21  ;;  %v12090_v1 = vld [vmem:[#allocation2 + $0xaf] sm:$0xff]  ;;  %v12102_v15 = vld [vmem:[#allocation2 + $0xe7] sm:$0xff] }
 0x396   : > { %v3889_v39 = vmax.f32 %v3857_v24, 0.0  ;;  %9429 = vmatmul.mubr.msk.f32.gmra.mrb[24].mxu1 %vm272_vm0, %v12014_v38  ;;  %v12098_v8 = vld [vmem:[#allocation2 + $0xcf] sm:$0xff]  ;;  %v12110_v22 = vld [vmem:[#allocation2 + $0x107] sm:$0xff] }
 0x397   : > { %v3888_v51 = vmax.f32 %v3856_v35, 0.0  ;;  %v9383_v61 = vpop.f32.mrb[30].mxu0  ;;  %v12026_v28 = vld [vmem:[#allocation2 + $0x1b0] sm:$0xff]  ;;  %v12118_v11 = vld [vmem:[#allocation2 + $0x127] sm:$0xff] }
 0x398   : > { %3957 = vst.msk [vmem:[#allocation2 + $0x1f0] sm:$0xff] %vm272_vm0, %v3889_v39  ;;  %v3859_v62 = vadd.f32 %v9383_v61, %v11862_v48  ;;  %v3780_v23 = vpop.f32.mrb[31].mxu0  ;;  %v12020_v25 = vld [vmem:[#allocation2 + $0x1a8] sm:$0xff]  ;;  %13078 = vst [vmem:[#allocation16_spill] sm:$0xff] %v12026_v28  ;;  %v12183_v38 = vld [vmem:[#allocation2 + $0x31] sm:$0xff] }
 0x399   : > { %13077 = vst [vmem:[#allocation15_spill] sm:$0xff] %v12020_v25  ;;  %3956 = vst.msk [vmem:[#allocation2 + $0x1e8] sm:$0xff] %vm272_vm0, %v3888_v51  ;;  %v3858_v26 = vadd.f32 %v11862_v48, %v3780_v23  ;;  %9431 = vmatprep.mubr.msk.f32.mxu1 %vm272_vm0, %v12020_v25  ;;  %v12106_v9 = vld [vmem:[#allocation2 + $0xef] sm:$0xff]  ;;  %v12126_v39 = vld [vmem:[#allocation2 + $0x147] sm:$0xff] }
 0x39a   : > { %v3891_v30 = vmax.f32 %v3859_v62, 0.0  ;;  %9432 = vmatmul.mubr.msk.f32.gmra.mrb[26].mxu1 %vm272_vm0, %v12026_v28  ;;  %v12114_v24 = vld [vmem:[#allocation2 + $0x10f] sm:$0xff]  ;;  %v12134_v61 = vld [vmem:[#allocation2 + $0x167] sm:$0xff] }
 0x39b   : > { %v3890_v31 = vmax.f32 %v3858_v26, 0.0  ;;  %v12036_v48 = vld [vmem:[#allocation2 + $0x1d0] sm:$0xff]  ;;  %v12142_v23 = vld [vmem:[#allocation2 + $0x187] sm:$0xff] }
 0x39c   : > { %3959 = vst.msk [vmem:[#allocation2 + $0x210] sm:$0xff] %vm272_vm0, %v3891_v30  ;;  %v12031_v32 = vld [vmem:[#allocation2 + $0x1c8] sm:$0xff]  ;;  %13080 = vst [vmem:[#allocation18_spill] sm:$0xff] %v12036_v48 }
 0x39d   : > { %13079 = vst [vmem:[#allocation17_spill] sm:$0xff] %v12031_v32  ;;  %3958 = vst.msk [vmem:[#allocation2 + $0x208] sm:$0xff] %vm272_vm0, %v3890_v31  ;;  %9434 = vmatprep.mubr.msk.f32.mxu1 %vm272_vm0, %v12031_v32  ;;  %v12122_v35 = vld [vmem:[#allocation2 + $0x12f] sm:$0xff]  ;;  %v12150_v30 = vld [vmem:[#allocation2 + $0x1a7] sm:$0xff] }
 0x39e   : > { %9435 = vmatmul.mubr.msk.f32.gmra.mrb[28].mxu1 %vm272_vm0, %v12036_v48  ;;  %v12130_v51 = vld [vmem:[#allocation2 + $0x14f] sm:$0xff]  ;;  %v3908_v48 = vld [vmem:[#allocation8 + $0x80] sm:$0xff] }
 0x39f   : > { %v12044_v37 = vld [vmem:[#allocation2 + $0x1f0] sm:$0xff]  ;;  %v3909_v32 = vld [vmem:[#allocation8 + $0x88] sm:$0xff] }
 0x3a0   : > { %v12040_v33 = vld [vmem:[#allocation2 + $0x1e8] sm:$0xff]  ;;  %13082 = vst [vmem:[#allocation20_spill] sm:$0xff] %v12044_v37  ;;  %v12181_v25 = vpack.c.bf16 %v3909_v32, %v3908_v48  ;;  %v12200_v48 = vld [vmem:[#allocation2 + $0x71] sm:$0xff] }
 0x3a1   : > { %13081 = vst [vmem:[#allocation19_spill] sm:$0xff] %v12040_v33  ;;  %9437 = vmatprep.mubr.msk.f32.mxu1 %vm272_vm0, %v12040_v33  ;;  %v12138_v62 = vld [vmem:[#allocation2 + $0x16f] sm:$0xff]  ;;  %v12166_v44 = vld [vmem:[#allocation2 + $0x1e7] sm:$0xff]  ;;  %v9988_v33 = vpack.c.bf16 %v3907_v53, %v3906_v50  ;;  %13086 = vst [vmem:[#allocation24_spill] sm:$0xff] %v12200_v48 }
 0x3a2   : > { %9438 = vmatmul.mubr.msk.f32.gmra.mrb[30].mxu1 %vm272_vm0, %v12044_v37  ;;  %v12146_v26 = vld [vmem:[#allocation2 + $0x18f] sm:$0xff] }
 0x3a3   : > { %9448 = vmatprep.mubr.msk.f32.mxu1 %vm272_vm0, %v3960_v34  ;;  %v12154_v31 = vld [vmem:[#allocation2 + $0x1af] sm:$0xff]  ;;  %v12158_v34 = vld [vmem:[#allocation2 + $0x1c7] sm:$0xff] }
 0x3a4   : > { %v12162_v42 = vld [vmem:[#allocation2 + $0x1cf] sm:$0xff] }
 0x3a5   : > { %v4667_v37 = vld [vmem:[#allocation2 + $0x11] sm:$0xff]  ;;  %v12176_v28 = vld [vmem:[#allocation2 + $0x29] sm:$0xff] }
 0x3a6   : > { %9449 = vmatmul.mubr.msk.f32.vlgmr.msra.gmra.mrb[0].mxu1 %vm272_vm0, %v3961_v45  ;;  %v4666_v45 = vld [vmem:[#allocation2 + $0x9] sm:$0xff]  ;;  %v12216_v53 = vld [vmem:[#allocation2 + $0xb1] sm:$0xff] }
 0x3a7   : > { %9451 = vmatprep.mubr.msk.f32.mxu1 %vm272_vm0, %v12050_v14  ;;  %9979 = vmatpush3.bf16.msra.mxu1 %v11856_v43  ;;  %v12070_v43 = vld [vmem:[#allocation2 + $0x67] sm:$0xff]  ;;  %13090 = vst [vmem:[#allocation28_spill] sm:$0xff] %v12216_v53 }
 0x3a8   : > { %9981 = vmatprep.subr.bf16.mxu1 %v9980_v47  ;;  %v12196_v32 = vld [vmem:[#allocation2 + $0x69] sm:$0xff] }
 0x3a9   : > { %13085 = vst [vmem:[#allocation23_spill] sm:$0xff] %v12196_v32  ;;  %v12212_v50 = vld [vmem:[#allocation2 + $0xa9] sm:$0xff] }
 0x3aa   : > { %9452 = vmatmul.mubr.msk.f32.gmra.mrb[2].mxu1 %vm272_vm0, %v12057_v16  ;;  %13089 = vst [vmem:[#allocation27_spill] sm:$0xff] %v12212_v50 }
 0x3ab   : > { %9454 = vmatprep.mubr.msk.f32.mxu1 %vm272_vm0, %v12061_v6  ;;  %9983 = vmatpush3.bf16.msra.mxu1 %v9980_v47  ;;  %v12170_v47 = vld [vmem:[#allocation2 + $0x1ef] sm:$0xff] }
 0x3ac   : > { %9985 = vmatprep.subr.bf16.mxu1 %v12055_v19 }
 0x3ae   : > { %9455 = vmatmul.mubr.msk.f32.gmra.mrb[4].mxu1 %vm272_vm0, %v12066_v18 }
 0x3af   : > { %9457 = vmatprep.mubr.msk.f32.mxu1 %vm272_vm0, %v12070_v43 }
 0x3b2   : > { %9458 = vmatmul.mubr.msk.f32.gmra.mrb[6].mxu1 %vm272_vm0, %v12074_v56 }
 0x3b3   : > { %9460 = vmatprep.mubr.msk.f32.mxu1 %vm272_vm0, %v12078_v55 }
 0x3b6   : > { %9461 = vmatmul.mubr.msk.f32.gmra.mrb[8].mxu1 %vm272_vm0, %v12082_v57 }
 0x3b7   : > { %9463 = vmatprep.mubr.msk.f32.mxu1 %vm272_vm0, %v12086_v0 }
 0x3ba   : > { %9464 = vmatmul.mubr.msk.f32.gmra.mrb[10].mxu1 %vm272_vm0, %v12090_v1 }
 0x3bb   : > { %9466 = vmatprep.mubr.msk.f32.mxu1 %vm272_vm0, %v12094_v2 }
 0x3be   : > { %9467 = vmatmul.mubr.msk.f32.gmra.mrb[12].mxu1 %vm272_vm0, %v12098_v8 }
 0x3bf   : > { %9469 = vmatprep.mubr.msk.f32.mxu1 %vm272_vm0, %v12102_v15 }
 0x3c2   : > { %9470 = vmatmul.mubr.msk.f32.gmra.mrb[14].mxu1 %vm272_vm0, %v12106_v9 }
 0x3c3   : > { %9472 = vmatprep.mubr.msk.f32.mxu1 %vm272_vm0, %v12110_v22 }
 0x3c6   : > { %9473 = vmatmul.mubr.msk.f32.gmra.mrb[16].mxu1 %vm272_vm0, %v12114_v24 }
 0x3c7   : > { %9475 = vmatprep.mubr.msk.f32.mxu1 %vm272_vm0, %v12118_v11 }
 0x3ca   : > { %9476 = vmatmul.mubr.msk.f32.gmra.mrb[18].mxu1 %vm272_vm0, %v12122_v35 }
 0x3cb   : > { %9478 = vmatprep.mubr.msk.f32.mxu1 %vm272_vm0, %v12126_v39 }
 0x3ce   : > { %9479 = vmatmul.mubr.msk.f32.gmra.mrb[20].mxu1 %vm272_vm0, %v12130_v51 }
 0x3cf   : > { %9481 = vmatprep.mubr.msk.f32.mxu1 %vm272_vm0, %v12134_v61 }
 0x3d2   : > { %9482 = vmatmul.mubr.msk.f32.gmra.mrb[22].mxu1 %vm272_vm0, %v12138_v62 }
 0x3d3   : > { %9484 = vmatprep.mubr.msk.f32.mxu1 %vm272_vm0, %v12142_v23 }
 0x3d6   : > { %9485 = vmatmul.mubr.msk.f32.gmra.mrb[24].mxu1 %vm272_vm0, %v12146_v26 }
 0x3d7   : > { %9487 = vmatprep.mubr.msk.f32.mxu1 %vm272_vm0, %v12150_v30 }
 0x3da   : > { %9488 = vmatmul.mubr.msk.f32.gmra.mrb[26].mxu1 %vm272_vm0, %v12154_v31 }
 0x3db   : > { %9490 = vmatprep.mubr.msk.f32.mxu1 %vm272_vm0, %v12158_v34 }
 0x3de   : > { %9491 = vmatmul.mubr.msk.f32.gmra.mrb[28].mxu1 %vm272_vm0, %v12162_v42 }
 0x3df   : > { %9493 = vmatprep.mubr.msk.f32.mxu1 %vm272_vm0, %v12166_v44 }
 0x3e2   : > { %9494 = vmatmul.mubr.msk.f32.gmra.mrb[30].mxu1 %vm272_vm0, %v12170_v47 }
 0x3e3   : > { %9504 = vmatprep.mubr.msk.f32.mxu1 %vm272_vm0, %v4666_v45  ;;  %v12187_v45 = vld [vmem:[#allocation2 + $0x49] sm:$0xff] }
 0x3e4   : > { %13083 = vst [vmem:[#allocation21_spill] sm:$0xff] %v12187_v45 }
 0x3e6   : > { %9505 = vmatmul.mubr.msk.f32.vlgmr.msra.gmra.mrb[0].mxu1 %vm272_vm0, %v4667_v37  ;;  %v12192_v37 = vld [vmem:[#allocation2 + $0x51] sm:$0xff] }
 0x3e7   : > { %9507 = vmatprep.mubr.msk.f32.mxu1 %vm272_vm0, %v12176_v28  ;;  %9987 = vmatpush3.bf16.msra.mxu1 %v12055_v19  ;;  %13084 = vst [vmem:[#allocation22_spill] sm:$0xff] %v12192_v37  ;;  %v12204_v19 = vld [vmem:[#allocation2 + $0x89] sm:$0xff] }
 0x3e8   : > { %9989 = vmatprep.subr.bf16.mxu1 %v9988_v33  ;;  %13087 = vst [vmem:[#allocation25_spill] sm:$0xff] %v12204_v19 }
 0x3ea   : > { %9508 = vmatmul.mubr.msk.f32.gmra.mrb[2].mxu1 %vm272_vm0, %v12183_v38 }
 0x3eb   : > { %9510 = vmatprep.mubr.msk.f32.mxu1 %vm272_vm0, %v12187_v45  ;;  %9991 = vmatpush3.bf16.msra.mxu1 %v9988_v33  ;;  %v12208_v33 = vld [vmem:[#allocation2 + $0x91] sm:$0xff]  ;;  %v3913_v45 = vld [vmem:[#allocation8 + $0xa8] sm:$0xff] }
 0x3ec   : > { %9993 = vmatprep.subr.bf16.mxu1 %v12181_v25  ;;  %13088 = vst [vmem:[#allocation26_spill] sm:$0xff] %v12208_v33 }
 0x3ee   : > { %9511 = vmatmul.mubr.msk.f32.gmra.mrb[4].mxu1 %vm272_vm0, %v12192_v37  ;;  %v3911_v37 = vld [vmem:[#allocation8 + $0x98] sm:$0xff] }
 0x3ef   : > { %9513 = vmatprep.mubr.msk.f32.mxu1 %vm272_vm0, %v12196_v32  ;;  %v3910_v32 = vld [vmem:[#allocation8 + $0x90] sm:$0xff] }
 0x3f2   : > { %9514 = vmatmul.mubr.msk.f32.gmra.mrb[6].mxu1 %vm272_vm0, %v12200_v48  ;;  %v12220_v48 = vld [vmem:[#allocation2 + $0xc9] sm:$0xff] }
 0x3f3   : > { %9516 = vmatprep.mubr.msk.f32.mxu1 %vm272_vm0, %v12204_v19  ;;  %13091 = vst [vmem:[#allocation29_spill] sm:$0xff] %v12220_v48  ;;  %v12224_v19 = vld [vmem:[#allocation2 + $0xd1] sm:$0xff] }
 0x3f4   : > { %13092 = vst [vmem:[#allocation30_spill] sm:$0xff] %v12224_v19 }
 0x3f6   : > { %9517 = vmatmul.mubr.msk.f32.gmra.mrb[8].mxu1 %vm272_vm0, %v12208_v33  ;;  %v12228_v33 = vld [vmem:[#allocation2 + $0xe9] sm:$0xff] }
 0x3f7   : > { %9519 = vmatprep.mubr.msk.f32.mxu1 %vm272_vm0, %v12212_v50  ;;  %13093 = vst [vmem:[#allocation31_spill] sm:$0xff] %v12228_v33  ;;  %v12232_v50 = vld [vmem:[#allocation2 + $0xf1] sm:$0xff] }
 0x3f8   : > { %13094 = vst [vmem:[#allocation32_spill] sm:$0xff] %v12232_v50 }
 0x3fa   : > { %9520 = vmatmul.mubr.msk.f32.gmra.mrb[10].mxu1 %vm272_vm0, %v12216_v53  ;;  %v12236_v53 = vld [vmem:[#allocation2 + $0x109] sm:$0xff] }
 0x3fb   : > { %9522 = vmatprep.mubr.msk.f32.mxu1 %vm272_vm0, %v12220_v48  ;;  %13095 = vst [vmem:[#allocation33_spill] sm:$0xff] %v12236_v53  ;;  %v12240_v48 = vld [vmem:[#allocation2 + $0x111] sm:$0xff] }
 0x3fc   : > { %13096 = vst [vmem:[#allocation34_spill] sm:$0xff] %v12240_v48 }
 0x3fe   : > { %9523 = vmatmul.mubr.msk.f32.gmra.mrb[12].mxu1 %vm272_vm0, %v12224_v19  ;;  %v12244_v19 = vld [vmem:[#allocation2 + $0x129] sm:$0xff] }
 0x3ff   : > { %9525 = vmatprep.mubr.msk.f32.mxu1 %vm272_vm0, %v12228_v33  ;;  %13097 = vst [vmem:[#allocation35_spill] sm:$0xff] %v12244_v19  ;;  %v12248_v33 = vld [vmem:[#allocation2 + $0x131] sm:$0xff] }
 0x400   : > { %13098 = vst [vmem:[#allocation36_spill] sm:$0xff] %v12248_v33 }
 0x402   : > { %9526 = vmatmul.mubr.msk.f32.gmra.mrb[14].mxu1 %vm272_vm0, %v12232_v50  ;;  %v12252_v50 = vld [vmem:[#allocation2 + $0x149] sm:$0xff] }
 0x403   : > { %9528 = vmatprep.mubr.msk.f32.mxu1 %vm272_vm0, %v12236_v53  ;;  %13099 = vst [vmem:[#allocation37_spill] sm:$0xff] %v12252_v50  ;;  %v12256_v53 = vld [vmem:[#allocation2 + $0x151] sm:$0xff] }
 0x404   : > { %13100 = vst [vmem:[#allocation38_spill] sm:$0xff] %v12256_v53 }
 0x406   : > { %9529 = vmatmul.mubr.msk.f32.gmra.mrb[16].mxu1 %vm272_vm0, %v12240_v48  ;;  %v12260_v48 = vld [vmem:[#allocation2 + $0x169] sm:$0xff] }
 0x407   : > { %9531 = vmatprep.mubr.msk.f32.mxu1 %vm272_vm0, %v12244_v19  ;;  %13101 = vst [vmem:[#allocation39_spill] sm:$0xff] %v12260_v48  ;;  %v12264_v19 = vld [vmem:[#allocation2 + $0x171] sm:$0xff] }
 0x408   : > { %13102 = vst [vmem:[#allocation40_spill] sm:$0xff] %v12264_v19 }
 0x40a   : > { %9532 = vmatmul.mubr.msk.f32.gmra.mrb[18].mxu1 %vm272_vm0, %v12248_v33  ;;  %v12268_v33 = vld [vmem:[#allocation2 + $0x189] sm:$0xff] }
 0x40b   : > { %9534 = vmatprep.mubr.msk.f32.mxu1 %vm272_vm0, %v12252_v50  ;;  %13103 = vst [vmem:[#allocation41_spill] sm:$0xff] %v12268_v33  ;;  %v12272_v50 = vld [vmem:[#allocation2 + $0x191] sm:$0xff] }
 0x40c   : > { %13104 = vst [vmem:[#allocation42_spill] sm:$0xff] %v12272_v50 }
 0x40e   : > { %9535 = vmatmul.mubr.msk.f32.gmra.mrb[20].mxu1 %vm272_vm0, %v12256_v53  ;;  %v12276_v53 = vld [vmem:[#allocation2 + $0x1a9] sm:$0xff] }
 0x40f   : > { %9537 = vmatprep.mubr.msk.f32.mxu1 %vm272_vm0, %v12260_v48  ;;  %13105 = vst [vmem:[#allocation43_spill] sm:$0xff] %v12276_v53  ;;  %v12280_v48 = vld [vmem:[#allocation2 + $0x1b1] sm:$0xff] }
 0x410   : > { %13106 = vst [vmem:[#allocation44_spill] sm:$0xff] %v12280_v48 }
 0x412   : > { %9538 = vmatmul.mubr.msk.f32.gmra.mrb[22].mxu1 %vm272_vm0, %v12264_v19  ;;  %v12284_v19 = vld [vmem:[#allocation2 + $0x1c9] sm:$0xff] }
 0x413   : > { %9540 = vmatprep.mubr.msk.f32.mxu1 %vm272_vm0, %v12268_v33  ;;  %13107 = vst [vmem:[#allocation45_spill] sm:$0xff] %v12284_v19  ;;  %v12288_v33 = vld [vmem:[#allocation2 + $0x1d1] sm:$0xff] }
 0x414   : > { %13108 = vst [vmem:[#allocation46_spill] sm:$0xff] %v12288_v33 }
 0x416   : > { %9541 = vmatmul.mubr.msk.f32.gmra.mrb[24].mxu1 %vm272_vm0, %v12272_v50  ;;  %v12292_v50 = vld [vmem:[#allocation2 + $0x1e9] sm:$0xff] }
 0x417   : > { %9543 = vmatprep.mubr.msk.f32.mxu1 %vm272_vm0, %v12276_v53  ;;  %13109 = vst [vmem:[#allocation13_spill] sm:$0xff] %v12292_v50  ;;  %v12296_v53 = vld [vmem:[#allocation2 + $0x1f1] sm:$0xff] }
 0x41a   : > { %9544 = vmatmul.mubr.msk.f32.gmra.mrb[26].mxu1 %vm272_vm0, %v12280_v48  ;;  %v3912_v48 = vld [vmem:[#allocation8 + $0xa0] sm:$0xff] }
 0x41b   : > { %9546 = vmatprep.mubr.msk.f32.mxu1 %vm272_vm0, %v12284_v19  ;;  %v9996_v19 = vpack.c.bf16 %v3911_v37, %v3910_v32  ;;  %v3916_v32 = vld [vmem:[#allocation8 + $0xc0] sm:$0xff] }
 0x41e   : > { %9547 = vmatmul.mubr.msk.f32.gmra.mrb[28].mxu1 %vm272_vm0, %v12288_v33 }
 0x41f   : > { %9549 = vmatprep.mubr.msk.f32.mxu1 %vm272_vm0, %v12292_v50  ;;  %v10000_v50 = vpack.c.bf16 %v3913_v45, %v3912_v48  ;;  %v3915_v45 = vld [vmem:[#allocation8 + $0xb8] sm:$0xff]  ;;  %v3917_v48 = vld [vmem:[#allocation8 + $0xc8] sm:$0xff] }
 0x422   : > { %9550 = vmatmul.mubr.msk.f32.gmra.mrb[30].mxu1 %vm272_vm0, %v12296_v53 }
 0x423   : > { %9560 = vmatprep.mubr.msk.f32.mxu1 %vm272_vm0, %v12050_v14  ;;  %v12365_v14 = vld [vmem:[#allocation2 + $0x20f] sm:$0xff] }
 0x426   : > { %9561 = vmatmul.mubr.msk.f32.vlgmr.msra.gmra.mrb[0].mxu1 %vm272_vm0, %v12057_v16  ;;  %v3914_v16 = vld [vmem:[#allocation8 + $0xb0] sm:$0xff] }
 0x427   : > { %9563 = vmatprep.mubr.msk.f32.mxu1 %vm272_vm0, %v12061_v6  ;;  %9995 = vmatpush3.bf16.msra.mxu1 %v12181_v25  ;;  %v12361_v25 = vld [vmem:[#allocation2 + $0x207] sm:$0xff]  ;;  %v10004_v37 = vpack.c.bf16 %v3915_v45, %v3914_v16  ;;  %v13128_v16 = vld [vmem:[#allocation32_spill] sm:$0xff] }
 0x428   : > { %9997 = vmatprep.subr.bf16.mxu1 %v9996_v19  ;;  %v13129_v45 = vld [vmem:[#allocation33_spill] sm:$0xff] }
 0x42a   : > { %9564 = vmatmul.mubr.msk.f32.gmra.mrb[2].mxu1 %vm272_vm0, %v12066_v18 }
 0x42b   : > { %9566 = vmatprep.mubr.msk.f32.mxu1 %vm272_vm0, %v12070_v43  ;;  %9999 = vmatpush3.bf16.msra.mxu1 %v9996_v19  ;;  %v10008_v19 = vpack.c.bf16 %v3917_v48, %v3916_v32  ;;  %v13131_v32 = vld [vmem:[#allocation35_spill] sm:$0xff]  ;;  %v13132_v48 = vld [vmem:[#allocation36_spill] sm:$0xff] }
 0x42c   : > { %10001 = vmatprep.subr.bf16.mxu1 %v10000_v50 }
 0x42e   : > { %9567 = vmatmul.mubr.msk.f32.gmra.mrb[4].mxu1 %vm272_vm0, %v12074_v56 }
 0x42f   : > { %9569 = vmatprep.mubr.msk.f32.mxu1 %vm272_vm0, %v12078_v55 }
 0x432   : > { %9570 = vmatmul.mubr.msk.f32.gmra.mrb[6].mxu1 %vm272_vm0, %v12082_v57 }
 0x433   : > { %9572 = vmatprep.mubr.msk.f32.mxu1 %vm272_vm0, %v12086_v0 }
 0x436   : > { %9573 = vmatmul.mubr.msk.f32.gmra.mrb[8].mxu1 %vm272_vm0, %v12090_v1 }
 0x437   : > { %9575 = vmatprep.mubr.msk.f32.mxu1 %vm272_vm0, %v12094_v2 }
 0x43a   : > { %9576 = vmatmul.mubr.msk.f32.gmra.mrb[10].mxu1 %vm272_vm0, %v12098_v8 }
 0x43b   : > { %9578 = vmatprep.mubr.msk.f32.mxu1 %vm272_vm0, %v12102_v15 }
 0x43e   : > { %9579 = vmatmul.mubr.msk.f32.gmra.mrb[12].mxu1 %vm272_vm0, %v12106_v9 }
 0x43f   : > { %9581 = vmatprep.mubr.msk.f32.mxu1 %vm272_vm0, %v12110_v22 }
 0x442   : > { %9582 = vmatmul.mubr.msk.f32.gmra.mrb[14].mxu1 %vm272_vm0, %v12114_v24 }
 0x443   : > { %9584 = vmatprep.mubr.msk.f32.mxu1 %vm272_vm0, %v12118_v11 }
 0x446   : > { %9585 = vmatmul.mubr.msk.f32.gmra.mrb[16].mxu1 %vm272_vm0, %v12122_v35 }
 0x447   : > { %9587 = vmatprep.mubr.msk.f32.mxu1 %vm272_vm0, %v12126_v39 }
 0x44a   : > { %9588 = vmatmul.mubr.msk.f32.gmra.mrb[18].mxu1 %vm272_vm0, %v12130_v51 }
 0x44b   : > { %9590 = vmatprep.mubr.msk.f32.mxu1 %vm272_vm0, %v12134_v61 }
 0x44e   : > { %9591 = vmatmul.mubr.msk.f32.gmra.mrb[20].mxu1 %vm272_vm0, %v12138_v62 }
 0x44f   : > { %9593 = vmatprep.mubr.msk.f32.mxu1 %vm272_vm0, %v12142_v23 }
 0x452   : > { %9594 = vmatmul.mubr.msk.f32.gmra.mrb[22].mxu1 %vm272_vm0, %v12146_v26 }
 0x453   : > { %9596 = vmatprep.mubr.msk.f32.mxu1 %vm272_vm0, %v12150_v30 }
 0x456   : > { %9597 = vmatmul.mubr.msk.f32.gmra.mrb[24].mxu1 %vm272_vm0, %v12154_v31 }
 0x457   : > { %9599 = vmatprep.mubr.msk.f32.mxu1 %vm272_vm0, %v12158_v34 }
 0x45a   : > { %9600 = vmatmul.mubr.msk.f32.gmra.mrb[26].mxu1 %vm272_vm0, %v12162_v42 }
 0x45b   : > { %9602 = vmatprep.mubr.msk.f32.mxu1 %vm272_vm0, %v12166_v44 }
 0x45e   : > { %9603 = vmatmul.mubr.msk.f32.gmra.mrb[28].mxu1 %vm272_vm0, %v12170_v47 }
 0x45f   : > { %9605 = vmatprep.mubr.msk.f32.mxu1 %vm272_vm0, %v12361_v25 }
 0x462   : > { %9606 = vmatmul.mubr.msk.f32.gmra.mrb[30].mxu1 %vm272_vm0, %v12365_v14 }
 0x463   : > { %9616 = vmatprep.mubr.msk.f32.mxu1 %vm272_vm0, %v11876_v46  ;;  %v13110_v46 = vld [vmem:[#allocation14_spill] sm:$0xff] }
 0x466   : > { %9617 = vmatmul.mubr.msk.f32.vlgmr.msra.gmra.mrb[0].mxu1 %vm272_vm0, %v11882_v49  ;;  %v13111_v49 = vld [vmem:[#allocation15_spill] sm:$0xff] }
 0x467   : > { %9619 = vmatprep.mubr.msk.f32.mxu1 %vm272_vm0, %v11888_v17  ;;  %10003 = vmatpush3.bf16.msra.mxu1 %v10000_v50  ;;  %v13112_v17 = vld [vmem:[#allocation16_spill] sm:$0xff]  ;;  %v13127_v50 = vld [vmem:[#allocation31_spill] sm:$0xff] }
 0x468   : > { %10005 = vmatprep.subr.bf16.mxu1 %v10004_v37 }
 0x46a   : > { %9620 = vmatmul.mubr.msk.f32.gmra.mrb[2].mxu1 %vm272_vm0, %v11894_v20  ;;  %v13113_v20 = vld [vmem:[#allocation17_spill] sm:$0xff] }
 0x46b   : > { %9622 = vmatprep.mubr.msk.f32.mxu1 %vm272_vm0, %v11900_v58  ;;  %10007 = vmatpush3.bf16.msra.mxu1 %v10004_v37  ;;  %v13114_v58 = vld [vmem:[#allocation18_spill] sm:$0xff] }
 0x46c   : > { %10009 = vmatprep.subr.bf16.mxu1 %v10008_v19  ;;  %v13130_v37 = vld [vmem:[#allocation34_spill] sm:$0xff] }
 0x46e   : > { %9623 = vmatmul.mubr.msk.f32.gmra.mrb[4].mxu1 %vm272_vm0, %v11906_v7  ;;  %v13115_v7 = vld [vmem:[#allocation19_spill] sm:$0xff] }
 0x46f   : > { %9625 = vmatprep.mubr.msk.f32.mxu1 %vm272_vm0, %v11912_v3  ;;  %v13116_v3 = vld [vmem:[#allocation20_spill] sm:$0xff] }
 0x472   : > { %9626 = vmatmul.mubr.msk.f32.gmra.mrb[6].mxu1 %vm272_vm0, %v11918_v5  ;;  %v12429_v5 = vld [vmem:[#allocation2 + $0x208] sm:$0xff] }
 0x473   : > { %9628 = vmatprep.mubr.msk.f32.mxu1 %vm272_vm0, %v11924_v13  ;;  %v12433_v13 = vld [vmem:[#allocation2 + $0x210] sm:$0xff] }
 0x476   : > { %9629 = vmatmul.mubr.msk.f32.gmra.mrb[8].mxu1 %vm272_vm0, %v11930_v10  ;;  %v3918_v10 = vld [vmem:[#allocation8 + $0xd0] sm:$0xff] }
 0x477   : > { %9631 = vmatprep.mubr.msk.f32.mxu1 %vm272_vm0, %v11936_v40  ;;  %v3919_v40 = vld [vmem:[#allocation8 + $0xd8] sm:$0xff] }
 0x47a   : > { %9632 = vmatmul.mubr.msk.f32.gmra.mrb[10].mxu1 %vm272_vm0, %v11942_v60  ;;  %v10012_v60 = vpack.c.bf16 %v3919_v40, %v3918_v10  ;;  %v13135_v10 = vld [vmem:[#allocation39_spill] sm:$0xff]  ;;  %v13136_v40 = vld [vmem:[#allocation40_spill] sm:$0xff] }
 0x47b   : > { %9634 = vmatprep.mubr.msk.f32.mxu1 %vm272_vm0, %v11948_v27  ;;  %v3920_v27 = vld [vmem:[#allocation8 + $0xe0] sm:$0xff] }
 0x47e   : > { %9635 = vmatmul.mubr.msk.f32.gmra.mrb[12].mxu1 %vm272_vm0, %v11954_v29  ;;  %v3921_v29 = vld [vmem:[#allocation8 + $0xe8] sm:$0xff] }
 0x47f   : > { %9637 = vmatprep.mubr.msk.f32.mxu1 %vm272_vm0, %v11960_v36  ;;  %v13117_v36 = vld [vmem:[#allocation21_spill] sm:$0xff] }
 0x482   : > { %9638 = vmatmul.mubr.msk.f32.gmra.mrb[14].mxu1 %vm272_vm0, %v11966_v41  ;;  %v10016_v41 = vpack.c.bf16 %v3921_v29, %v3920_v27  ;;  %v13138_v27 = vld [vmem:[#allocation42_spill] sm:$0xff]  ;;  %v13139_v29 = vld [vmem:[#allocation43_spill] sm:$0xff] }
 0x483   : > { %9640 = vmatprep.mubr.msk.f32.mxu1 %vm272_vm0, %v11972_v52  ;;  %v13118_v52 = vld [vmem:[#allocation22_spill] sm:$0xff] }
 0x486   : > { %9641 = vmatmul.mubr.msk.f32.gmra.mrb[16].mxu1 %vm272_vm0, %v11978_v54  ;;  %v13119_v54 = vld [vmem:[#allocation23_spill] sm:$0xff] }
 0x487   : > { %9643 = vmatprep.mubr.msk.f32.mxu1 %vm272_vm0, %v11984_v63  ;;  %v13120_v63 = vld [vmem:[#allocation24_spill] sm:$0xff] }
 0x48a   : > { %9644 = vmatmul.mubr.msk.f32.gmra.mrb[18].mxu1 %vm272_vm0, %v11990_v59  ;;  %v13121_v59 = vld [vmem:[#allocation25_spill] sm:$0xff] }
 0x48b   : > { %9646 = vmatprep.mubr.msk.f32.mxu1 %vm272_vm0, %v11996_v4  ;;  %v13122_v4 = vld [vmem:[#allocation26_spill] sm:$0xff] }
 0x48e   : > { %9647 = vmatmul.mubr.msk.f32.gmra.mrb[20].mxu1 %vm272_vm0, %v12002_v12  ;;  %v13123_v12 = vld [vmem:[#allocation27_spill] sm:$0xff] }
 0x48f   : > { %9649 = vmatprep.mubr.msk.f32.mxu1 %vm272_vm0, %v12008_v21  ;;  %v13124_v21 = vld [vmem:[#allocation28_spill] sm:$0xff] }
 0x492   : > { %9650 = vmatmul.mubr.msk.f32.gmra.mrb[22].mxu1 %vm272_vm0, %v13110_v46  ;;  %v13134_v46 = vld [vmem:[#allocation38_spill] sm:$0xff] }
 0x493   : > { %9652 = vmatprep.mubr.msk.f32.mxu1 %vm272_vm0, %v13111_v49 }
 0x496   : > { %9653 = vmatmul.mubr.msk.f32.gmra.mrb[24].mxu1 %vm272_vm0, %v13112_v17 }
 0x497   : > { %9655 = vmatprep.mubr.msk.f32.mxu1 %vm272_vm0, %v13113_v20 }
 0x49a   : > { %9656 = vmatmul.mubr.msk.f32.gmra.mrb[26].mxu1 %vm272_vm0, %v13114_v58 }
 0x49b   : > { %9658 = vmatprep.mubr.msk.f32.mxu1 %vm272_vm0, %v13115_v7 }
 0x49e   : > { %9659 = vmatmul.mubr.msk.f32.gmra.mrb[28].mxu1 %vm272_vm0, %v13116_v3 }
 0x49f   : > { %9661 = vmatprep.mubr.msk.f32.mxu1 %vm272_vm0, %v12429_v5 }
 0x4a2   : > { %9662 = vmatmul.mubr.msk.f32.gmra.mrb[30].mxu1 %vm272_vm0, %v12433_v13 }
 0x4a3   : > { %9672 = vmatprep.mubr.msk.f32.mxu1 %vm272_vm0, %v12176_v28  ;;  %v13126_v28 = vld [vmem:[#allocation30_spill] sm:$0xff] }
 0x4a6   : > { %9673 = vmatmul.mubr.msk.f32.vlgmr.msra.gmra.mrb[0].mxu1 %vm272_vm0, %v12183_v38  ;;  %v13125_v38 = vld [vmem:[#allocation29_spill] sm:$0xff] }
 0x4a7   : > { %9675 = vmatprep.mubr.msk.f32.mxu1 %vm272_vm0, %v13117_v36  ;;  %10011 = vmatpush3.bf16.msra.mxu1 %v10008_v19  ;;  %v13133_v19 = vld [vmem:[#allocation37_spill] sm:$0xff] }
 0x4a8   : > { %10013 = vmatprep.subr.bf16.mxu1 %v10012_v60 }
 0x4aa   : > { %9676 = vmatmul.mubr.msk.f32.gmra.mrb[2].mxu1 %vm272_vm0, %v13118_v52 }
 0x4ab   : > { %9678 = vmatprep.mubr.msk.f32.mxu1 %vm272_vm0, %v13119_v54  ;;  %10015 = vmatpush3.bf16.msra.mxu1 %v10012_v60  ;;  %v13137_v60 = vld [vmem:[#allocation41_spill] sm:$0xff] }
 0x4ac   : > { %10017 = vmatprep.subr.bf16.mxu1 %v10016_v41 }
 0x4ae   : > { %9679 = vmatmul.mubr.msk.f32.gmra.mrb[4].mxu1 %vm272_vm0, %v13120_v63 }
 0x4af   : > { %9681 = vmatprep.mubr.msk.f32.mxu1 %vm272_vm0, %v13121_v59 }
 0x4b2   : > { %9682 = vmatmul.mubr.msk.f32.gmra.mrb[6].mxu1 %vm272_vm0, %v13122_v4 }
 0x4b3   : > { %9684 = vmatprep.mubr.msk.f32.mxu1 %vm272_vm0, %v13123_v12 }
 0x4b6   : > { %9685 = vmatmul.mubr.msk.f32.gmra.mrb[8].mxu1 %vm272_vm0, %v13124_v21 }
 0x4b7   : > { %9687 = vmatprep.mubr.msk.f32.mxu1 %vm272_vm0, %v13125_v38 }
 0x4ba   : > { %9688 = vmatmul.mubr.msk.f32.gmra.mrb[10].mxu1 %vm272_vm0, %v13126_v28 }
 0x4bb   : > { %9690 = vmatprep.mubr.msk.f32.mxu1 %vm272_vm0, %v13127_v50 }
 0x4be   : > { %9691 = vmatmul.mubr.msk.f32.gmra.mrb[12].mxu1 %vm272_vm0, %v13128_v16 }
 0x4bf   : > { %9693 = vmatprep.mubr.msk.f32.mxu1 %vm272_vm0, %v13129_v45 }
 0x4c2   : > { %9694 = vmatmul.mubr.msk.f32.gmra.mrb[14].mxu1 %vm272_vm0, %v13130_v37 }
 0x4c3   : > { %9696 = vmatprep.mubr.msk.f32.mxu1 %vm272_vm0, %v13131_v32 }
 0x4c6   : > { %9697 = vmatmul.mubr.msk.f32.gmra.mrb[16].mxu1 %vm272_vm0, %v13132_v48  ;;  %v13140_v48 = vld [vmem:[#allocation44_spill] sm:$0xff] }
 0x4c7   : > { %9699 = vmatprep.mubr.msk.f32.mxu1 %vm272_vm0, %v13133_v19  ;;  %v13141_v19 = vld [vmem:[#allocation45_spill] sm:$0xff] }
 0x4ca   : > { %9700 = vmatmul.mubr.msk.f32.gmra.mrb[18].mxu1 %vm272_vm0, %v13134_v46 }
 0x4cb   : > { %9702 = vmatprep.mubr.msk.f32.mxu1 %vm272_vm0, %v13135_v10  ;;  %v13142_v10 = vld [vmem:[#allocation13_spill] sm:$0xff] }
 0x4ce   : > { %9703 = vmatmul.mubr.msk.f32.gmra.mrb[20].mxu1 %vm272_vm0, %v13136_v40 }
 0x4cf   : > { %9705 = vmatprep.mubr.msk.f32.mxu1 %vm272_vm0, %v13137_v60  ;;  %v12497_v60 = vld [vmem:[#allocation2 + $0x209] sm:$0xff] }
 0x4d0   : > { %13143 = vst [vmem:[#allocation14_spill] sm:$0xff] %v12497_v60 }
 0x4d2   : > { %9706 = vmatmul.mubr.msk.f32.gmra.mrb[22].mxu1 %vm272_vm0, %v13138_v27  ;;  %v3923_v27 = vld [vmem:[#allocation8 + $0xf8] sm:$0xff] }
 0x4d3   : > { %9708 = vmatprep.mubr.msk.f32.mxu1 %vm272_vm0, %v13139_v29  ;;  %v12501_v29 = vld [vmem:[#allocation2 + $0x211] sm:$0xff] }
 0x4d6   : > { %9709 = vmatmul.mubr.msk.f32.gmra.mrb[24].mxu1 %vm272_vm0, %v13140_v48  ;;  %v3922_v48 = vld [vmem:[#allocation8 + $0xf0] sm:$0xff] }
 0x4d7   : > { %9711 = vmatprep.mubr.msk.f32.mxu1 %vm272_vm0, %v13141_v19  ;;  %v3925_v19 = vld [vmem:[#allocation8 + $0x108] sm:$0xff] }
 0x4da   : > { %9712 = vmatmul.mubr.msk.f32.gmra.mrb[26].mxu1 %vm272_vm0, %v12288_v33  ;;  %v10020_v33 = vpack.c.bf16 %v3923_v27, %v3922_v48  ;;  %v7402_v48 = vld [vmem:[%s11000_s12 + $0x10] sm:$0xff]  ;;  %v7405_v27 = vld [vmem:[%s11000_s12 + $0x28] sm:$0xff] }
 0x4db   : > { %9714 = vmatprep.mubr.msk.f32.mxu1 %vm272_vm0, %v13142_v10  ;;  %v3924_v10 = vld [vmem:[#allocation8 + $0x100] sm:$0xff] }
 0x4de   : > { %9715 = vmatmul.mubr.msk.f32.gmra.mrb[28].mxu1 %vm272_vm0, %v12296_v53 }
 0x4df   : > { %9717 = vmatprep.mubr.msk.f32.mxu1 %vm272_vm0, %v12497_v60  ;;  %v10024_v60 = vpack.c.bf16 %v3925_v19, %v3924_v10 }
 0x4e2   : > { %9718 = vmatmul.mubr.msk.f32.gmra.mrb[30].mxu1 %vm272_vm0, %v12501_v29 }
 0x4e3   : > { %9728 = vmatprep.mubr.msk.f32.mxu1 %vm272_vm0, %v12061_v6  ;;  %v6236_v6 = vld [vmem:[#allocation2 + $0x227] sm:$0xff] }
 0x4e6   : > { %9729 = vmatmul.mubr.msk.f32.vlgmr.msra.gmra.mrb[0].mxu1 %vm272_vm0, %v12066_v18  ;;  %v6237_v18 = vld [vmem:[#allocation2 + $0x22f] sm:$0xff] }
 0x4e7   : > { %9731 = vmatprep.mubr.msk.f32.mxu1 %vm272_vm0, %v12070_v43  ;;  %10019 = vmatpush3.bf16.msra.mxu1 %v10016_v41  ;;  %v3926_v43 = vld [vmem:[#allocation8 + $0x110] sm:$0xff] }
 0x4e8   : > { %10021 = vmatprep.subr.bf16.mxu1 %v10020_v33  ;;  %v7006_v41 = vld [vmem:[#allocation2 + $0x229] sm:$0xff] }
 0x4ea   : > { %9732 = vmatmul.mubr.msk.f32.gmra.mrb[2].mxu1 %vm272_vm0, %v12074_v56  ;;  %v3927_v56 = vld [vmem:[#allocation8 + $0x118] sm:$0xff] }
 0x4eb   : > { %9734 = vmatprep.mubr.msk.f32.mxu1 %vm272_vm0, %v12078_v55  ;;  %10023 = vmatpush3.bf16.msra.mxu1 %v10020_v33  ;;  %v6591_v55 = vld [vmem:[#allocation2 + $0x48] sm:$0xff]  ;;  %v6622_v33 = vld [vmem:[#allocation2 + $0x230] sm:$0xff] }
 0x4ec   : > { %10025 = vmatprep.subr.bf16.mxu1 %v10024_v60 }
 0x4ee   : > { %9735 = vmatmul.mubr.msk.f32.gmra.mrb[4].mxu1 %vm272_vm0, %v12082_v57  ;;  %v10028_v57 = vpack.c.bf16 %v3927_v56, %v3926_v43  ;;  %v7404_v43 = vld [vmem:[%s11000_s12 + $0x20] sm:$0xff] }
 0x4ef   : > { %9737 = vmatprep.mubr.msk.f32.mxu1 %vm272_vm0, %v12086_v0  ;;  %v6592_v0 = vld [vmem:[#allocation2 + $0x50] sm:$0xff] }
 0x4f2   : > { %9738 = vmatmul.mubr.msk.f32.gmra.mrb[6].mxu1 %vm272_vm0, %v12090_v1  ;;  %v6593_v1 = vld [vmem:[#allocation2 + $0x68] sm:$0xff] }
 0x4f3   : > { %9740 = vmatprep.mubr.msk.f32.mxu1 %vm272_vm0, %v12094_v2  ;;  %v6594_v2 = vld [vmem:[#allocation2 + $0x70] sm:$0xff] }
 0x4f6   : > { %9741 = vmatmul.mubr.msk.f32.gmra.mrb[8].mxu1 %vm272_vm0, %v12098_v8  ;;  %v6595_v8 = vld [vmem:[#allocation2 + $0x88] sm:$0xff] }
 0x4f7   : > { %9743 = vmatprep.mubr.msk.f32.mxu1 %vm272_vm0, %v12102_v15  ;;  %v6596_v15 = vld [vmem:[#allocation2 + $0x90] sm:$0xff] }
 0x4fa   : > { %9744 = vmatmul.mubr.msk.f32.gmra.mrb[10].mxu1 %vm272_vm0, %v12106_v9  ;;  %v6597_v9 = vld [vmem:[#allocation2 + $0xa8] sm:$0xff] }
 0x4fb   : > { %9746 = vmatprep.mubr.msk.f32.mxu1 %vm272_vm0, %v12110_v22  ;;  %v6598_v22 = vld [vmem:[#allocation2 + $0xb0] sm:$0xff] }
 0x4fe   : > { %9747 = vmatmul.mubr.msk.f32.gmra.mrb[12].mxu1 %vm272_vm0, %v12114_v24  ;;  %v6599_v24 = vld [vmem:[#allocation2 + $0xc8] sm:$0xff] }
 0x4ff   : > { %9749 = vmatprep.mubr.msk.f32.mxu1 %vm272_vm0, %v12118_v11  ;;  %v6600_v11 = vld [vmem:[#allocation2 + $0xd0] sm:$0xff] }
 0x502   : > { %9750 = vmatmul.mubr.msk.f32.gmra.mrb[14].mxu1 %vm272_vm0, %v12122_v35  ;;  %v6601_v35 = vld [vmem:[#allocation2 + $0xe8] sm:$0xff] }
 0x503   : > { %9752 = vmatprep.mubr.msk.f32.mxu1 %vm272_vm0, %v12126_v39  ;;  %v6602_v39 = vld [vmem:[#allocation2 + $0xf0] sm:$0xff] }
 0x506   : > { %9753 = vmatmul.mubr.msk.f32.gmra.mrb[16].mxu1 %vm272_vm0, %v12130_v51  ;;  %v6603_v51 = vld [vmem:[#allocation2 + $0x108] sm:$0xff] }
 0x507   : > { %9755 = vmatprep.mubr.msk.f32.mxu1 %vm272_vm0, %v12134_v61  ;;  %v6604_v61 = vld [vmem:[#allocation2 + $0x110] sm:$0xff] }
 0x50a   : > { %9756 = vmatmul.mubr.msk.f32.gmra.mrb[18].mxu1 %vm272_vm0, %v12138_v62  ;;  %v6605_v62 = vld [vmem:[#allocation2 + $0x128] sm:$0xff] }
 0x50b   : > { %9758 = vmatprep.mubr.msk.f32.mxu1 %vm272_vm0, %v12142_v23  ;;  %v6606_v23 = vld [vmem:[#allocation2 + $0x130] sm:$0xff] }
 0x50e   : > { %9759 = vmatmul.mubr.msk.f32.gmra.mrb[20].mxu1 %vm272_vm0, %v12146_v26  ;;  %v6607_v26 = vld [vmem:[#allocation2 + $0x148] sm:$0xff] }
 0x50f   : > { %9761 = vmatprep.mubr.msk.f32.mxu1 %vm272_vm0, %v12150_v30  ;;  %v6608_v30 = vld [vmem:[#allocation2 + $0x150] sm:$0xff] }
 0x512   : > { %9762 = vmatmul.mubr.msk.f32.gmra.mrb[22].mxu1 %vm272_vm0, %v12154_v31  ;;  %v6609_v31 = vld [vmem:[#allocation2 + $0x168] sm:$0xff] }
 0x513   : > { %9764 = vmatprep.mubr.msk.f32.mxu1 %vm272_vm0, %v12158_v34  ;;  %v6610_v34 = vld [vmem:[#allocation2 + $0x170] sm:$0xff] }
 0x516   : > { %9765 = vmatmul.mubr.msk.f32.gmra.mrb[24].mxu1 %vm272_vm0, %v12162_v42  ;;  %v6611_v42 = vld [vmem:[#allocation2 + $0x188] sm:$0xff] }
 0x517   : > { %9767 = vmatprep.mubr.msk.f32.mxu1 %vm272_vm0, %v12166_v44  ;;  %v6612_v44 = vld [vmem:[#allocation2 + $0x190] sm:$0xff] }
 0x51a   : > { %9768 = vmatmul.mubr.msk.f32.gmra.mrb[26].mxu1 %vm272_vm0, %v12170_v47  ;;  %v6621_v47 = vld [vmem:[#allocation2 + $0x228] sm:$0xff] }
 0x51b   : > { %9770 = vmatprep.mubr.msk.f32.mxu1 %vm272_vm0, %v12361_v25  ;;  %v13144_v25 = vld [vmem:[#allocation36_spill] sm:$0xff] }
 0x51e   : > { %9771 = vmatmul.mubr.msk.f32.gmra.mrb[28].mxu1 %vm272_vm0, %v12365_v14  ;;  %v13145_v14 = vld [vmem:[#allocation37_spill] sm:$0xff] }
 0x51f   : > { %9773 = vmatprep.mubr.msk.f32.mxu1 %vm272_vm0, %v6236_v6 }
 0x522   : > { %9774 = vmatmul.mubr.msk.f32.gmra.mrb[30].mxu1 %vm272_vm0, %v6237_v18 }
 0x523   : > { %9784 = vmatprep.mubr.msk.f32.mxu1 %vm272_vm0, %v6591_v55 }
 0x526   : > { %9785 = vmatmul.mubr.msk.f32.vlgmr.msra.gmra.mrb[0].mxu1 %vm272_vm0, %v6592_v0 }
 0x527   : > { %9787 = vmatprep.mubr.msk.f32.mxu1 %vm272_vm0, %v6593_v1  ;;  %10027 = vmatpush3.bf16.msra.mxu1 %v10024_v60 }
 0x528   : > { %10029 = vmatprep.subr.bf16.mxu1 %v10028_v57 }
 0x52a   : > { %9788 = vmatmul.mubr.msk.f32.gmra.mrb[2].mxu1 %vm272_vm0, %v6594_v2  ;;  %v7407_v2 = vld [vmem:[%s11000_s12 + $0x38] sm:$0xff] }
 0x52b   : > { %9790 = vmatprep.mubr.msk.f32.mxu1 %vm272_vm0, %v6595_v8  ;;  %10031 = vmatpush3.bf16.msra.mxu1 %v10028_v57 }
 0x52e   : > { %9791 = vmatmul.mubr.msk.f32.gmra.mrb[4].mxu1 %vm272_vm0, %v6596_v15 }
 0x52f   : > { %9793 = vmatprep.mubr.msk.f32.mxu1 %vm272_vm0, %v6597_v9 }
 0x532   : > { %9794 = vmatmul.mubr.msk.f32.gmra.mrb[6].mxu1 %vm272_vm0, %v6598_v22  ;;  %v7406_v22 = vld [vmem:[%s11000_s12 + $0x30] sm:$0xff] }
 0x533   : > { %9796 = vmatprep.mubr.msk.f32.mxu1 %vm272_vm0, %v6599_v24 }
 0x536   : > { %9797 = vmatmul.mubr.msk.f32.gmra.mrb[8].mxu1 %vm272_vm0, %v6600_v11 }
 0x537   : > { %9799 = vmatprep.mubr.msk.f32.mxu1 %vm272_vm0, %v6601_v35 }
 0x53a   : > { %9800 = vmatmul.mubr.msk.f32.gmra.mrb[10].mxu1 %vm272_vm0, %v6602_v39 }
 0x53b   : > { %9802 = vmatprep.mubr.msk.f32.mxu1 %vm272_vm0, %v6603_v51 }
 0x53e   : > { %9803 = vmatmul.mubr.msk.f32.gmra.mrb[12].mxu1 %vm272_vm0, %v6604_v61  ;;  %v7409_v61 = vld [vmem:[%s11000_s12 + $0x48] sm:$0xff] }
 0x53f   : > { %9805 = vmatprep.mubr.msk.f32.mxu1 %vm272_vm0, %v6605_v62 }
 0x542   : > { %9806 = vmatmul.mubr.msk.f32.gmra.mrb[14].mxu1 %vm272_vm0, %v6606_v23 }
 0x543   : > { %9808 = vmatprep.mubr.msk.f32.mxu1 %vm272_vm0, %v6607_v26 }
 0x546   : > { %9809 = vmatmul.mubr.msk.f32.gmra.mrb[16].mxu1 %vm272_vm0, %v6608_v30  ;;  %v7408_v30 = vld [vmem:[%s11000_s12 + $0x40] sm:$0xff] }
 0x547   : > { %9811 = vmatprep.mubr.msk.f32.mxu1 %vm272_vm0, %v6609_v31 }
 0x54a   : > { %9812 = vmatmul.mubr.msk.f32.gmra.mrb[18].mxu1 %vm272_vm0, %v6610_v34 }
 0x54b   : > { %9814 = vmatprep.mubr.msk.f32.mxu1 %vm272_vm0, %v6611_v42 }
 0x54e   : > { %9815 = vmatmul.mubr.msk.f32.gmra.mrb[20].mxu1 %vm272_vm0, %v6612_v44 }
 0x54f   : > { %9817 = vmatprep.mubr.msk.f32.mxu1 %vm272_vm0, %v13111_v49  ;;  %v13146_v49 = vld [vmem:[#allocation39_spill] sm:$0xff] }
 0x552   : > { %9818 = vmatmul.mubr.msk.f32.gmra.mrb[22].mxu1 %vm272_vm0, %v13112_v17  ;;  %v13147_v17 = vld [vmem:[#allocation41_spill] sm:$0xff] }
 0x553   : > { %9820 = vmatprep.mubr.msk.f32.mxu1 %vm272_vm0, %v13113_v20  ;;  %v13148_v20 = vld [vmem:[#allocation42_spill] sm:$0xff] }
 0x556   : > { %9821 = vmatmul.mubr.msk.f32.gmra.mrb[24].mxu1 %vm272_vm0, %v13114_v58  ;;  %v13149_v58 = vld [vmem:[#allocation43_spill] sm:$0xff] }
 0x557   : > { %9823 = vmatprep.mubr.msk.f32.mxu1 %vm272_vm0, %v13115_v7  ;;  %v13150_v7 = vld [vmem:[#allocation44_spill] sm:$0xff] }
 0x55a   : > { %9824 = vmatmul.mubr.msk.f32.gmra.mrb[26].mxu1 %vm272_vm0, %v13116_v3  ;;  %v13151_v3 = vld [vmem:[#allocation45_spill] sm:$0xff] }
 0x55b   : > { %9826 = vmatprep.mubr.msk.f32.mxu1 %vm272_vm0, %v12429_v5  ;;  %v13152_v5 = vld [vmem:[#allocation46_spill] sm:$0xff] }
 0x55e   : > { %9827 = vmatmul.mubr.msk.f32.gmra.mrb[28].mxu1 %vm272_vm0, %v12433_v13  ;;  %v13153_v13 = vld [vmem:[#allocation13_spill] sm:$0xff] }
 0x55f   : > { %9829 = vmatprep.mubr.msk.f32.mxu1 %vm272_vm0, %v6621_v47 }
 0x562   : > { %9830 = vmatmul.mubr.msk.f32.gmra.mrb[30].mxu1 %vm272_vm0, %v6622_v33  ;;  %v7411_v33 = vld [vmem:[%s11000_s12 + $0x58] sm:$0xff] }
 0x563   : > { %9840 = vmatprep.mubr.msk.f32.mxu1 %vm272_vm0, %v13117_v36  ;;  %v13154_v36 = vld [vmem:[#allocation14_spill] sm:$0xff] }
 0x566   : > { %9841 = vmatmul.mubr.msk.f32.vlgmr.msra.gmra.mrb[0].mxu1 %vm272_vm0, %v13118_v52  ;;  %v7007_v52 = vld [vmem:[#allocation2 + $0x231] sm:$0xff] }
 0x567   : > { %9843 = vmatprep.mubr.msk.f32.mxu1 %vm272_vm0, %v13119_v54  ;;  %v12672_v54 = vld [vmem:[%s12861_s4] ss:$0 sm:$0xff] }
 0x56a   : > { %9844 = vmatmul.mubr.msk.f32.gmra.mrb[2].mxu1 %vm272_vm0, %v13120_v63  ;;  %v7401_v63 = vld [vmem:[%s11000_s12 + $0x8] sm:$0xff] }
 0x56b   : > { %9846 = vmatprep.mubr.msk.f32.mxu1 %vm272_vm0, %v13121_v59 }
 0x56e   : > { %9847 = vmatmul.mubr.msk.f32.gmra.mrb[4].mxu1 %vm272_vm0, %v13122_v4 }
 0x56f   : > { %9849 = vmatprep.mubr.msk.f32.mxu1 %vm272_vm0, %v13123_v12  ;;  %v7400_v12 = vld [vmem:[%s11000_s12] sm:$0xff] }
 0x572   : > { %9850 = vmatmul.mubr.msk.f32.gmra.mrb[6].mxu1 %vm272_vm0, %v13124_v21 }
 0x573   : > { %9852 = vmatprep.mubr.msk.f32.mxu1 %vm272_vm0, %v13125_v38 }
 0x576   : > { %9853 = vmatmul.mubr.msk.f32.gmra.mrb[8].mxu1 %vm272_vm0, %v13126_v28 }
 0x577   : > { %9855 = vmatprep.mubr.msk.f32.mxu1 %vm272_vm0, %v13127_v50 }
 0x57a   : > { %9856 = vmatmul.mubr.msk.f32.gmra.mrb[10].mxu1 %vm272_vm0, %v13128_v16  ;;  %v7403_v16 = vld [vmem:[%s11000_s12 + $0x18] sm:$0xff] }
 0x57b   : > { %9858 = vmatprep.mubr.msk.f32.mxu1 %vm272_vm0, %v13129_v45 }
 0x57e   : > { %9859 = vmatmul.mubr.msk.f32.gmra.mrb[12].mxu1 %vm272_vm0, %v13130_v37 }
 0x57f   : > { %9861 = vmatprep.mubr.msk.f32.mxu1 %vm272_vm0, %v13131_v32 }
 0x582   : > { %9862 = vmatmul.mubr.msk.f32.gmra.mrb[14].mxu1 %vm272_vm0, %v13144_v25 }
 0x583   : > { %9864 = vmatprep.mubr.msk.f32.mxu1 %vm272_vm0, %v13145_v14 }
 0x586   : > { %9865 = vmatmul.mubr.msk.f32.gmra.mrb[16].mxu1 %vm272_vm0, %v13134_v46 }
 0x587   : > { %9867 = vmatprep.mubr.msk.f32.mxu1 %vm272_vm0, %v13146_v49 }
 0x58a   : > { %9868 = vmatmul.mubr.msk.f32.gmra.mrb[18].mxu1 %vm272_vm0, %v13136_v40 }
 0x58b   : > { %9870 = vmatprep.mubr.msk.f32.mxu1 %vm272_vm0, %v13147_v17  ;;  %v7410_v17 = vld [vmem:[%s11000_s12 + $0x50] sm:$0xff] }
 0x58e   : > { %9871 = vmatmul.mubr.msk.f32.gmra.mrb[20].mxu1 %vm272_vm0, %v13148_v20 }
 0x58f   : > { %9873 = vmatprep.mubr.msk.f32.mxu1 %vm272_vm0, %v13149_v58 }
 0x592   : > { %9874 = vmatmul.mubr.msk.f32.gmra.mrb[22].mxu1 %vm272_vm0, %v13150_v7 }
 0x593   : > { %9876 = vmatprep.mubr.msk.f32.mxu1 %vm272_vm0, %v13151_v3 }
 0x596   : > { %9877 = vmatmul.mubr.msk.f32.gmra.mrb[24].mxu1 %vm272_vm0, %v13152_v5 }
 0x597   : > { %9879 = vmatprep.mubr.msk.f32.mxu1 %vm272_vm0, %v13153_v13  ;;  %v7413_v13 = vld [vmem:[%s11000_s12 + $0x68] sm:$0xff] }
 0x59a   : > { %9880 = vmatmul.mubr.msk.f32.gmra.mrb[26].mxu1 %vm272_vm0, %v12296_v53 }
 0x59b   : > { %9882 = vmatprep.mubr.msk.f32.mxu1 %vm272_vm0, %v13154_v36 }
 0x59e   : > { %9883 = vmatmul.mubr.msk.f32.gmra.mrb[28].mxu1 %vm272_vm0, %v12501_v29 }
 0x59f   : > { %9885 = vmatprep.mubr.msk.f32.mxu1 %vm272_vm0, %v7006_v41 }
 0x5a2   : > { %9886 = vmatmul.mubr.msk.f32.gmra.mrb[30].mxu1 %vm272_vm0, %v7007_v52 }
 0x639   : > { %v9842_v53 = vpop.f32.mrb[0].mxu1 }
 0x63a   : > { %v7369_v59 = vadd.f32 %v9842_v53, %v12672_v54  ;;  %v7170_v4 = vpop.f32.mrb[1].mxu1  ;;  %v7412_v53 = vld [vmem:[%s11000_s12 + $0x60] sm:$0xff] }
 0x63b   : > { %v7368_v21 = vadd.f32 %v12672_v54, %v7170_v4 }
 0x63c   : > { %v7433_v38 = vadd.f32 %v7401_v63, %v7369_v59 }
 0x63d   : > { %v7432_v28 = vadd.f32 %v7400_v12, %v7368_v21  ;;  %v9845_v50 = vpop.f32.mrb[2].mxu1 }
 0x63e   : > { %v7465_v45 = vmax.f32 %v7433_v38, 0.0  ;;  %v7371_v37 = vadd.f32 %v9845_v50, %v12672_v54  ;;  %v7180_v32 = vpop.f32.mrb[3].mxu1  ;;  %v7415_v38 = vld [vmem:[%s11000_s12 + $0x78] sm:$0xff] }
 0x63f   : > { %v7464_v19 = vmax.f32 %v7432_v28, 0.0  ;;  %v7370_v46 = vadd.f32 %v12672_v54, %v7180_v32 }
 0x640   : > { %7497 = vst.msk [vmem:[%s12684_s10 + $0x8] sm:$0xff] %vm272_vm0, %v7465_v45  ;;  %v7435_v10 = vadd.f32 %v7403_v16, %v7371_v37  ;;  %v7414_v45 = vld [vmem:[%s11000_s12 + $0x70] sm:$0xff] }
 0x641   : > { %7496 = vst.msk [vmem:[%s12684_s10] sm:$0xff] %vm272_vm0, %v7464_v19  ;;  %v7434_v40 = vadd.f32 %v7402_v48, %v7370_v46  ;;  %v9848_v60 = vpop.f32.mrb[4].mxu1 }
 0x642   : > { %v7467_v29 = vmax.f32 %v7435_v10, 0.0  ;;  %v7373_v6 = vadd.f32 %v9848_v60, %v12672_v54  ;;  %v7190_v18 = vpop.f32.mrb[5].mxu1  ;;  %v7417_v10 = vld [vmem:[%s11000_s12 + $0x88] sm:$0xff] }
 0x643   : > { %v7466_v56 = vmax.f32 %v7434_v40, 0.0  ;;  %v7372_v55 = vadd.f32 %v12672_v54, %v7190_v18 }
 0x644   : > { %7499 = vst.msk [vmem:[%s12684_s10 + $0x18] sm:$0xff] %vm272_vm0, %v7467_v29  ;;  %v7437_v57 = vadd.f32 %v7405_v27, %v7373_v6  ;;  %v7416_v29 = vld [vmem:[%s11000_s12 + $0x80] sm:$0xff] }
 0x645   : > { %7498 = vst.msk [vmem:[%s12684_s10 + $0x10] sm:$0xff] %vm272_vm0, %v7466_v56  ;;  %v7436_v0 = vadd.f32 %v7404_v43, %v7372_v55  ;;  %v9851_v1 = vpop.f32.mrb[6].mxu1 }
 0x646   : > { %v7469_v8 = vmax.f32 %v7437_v57, 0.0  ;;  %v7375_v15 = vadd.f32 %v9851_v1, %v12672_v54  ;;  %v7200_v9 = vpop.f32.mrb[7].mxu1  ;;  %v7419_v57 = vld [vmem:[%s11000_s12 + $0x98] sm:$0xff] }
 0x647   : > { %v7468_v24 = vmax.f32 %v7436_v0, 0.0  ;;  %v7374_v11 = vadd.f32 %v12672_v54, %v7200_v9 }
 0x648   : > { %7501 = vst.msk [vmem:[%s12684_s10 + $0x28] sm:$0xff] %vm272_vm0, %v7469_v8  ;;  %v7439_v35 = vadd.f32 %v7407_v2, %v7375_v15  ;;  %v7418_v8 = vld [vmem:[%s11000_s12 + $0x90] sm:$0xff] }
 0x649   : > { %7500 = vst.msk [vmem:[%s12684_s10 + $0x20] sm:$0xff] %vm272_vm0, %v7468_v24  ;;  %v7438_v39 = vadd.f32 %v7406_v22, %v7374_v11  ;;  %v9854_v51 = vpop.f32.mrb[8].mxu1 }
 0x64a   : > { %v7471_v62 = vmax.f32 %v7439_v35, 0.0  ;;  %v7377_v23 = vadd.f32 %v9854_v51, %v12672_v54  ;;  %v7210_v26 = vpop.f32.mrb[9].mxu1  ;;  %v7421_v35 = vld [vmem:[%s11000_s12 + $0xa8] sm:$0xff] }
 0x64b   : > { %v7470_v31 = vmax.f32 %v7438_v39, 0.0  ;;  %v7376_v34 = vadd.f32 %v12672_v54, %v7210_v26 }
 0x64c   : > { %7503 = vst.msk [vmem:[%s12684_s10 + $0x38] sm:$0xff] %vm272_vm0, %v7471_v62  ;;  %v7441_v42 = vadd.f32 %v7409_v61, %v7377_v23  ;;  %v7420_v62 = vld [vmem:[%s11000_s12 + $0xa0] sm:$0xff] }
 0x64d   : > { %7502 = vst.msk [vmem:[%s12684_s10 + $0x30] sm:$0xff] %vm272_vm0, %v7470_v31  ;;  %v7440_v44 = vadd.f32 %v7408_v30, %v7376_v34  ;;  %v9857_v47 = vpop.f32.mrb[10].mxu1 }
 0x64e   : > { %v7473_v25 = vmax.f32 %v7441_v42, 0.0  ;;  %v7379_v14 = vadd.f32 %v9857_v47, %v12672_v54  ;;  %v7220_v49 = vpop.f32.mrb[11].mxu1  ;;  %v7423_v42 = vld [vmem:[%s11000_s12 + $0xb8] sm:$0xff] }
 0x64f   : > { %v7472_v20 = vmax.f32 %v7440_v44, 0.0  ;;  %v7378_v58 = vadd.f32 %v12672_v54, %v7220_v49 }
 0x650   : > { %7505 = vst.msk [vmem:[%s12684_s10 + $0x48] sm:$0xff] %vm272_vm0, %v7473_v25  ;;  %v7443_v7 = vadd.f32 %v7411_v33, %v7379_v14  ;;  %v7422_v25 = vld [vmem:[%s11000_s12 + $0xb0] sm:$0xff] }
 0x651   : > { %7504 = vst.msk [vmem:[%s12684_s10 + $0x40] sm:$0xff] %vm272_vm0, %v7472_v20  ;;  %v7442_v3 = vadd.f32 %v7410_v17, %v7378_v58  ;;  %v9860_v5 = vpop.f32.mrb[12].mxu1 }
 0x652   : > { %v7475_v36 = vmax.f32 %v7443_v7, 0.0  ;;  %v7381_v41 = vadd.f32 %v9860_v5, %v12672_v54  ;;  %v7230_v52 = vpop.f32.mrb[13].mxu1  ;;  %v7425_v7 = vld [vmem:[%s11000_s12 + $0xc8] sm:$0xff] }
 0x653   : > { %v7474_v63 = vmax.f32 %v7442_v3, 0.0  ;;  %v7380_v59 = vadd.f32 %v12672_v54, %v7230_v52 }
 0x654   : > { %7507 = vst.msk [vmem:[%s12684_s10 + $0x58] sm:$0xff] %vm272_vm0, %v7475_v36  ;;  %v7445_v4 = vadd.f32 %v7413_v13, %v7381_v41  ;;  %v7424_v36 = vld [vmem:[%s11000_s12 + $0xc0] sm:$0xff] }
 0x655   : > { %7506 = vst.msk [vmem:[%s12684_s10 + $0x50] sm:$0xff] %vm272_vm0, %v7474_v63  ;;  %v7444_v12 = vadd.f32 %v7412_v53, %v7380_v59  ;;  %v9863_v21 = vpop.f32.mrb[14].mxu1 }
 0x656   : > { %v7477_v28 = vmax.f32 %v7445_v4, 0.0  ;;  %v7383_v50 = vadd.f32 %v9863_v21, %v12672_v54  ;;  %v7240_v16 = vpop.f32.mrb[15].mxu1  ;;  %v7427_v4 = vld [vmem:[%s11000_s12 + $0xd8] sm:$0xff] }
 0x657   : > { %v7476_v37 = vmax.f32 %v7444_v12, 0.0  ;;  %v7382_v32 = vadd.f32 %v12672_v54, %v7240_v16 }
 0x658   : > { %7509 = vst.msk [vmem:[%s12684_s10 + $0x68] sm:$0xff] %vm272_vm0, %v7477_v28  ;;  %v7447_v48 = vadd.f32 %v7415_v38, %v7383_v50  ;;  %v7426_v28 = vld [vmem:[%s11000_s12 + $0xd0] sm:$0xff] }
 0x659   : > { %7508 = vst.msk [vmem:[%s12684_s10 + $0x60] sm:$0xff] %vm272_vm0, %v7476_v37  ;;  %v7446_v19 = vadd.f32 %v7414_v45, %v7382_v32  ;;  %v9866_v46 = vpop.f32.mrb[16].mxu1 }
 0x65a   : > { %v7479_v40 = vmax.f32 %v7447_v48, 0.0  ;;  %v7385_v60 = vadd.f32 %v9866_v46, %v12672_v54  ;;  %v7250_v27 = vpop.f32.mrb[17].mxu1  ;;  %v7429_v48 = vld [vmem:[%s11000_s12 + $0xe8] sm:$0xff] }
 0x65b   : > { %v7478_v6 = vmax.f32 %v7446_v19, 0.0  ;;  %v7384_v18 = vadd.f32 %v12672_v54, %v7250_v27 }
 0x65c   : > { %7511 = vst.msk [vmem:[%s12684_s10 + $0x78] sm:$0xff] %vm272_vm0, %v7479_v40  ;;  %v7449_v43 = vadd.f32 %v7417_v10, %v7385_v60  ;;  %v7428_v40 = vld [vmem:[%s11000_s12 + $0xe0] sm:$0xff] }
 0x65d   : > { %7510 = vst.msk [vmem:[%s12684_s10 + $0x70] sm:$0xff] %vm272_vm0, %v7478_v6  ;;  %v7448_v56 = vadd.f32 %v7416_v29, %v7384_v18  ;;  %v9869_v55 = vpop.f32.mrb[18].mxu1 }
 0x65e   : > { %v7481_v0 = vmax.f32 %v7449_v43, 0.0  ;;  %v7387_v1 = vadd.f32 %v9869_v55, %v12672_v54  ;;  %v7260_v2 = vpop.f32.mrb[19].mxu1  ;;  %v7431_v43 = vld [vmem:[%s11000_s12 + $0xf8] sm:$0xff] }
 0x65f   : > { %v7480_v15 = vmax.f32 %v7448_v56, 0.0  ;;  %v7386_v9 = vadd.f32 %v12672_v54, %v7260_v2 }
 0x660   : > { %7513 = vst.msk [vmem:[%s12684_s10 + $0x88] sm:$0xff] %vm272_vm0, %v7481_v0  ;;  %v7451_v22 = vadd.f32 %v7419_v57, %v7387_v1  ;;  %v7430_v0 = vld [vmem:[%s11000_s12 + $0xf0] sm:$0xff] }
 0x661   : > { %7512 = vst.msk [vmem:[%s12684_s10 + $0x80] sm:$0xff] %vm272_vm0, %v7480_v15  ;;  %v7450_v24 = vadd.f32 %v7418_v8, %v7386_v9  ;;  %v9872_v11 = vpop.f32.mrb[20].mxu1 }
 0x662   : > { %v7483_v39 = vmax.f32 %v7451_v22, 0.0  ;;  %v7389_v51 = vadd.f32 %v9872_v11, %v12672_v54  ;;  %v7270_v61 = vpop.f32.mrb[21].mxu1 }
 0x663   : > { %v7482_v23 = vmax.f32 %v7450_v24, 0.0  ;;  %v7388_v26 = vadd.f32 %v12672_v54, %v7270_v61 }
 0x664   : > { %7515 = vst.msk [vmem:[%s12684_s10 + $0x98] sm:$0xff] %vm272_vm0, %v7483_v39  ;;  %v7453_v30 = vadd.f32 %v7421_v35, %v7389_v51 }
 0x665   : > { %7514 = vst.msk [vmem:[%s12684_s10 + $0x90] sm:$0xff] %vm272_vm0, %v7482_v23  ;;  %v7452_v31 = vadd.f32 %v7420_v62, %v7388_v26  ;;  %v9875_v34 = vpop.f32.mrb[22].mxu1 }
 0x666   : > { %v7485_v44 = vmax.f32 %v7453_v30, 0.0  ;;  %v7391_v47 = vadd.f32 %v9875_v34, %v12672_v54  ;;  %v7280_v33 = vpop.f32.mrb[23].mxu1 }
 0x667   : > { %v7484_v14 = vmax.f32 %v7452_v31, 0.0  ;;  %v7390_v49 = vadd.f32 %v12672_v54, %v7280_v33 }
 0x668   : > { %7517 = vst.msk [vmem:[%s12684_s10 + $0xa8] sm:$0xff] %vm272_vm0, %v7485_v44  ;;  %v7455_v17 = vadd.f32 %v7423_v42, %v7391_v47 }
 0x669   : > { %7516 = vst.msk [vmem:[%s12684_s10 + $0xa0] sm:$0xff] %vm272_vm0, %v7484_v14  ;;  %v7454_v20 = vadd.f32 %v7422_v25, %v7390_v49  ;;  %v9878_v58 = vpop.f32.mrb[24].mxu1 }
 0x66a   : > { %v7487_v3 = vmax.f32 %v7455_v17, 0.0  ;;  %v7393_v5 = vadd.f32 %v9878_v58, %v12672_v54  ;;  %v7290_v13 = vpop.f32.mrb[25].mxu1 }
 0x66b   : > { %v7486_v41 = vmax.f32 %v7454_v20, 0.0  ;;  %v7392_v52 = vadd.f32 %v12672_v54, %v7290_v13 }
 0x66c   : > { %7519 = vst.msk [vmem:[%s12684_s10 + $0xb8] sm:$0xff] %vm272_vm0, %v7487_v3  ;;  %v7457_v53 = vadd.f32 %v7425_v7, %v7393_v5 }
 0x66d   : > { %7518 = vst.msk [vmem:[%s12684_s10 + $0xb0] sm:$0xff] %vm272_vm0, %v7486_v41  ;;  %v7456_v63 = vadd.f32 %v7424_v36, %v7392_v52  ;;  %v9881_v59 = vpop.f32.mrb[26].mxu1 }
 0x66e   : > { %v7489_v12 = vmax.f32 %v7457_v53, 0.0  ;;  %v7395_v21 = vadd.f32 %v9881_v59, %v12672_v54  ;;  %v7300_v38 = vpop.f32.mrb[27].mxu1 }
 0x66f   : > { %v7488_v50 = vmax.f32 %v7456_v63, 0.0  ;;  %v7394_v16 = vadd.f32 %v12672_v54, %v7300_v38 }
 0x670   : > { %7521 = vst.msk [vmem:[%s12684_s10 + $0xc8] sm:$0xff] %vm272_vm0, %v7489_v12  ;;  %v7459_v45 = vadd.f32 %v7427_v4, %v7395_v21 }
 0x671   : > { %7520 = vst.msk [vmem:[%s12684_s10 + $0xc0] sm:$0xff] %vm272_vm0, %v7488_v50  ;;  %v7458_v37 = vadd.f32 %v7426_v28, %v7394_v16  ;;  %v9884_v32 = vpop.f32.mrb[28].mxu1 }
 0x672   : > { %v7491_v19 = vmax.f32 %v7459_v45, 0.0  ;;  %v7397_v46 = vadd.f32 %v9884_v32, %v12672_v54  ;;  %v7310_v10 = vpop.f32.mrb[29].mxu1 }
 0x673   : > { %v7490_v60 = vmax.f32 %v7458_v37, 0.0  ;;  %v7396_v27 = vadd.f32 %v12672_v54, %v7310_v10 }
 0x674   : > { %7523 = vst.msk [vmem:[%s12684_s10 + $0xd8] sm:$0xff] %vm272_vm0, %v7491_v19  ;;  %v7461_v29 = vadd.f32 %v7429_v48, %v7397_v46 }
 0x675   : > { %7522 = vst.msk [vmem:[%s12684_s10 + $0xd0] sm:$0xff] %vm272_vm0, %v7490_v60  ;;  %v7460_v6 = vadd.f32 %v7428_v40, %v7396_v27  ;;  %v9887_v18 = vpop.f32.mrb[30].mxu1 }
 0x676   : > { %v7493_v56 = vmax.f32 %v7461_v29, 0.0  ;;  %v7399_v55 = vadd.f32 %v9887_v18, %v12672_v54  ;;  %v7320_v57 = vpop.f32.mrb[31].mxu1 }
 0x677   : > { %v7492_v1 = vmax.f32 %v7460_v6, 0.0  ;;  %v7398_v2 = vadd.f32 %v12672_v54, %v7320_v57 }
 0x678   : > { %7525 = vst.msk [vmem:[%s12684_s10 + $0xe8] sm:$0xff] %vm272_vm0, %v7493_v56  ;;  %v7463_v8 = vadd.f32 %v7431_v43, %v7399_v55 }
 0x679   : > { %7524 = vst.msk [vmem:[%s12684_s10 + $0xe0] sm:$0xff] %vm272_vm0, %v7492_v1  ;;  %v7462_v15 = vadd.f32 %v7430_v0, %v7398_v2 }
 0x67a   : > { %v7495_v9 = vmax.f32 %v7463_v8, 0.0 }
 0x67b   : > { %v7494_v54 = vmax.f32 %v7462_v15, 0.0 }
 0x67c   : > { %7527 = vst.msk [vmem:[%s12684_s10 + $0xf8] sm:$0xff] %vm272_vm0, %v7495_v9 }
 0x67d   : > { %7526 = vst.msk [vmem:[%s12684_s10 + $0xf0] sm:$0xff] %vm272_vm0, %v7494_v54 }
 0x67e   : > { %10715 = shalt.err (!%p10712_p1)
}
 0x67f   : > { %s10716_s12 = scalar_lea.hbm %s12807_s11, 4096  ;;  %s10720_s15 = scalar_lea.hbm %s12862_s5, 8192 }
 0x680   : > { %p10717_p13 = scmp.ne.s32.totalorder %s12807_s11, %s10716_s12  ;;  %p10721_p4 = scmp.lt.u32.totalorder %s12807_s11, %s12862_s5 }
 0x681   : > { %p10722_p5 = scmp.lt.u32.totalorder %s10720_s15, %s10716_s12  ;;  %p10724_p11 = scmp.lt.u32.totalorder %s10716_s12, %s12807_s11 }
 0x682   : > { %p10718_p6 = pnand %p10717_p13, %p13155_p0 }
 0x683   : > { %p10723_p8 = por %p10722_p5, %p10721_p4 }
 0x684   : > { %p10719_p10 = pneg %p10718_p6 }
 0x685   : > { %p10725_p2 = por %p10724_p11, %p10723_p8 }
 0x687   : > { %p10726_p3 = pnand %p10725_p2, %p10719_p10 }
 0x689   : > { %10729 = shalt.err (!%p10726_p3)
}
 0x68a   : > { %s10781_s28 = smov 128   ;;  %s10782_s9 = smov 8  }
 0x68b   : > { %10554 = dma.vmem_to_hbm [thread:$0]  (%p13155_p0), %s12809_s13, 4096, %s12807_s11, %s7529_s22, %s10781_s28, %s10781_s28, %s10782_s9  }
 0x68c PF: > { %s7557_s30 = sand.u32 1, %s10760_s18   ;;  %p13156_p7 = scmp.ne.s32.totalorder %s12994_s25, 0 }
 0x68d   : > { %p13157_p9 = scmp.ge.s32.totalorder %s10772_s21, 2  ;;  %s7558_s17 = scalar_lea.sflag [#allocation5], %s7557_s30 }
 0x68f   : > { %p10568_p12 = pnand %p13157_p9, %p13156_p7 }
 0x691   : > { %10755 = dma.done.wait (!%p10568_p12), %s7558_s17, 4096  }
 0x692   : > { %10757 = vsyncadd (!%p10568_p12), %s7558_s17, 4294963200  ;;  %p19_p1 = scmp.ge.s32.totalorder %s10929_s29, 4   ;;  %s13158_s18 = smov %s10764_s19 }
 0x693   : > { %s13159_s19 = smov %s10768_s20  ;;  %s13160_s20 = smov %s10945_s27 }
 0x694   : > { %s13161_s21 = smov %s10929_s29  ;;  %21 = sbr.rel (!%p19_p1) target bundleno = 6 (0x6), region = 96 }
 0x69b   :  { %7563 = vsyncpa [#allocation4], 1 }
 0x69c   :  { %7565 = vsyncpa [#allocation4 + $0x1], 1 }
 0x69d   :  { %7566 = vsyncpa [#allocation7], 1 }
 0x69e   :  { %7567 = vsyncpa [#allocation5], 1 }
 0x69f   :  { %7569 = vsyncpa [#allocation5 + $0x1], 1 }

</bundles_post_ra>
